<compile_context>
chip_gen: v6e
topology: v6e:2x2x1
jax: 0.10.0
libtpu: 0.0.40
codegen_flags: <defaults>
</compile_context>

<pallas_src>
import functools

import numpy as np
import jax
import jax.numpy as jnp
from jax.experimental import pallas as pl
from jax.experimental.pallas import tpu as pltpu

_NUM_CLASSES = 10
_LAT_PAD = 128      # latent dim (32) lane-padded to a full lane register
_OUT_LANES = 128    # logits (10) lane-padded to a full lane register
_MAX_BLOCK = 64     # samples per grid step (multiple of 8); keeps VMEM footprint < ~10 MiB


def _round_up(x, m):
    return (x + m - 1) // m * m


# ------------------------------ fused Pallas kernel ------------------------------ #

def _vae_kernel(*refs, relus):
    """refs = (x_ref, w0, b0, w1, b1, ..., w8, b8, o_ref).

    Each layer:  h <- relu?( h_bf16 @ W_bf16 + bias_f32 ),  f32 accumulation on the MXU.
    The 9-layer loop is a static unroll; every matmul has M = batch-block rows.
    """
    x_ref, o_ref = refs[0], refs[-1]
    wb = refs[1:-1]

    h = x_ref[...]                                     # (BB, 1024) f32
    for i, relu in enumerate(relus):
        w_ref, b_ref = wb[2 * i], wb[2 * i + 1]
        h = jnp.dot(h.astype(jnp.bfloat16), w_ref[...],
                    preferred_element_type=jnp.float32) + b_ref[...]
        if relu:
            h = jnp.maximum(h, 0.0)
    o_ref[...] = h                                     # (BB, 128) lane-dense logits block


def vae_classifier_forward(ops, x, *, relus):
    """ops: list of (W_bf16 (K,N), bias_f32 (1,N)) per layer.  x: (B, 4, 16, 16) NCHW."""
    B = x.shape[0]
    feat_in = int(np.prod(x.shape[1:]))                # 1024, torch flatten order c*H*W+h*W+w
    x_flat = x.reshape(B, feat_in)

    b_pad = _round_up(B, 8)
    bb = min(b_pad, _MAX_BLOCK)                        # batch block per grid step
    b_pad = _round_up(b_pad, bb)
    if b_pad != B:
        x_flat = jnp.pad(x_flat, ((0, b_pad - B), (0, 0)))

    flat = [a for layer in ops for a in layer]
    kernel = functools.partial(_vae_kernel, relus=relus)

    out = pl.pallas_call(
        kernel,
        out_shape=jax.ShapeDtypeStruct((b_pad, _OUT_LANES), jnp.float32),
        grid=(b_pad // bb,),
        in_specs=(
            [pl.BlockSpec((bb, feat_in), lambda i: (i, 0))]            # batch block of samples
            + [pl.BlockSpec(a.shape, lambda i: (0, 0)) for a in flat]  # weights: VMEM-resident
        ),
        out_specs=pl.BlockSpec((bb, _OUT_LANES), lambda i: (i, 0)),
        compiler_params=pltpu.CompilerParams(
            dimension_semantics=("parallel",),         # multi-block batches split across TCs
            vmem_limit_bytes=32 * 1024 * 1024),
    )(x_flat, *flat)

    return out[:B, :_NUM_CLASSES]                      # (B, 10)


# ------------------- host-side dense lowering of the torch layers -------------------- #
# Feature layout per sample = torch flatten(1): index = c*H*W + h*W + w.

def _conv_dense(w, b, stride, pad, IH, IW):
    """Conv2d, torch weight (OC,IC,KH,KW) -> dense (IC*IH*IW, OC*OH*OW) matrix + bias."""
    OC, IC, KH, KW = w.shape
    OH = (IH + 2 * pad - KH) // stride + 1
    OW = (IW + 2 * pad - KW) // stride + 1
    W = np.zeros((IC * IH * IW, OC * OH * OW), np.float32)
    for oc in range(OC):
        for oh in range(OH):
            for ow in range(OW):
                o = oc * OH * OW + oh * OW + ow
                for ic in range(IC):
                    for kh in range(KH):
                        ih = oh * stride - pad + kh
                        if not 0 <= ih < IH:
                            continue
                        for kw in range(KW):
                            iw = ow * stride - pad + kw
                            if not 0 <= iw < IW:
                                continue
                            W[ic * IH * IW + ih * IW + iw, o] = w[oc, ic, kh, kw]
    bias = np.repeat(np.asarray(b, np.float32), OH * OW)
    return W, bias


def _convT_dense(w, b, stride, pad, IH, IW):
    """ConvTranspose2d, torch weight (IC,OC,KH,KW) -> dense (IC*IH*IW, OC*OH*OW) + bias."""
    IC, OC, KH, KW = w.shape
    OH = (IH - 1) * stride - 2 * pad + KH
    OW = (IW - 1) * stride - 2 * pad + KW
    W = np.zeros((IC * IH * IW, OC * OH * OW), np.float32)
    for ic in range(IC):
        for ih in range(IH):
            for iw in range(IW):
                r = ic * IH * IW + ih * IW + iw
                for oc in range(OC):
                    for kh in range(KH):
                        oh = ih * stride - pad + kh
                        if not 0 <= oh < OH:
                            continue
                        for kw in range(KW):
                            ow = iw * stride - pad + kw
                            if not 0 <= ow < OW:
                                continue
                            W[r, oc * OH * OW + oh * OW + ow] += w[ic, oc, kh, kw]
    bias = np.repeat(np.asarray(b, np.float32), OH * OW)
    return W, bias


def _prepare_operands(params):
    """Lower all torch-convention parameters into per-layer (W_dense bf16, bias f32)."""
    P = {k: np.asarray(v, np.float32) for k, v in params.items()}
    layers, relus = [], []

    def add(W, bias, relu):
        layers.append((jnp.asarray(W, jnp.bfloat16),
                       jnp.asarray(np.asarray(bias, np.float32).reshape(1, -1), jnp.float32)))
        relus.append(relu)

    # --- encoder convs ---
    add(*_conv_dense(P["ec1_w"], P["ec1_b"], 2, 1, 16, 16), True)   # 4x16x16 -> 8x8x8
    add(*_conv_dense(P["ec2_w"], P["ec2_b"], 2, 1, 8, 8), True)     # 8x8x8   -> 16x4x4

    # --- encoder Linear(256 -> 32), N lane-padded to 128 (exact: zero cols/bias) ---
    W = np.zeros((256, _LAT_PAD), np.float32); W[:, :32] = P["el_w"].T
    b = np.zeros((_LAT_PAD,), np.float32); b[:32] = P["el_b"]
    add(W, b, False)                                                # no ReLU on the latent

    # --- decoder Linear(32 -> 256) + Unflatten(16,4,4) + ReLU, K lane-padded to 128 ---
    W = np.zeros((_LAT_PAD, 256), np.float32); W[:32, :] = P["dl_w"].T
    add(W, P["dl_b"], True)

    # --- decoder conv-transposes ---
    add(*_convT_dense(P["dt1_w"], P["dt1_b"], 2, 1, 4, 4), True)    # 16x4x4 -> 8x8x8
    add(*_convT_dense(P["dt2_w"], P["dt2_b"], 2, 1, 8, 8), True)    # 8x8x8  -> 4x16x16

    # --- classifier (the nn.ReLU right after Flatten is a no-op: dt2 output is ReLU'd) ---
    add(P["c1_w"].T, P["c1_b"], True)                               # 1024 -> 256
    add(P["c2_w"].T, P["c2_b"], True)                               # 256  -> 256
    W = np.zeros((256, _OUT_LANES), np.float32); W[:, :_NUM_CLASSES] = P["c3_w"].T
    b = np.zeros((_OUT_LANES,), np.float32); b[:_NUM_CLASSES] = P["c3_b"]
    add(W, b, False)                                                # 256 -> 10 (padded 128)

    return layers, tuple(relus)


# ----------------------- plain-XLA f32 reference (validation) ----------------------- #

def _im2col(x, kh, kw, stride, pad):
    B, C, H, W = x.shape
    xp = jnp.pad(x, ((0, 0), (0, 0), (pad, pad), (pad, pad)))
    OH = (H + 2 * pad - kh) // stride + 1
    OW = (W + 2 * pad - kw) // stride + 1
    cols = []
    for i in range(kh):
        for j in range(kw):
            cols.append(xp[:, :, i:i + stride * OH:stride, j:j + stride * OW:stride])
    col = jnp.stack(cols, axis=2).reshape(B, C * kh * kw, OH * OW)
    col = col.transpose(0, 2, 1).reshape(B * OH * OW, C * kh * kw)
    return col, OH, OW


def _ref_conv2d(x, w, b, stride, pad, relu):
    B, OC = x.shape[0], w.shape[0]
    col, OH, OW = _im2col(x, w.shape[2], w.shape[3], stride, pad)
    out = col @ w.reshape(OC, -1).T + b
    out = out.reshape(B, OH, OW, OC).transpose(0, 3, 1, 2)
    return jnp.maximum(out, 0.0) if relu else out


def _ref_convT2d(x, w, b, stride, pad, relu):
    B, IC, H, W = x.shape
    KH = w.shape[2]
    HD, WD = (H - 1) * stride + 1, (W - 1) * stride + 1
    xd = jnp.zeros((B, IC, HD, WD), x.dtype).at[:, :, ::stride, ::stride].set(x)
    w_eff = jnp.flip(w, axis=(2, 3)).transpose(1, 0, 2, 3)
    return _ref_conv2d(xd, w_eff, b, 1, KH - 1 - pad, relu)


def _reference_forward(p, x):
    B = x.shape[0]
    h = _ref_conv2d(x, p["ec1_w"], p["ec1_b"], 2, 1, True)
    h = _ref_conv2d(h, p["ec2_w"], p["ec2_b"], 2, 1, True)
    z = h.reshape(B, -1) @ p["el_w"].T + p["el_b"]
    d = jnp.maximum(z @ p["dl_w"].T + p["dl_b"], 0.0).reshape(B, 16, 4, 4)
    d = _ref_convT2d(d, p["dt1_w"], p["dt1_b"], 2, 1, True)
    d = _ref_convT2d(d, p["dt2_w"], p["dt2_b"], 2, 1, True)
    c = d.reshape(B, -1)
    c = jnp.maximum(c @ p["c1_w"].T + p["c1_b"], 0.0)
    c = jnp.maximum(c @ p["c2_w"].T + p["c2_b"], 0.0)
    return c @ p["c3_w"].T + p["c3_b"]


# ---------------------------------- parameter init ---------------------------------- #

def _init_params(key):
    ks = jax.random.split(key, 15)

    def nrm(k, shape, fan_in, gain=2.0 ** 0.5):
        return (gain / float(fan_in) ** 0.5) * jax.random.normal(k, shape, jnp.float32)

    p = {}
    p["ec1_w"] = nrm(ks[0], (8, 4, 3, 3), 4 * 9)
    p["ec1_b"] = 0.05 * jax.random.normal(ks[1], (8,), jnp.float32)
    p["ec2_w"] = nrm(ks[2], (16, 8, 3, 3), 8 * 9)
    p["ec2_b"] = 0.05 * jax.random.normal(ks[3], (16,), jnp.float32)
    p["el_w"] = nrm(ks[4], (32, 256), 256)
    p["el_b"] = 0.05 * jax.random.normal(ks[5], (32,), jnp.float32)
    p["dl_w"] = nrm(ks[6], (256, 32), 32)
    p["dl_b"] = 0.05 * jax.random.normal(ks[7], (256,), jnp.float32)
    p["dt1_w"] = nrm(ks[8], (16, 8, 4, 4), 16 * 16)
    p["dt1_b"] = 0.05 * jax.random.normal(ks[9], (8,), jnp.float32)
    p["dt2_w"] = nrm(ks[10], (8, 4, 4, 4), 8 * 16)
    p["dt2_b"] = 0.05 * jax.random.normal(ks[11], (4,), jnp.float32)
    p["c1_w"] = nrm(ks[12], (256, 1024), 1024)
    p["c1_b"] = jnp.zeros((256,), jnp.float32)
    p["c2_w"] = nrm(ks[13], (256, 256), 256)
    p["c2_b"] = jnp.zeros((256,), jnp.float32)
    p["c3_w"] = nrm(ks[14], (10, 256), 256, gain=1.0)
    p["c3_b"] = jnp.zeros((10,), jnp.float32)
    return p


# -------------------------------------- main -------------------------------------- #

if __name__ == "__main__":
    key = jax.random.PRNGKey(0)
    k_param, k_x = jax.random.split(key)
    params = _init_params(k_param)
    x = jax.random.normal(k_x, (2, 4, 16, 16), jnp.float32)   # NCHW, matches torch input

    ops, relus = _prepare_operands(params)
    fwd = jax.jit(functools.partial(vae_classifier_forward, relus=relus))

    out = jax.block_until_ready(fwd(ops, x))
    assert out.shape == (2, _NUM_CLASSES) and out.dtype == jnp.float32

    # sanity check against a plain-XLA f32 reference of the original module
    # (kernel runs weights/activations in bf16 on the MXU, f32 accumulation)
    ref = jax.block_until_ready(_reference_forward(params, x))
    err = float(jnp.max(jnp.abs(out - ref)) / (jnp.max(jnp.abs(ref)) + 1e-6))
    assert err < 0.075, f"kernel/reference mismatch: normalized max err = {err}"

    print("KERNEL_OK")
</pallas_src>

<mosaic_0001>
module attributes {stable_mosaic.version = 11 : i64} {
  func.func @_vae_kernel(%arg0: i32, %arg1: memref<8x1024xf32, #tpu.memory_space<vmem>>, %arg2: memref<1024x512xbf16, #tpu.memory_space<vmem>>, %arg3: memref<1x512xf32, #tpu.memory_space<vmem>>, %arg4: memref<512x256xbf16, #tpu.memory_space<vmem>>, %arg5: memref<1x256xf32, #tpu.memory_space<vmem>>, %arg6: memref<256x128xbf16, #tpu.memory_space<vmem>>, %arg7: memref<1x128xf32, #tpu.memory_space<vmem>>, %arg8: memref<128x256xbf16, #tpu.memory_space<vmem>>, %arg9: memref<1x256xf32, #tpu.memory_space<vmem>>, %arg10: memref<256x512xbf16, #tpu.memory_space<vmem>>, %arg11: memref<1x512xf32, #tpu.memory_space<vmem>>, %arg12: memref<512x1024xbf16, #tpu.memory_space<vmem>>, %arg13: memref<1x1024xf32, #tpu.memory_space<vmem>>, %arg14: memref<1024x256xbf16, #tpu.memory_space<vmem>>, %arg15: memref<1x256xf32, #tpu.memory_space<vmem>>, %arg16: memref<256x256xbf16, #tpu.memory_space<vmem>>, %arg17: memref<1x256xf32, #tpu.memory_space<vmem>>, %arg18: memref<256x128xbf16, #tpu.memory_space<vmem>>, %arg19: memref<1x128xf32, #tpu.memory_space<vmem>>, %arg20: memref<8x128xf32, #tpu.memory_space<vmem>>) attributes {dimension_semantics = [#tpu.dimension_semantics<parallel>], iteration_bounds = array<i64: 1>, scalar_prefetch = 0 : i64, scratch_operands = 0 : i64, tpu.core_type = #tpu.core_type<tc>, window_params = [{transform_indices = @transform_0, window_bounds = array<i64: 8, 1024>}, {pipeline_mode = #tpu.pipeline_mode<synchronous>, transform_indices = @transform_1, window_bounds = array<i64: 1024, 512>}, {pipeline_mode = #tpu.pipeline_mode<synchronous>, transform_indices = @transform_2, window_bounds = array<i64: 1, 512>}, {pipeline_mode = #tpu.pipeline_mode<synchronous>, transform_indices = @transform_3, window_bounds = array<i64: 512, 256>}, {pipeline_mode = #tpu.pipeline_mode<synchronous>, transform_indices = @transform_4, window_bounds = array<i64: 1, 256>}, {pipeline_mode = #tpu.pipeline_mode<synchronous>, transform_indices = @transform_5, window_bounds = array<i64: 256, 128>}, {pipeline_mode = #tpu.pipeline_mode<synchronous>, transform_indices = @transform_6, window_bounds = array<i64: 1, 128>}, {pipeline_mode = #tpu.pipeline_mode<synchronous>, transform_indices = @transform_7, window_bounds = array<i64: 128, 256>}, {pipeline_mode = #tpu.pipeline_mode<synchronous>, transform_indices = @transform_8, window_bounds = array<i64: 1, 256>}, {pipeline_mode = #tpu.pipeline_mode<synchronous>, transform_indices = @transform_9, window_bounds = array<i64: 256, 512>}, {pipeline_mode = #tpu.pipeline_mode<synchronous>, transform_indices = @transform_10, window_bounds = array<i64: 1, 512>}, {pipeline_mode = #tpu.pipeline_mode<synchronous>, transform_indices = @transform_11, window_bounds = array<i64: 512, 1024>}, {pipeline_mode = #tpu.pipeline_mode<synchronous>, transform_indices = @transform_12, window_bounds = array<i64: 1, 1024>}, {pipeline_mode = #tpu.pipeline_mode<synchronous>, transform_indices = @transform_13, window_bounds = array<i64: 1024, 256>}, {pipeline_mode = #tpu.pipeline_mode<synchronous>, transform_indices = @transform_14, window_bounds = array<i64: 1, 256>}, {pipeline_mode = #tpu.pipeline_mode<synchronous>, transform_indices = @transform_15, window_bounds = array<i64: 256, 256>}, {pipeline_mode = #tpu.pipeline_mode<synchronous>, transform_indices = @transform_16, window_bounds = array<i64: 1, 256>}, {pipeline_mode = #tpu.pipeline_mode<synchronous>, transform_indices = @transform_17, window_bounds = array<i64: 256, 128>}, {pipeline_mode = #tpu.pipeline_mode<synchronous>, transform_indices = @transform_18, window_bounds = array<i64: 1, 128>}, {transform_indices = @transform_19, window_bounds = array<i64: 8, 128>}]} {
    %c0 = arith.constant 0 : index
    %c0_0 = arith.constant 0 : index
    %0 = vector.load %arg1[%c0, %c0_0] : memref<8x1024xf32, #tpu.memory_space<vmem>>, vector<8x1024xf32>
    %1 = arith.truncf %0 : vector<8x1024xf32> to vector<8x1024xbf16>
    %c0_1 = arith.constant 0 : index
    %c0_2 = arith.constant 0 : index
    %2 = vector.load %arg2[%c0_1, %c0_2] : memref<1024x512xbf16, #tpu.memory_space<vmem>>, vector<1024x512xbf16>
    %cst = arith.constant dense<0.000000e+00> : vector<8x512xf32>
    %3 = tpu.matmul %1, %2, %cst {dimension_numbers = #tpu.dot_dimension_numbers<[1], [0], [0], [1], [0, 0, 1, 1], [], []>} : vector<8x1024xbf16>, vector<1024x512xbf16>, vector<8x512xf32> -> vector<8x512xf32>
    %c0_3 = arith.constant 0 : index
    %c0_4 = arith.constant 0 : index
    %4 = vector.load %arg3[%c0_3, %c0_4] : memref<1x512xf32, #tpu.memory_space<vmem>>, vector<1x512xf32>
    %5 = vector.broadcast %4 : vector<1x512xf32> to vector<8x512xf32>
    %6 = arith.addf %3, %5 : vector<8x512xf32>
    %cst_5 = arith.constant 0.000000e+00 : f32
    %7 = vector.broadcast %cst_5 : f32 to vector<8x512xf32>
    %8 = arith.maximumf %6, %7 : vector<8x512xf32>
    %9 = arith.truncf %8 : vector<8x512xf32> to vector<8x512xbf16>
    %c0_6 = arith.constant 0 : index
    %c0_7 = arith.constant 0 : index
    %10 = vector.load %arg4[%c0_6, %c0_7] : memref<512x256xbf16, #tpu.memory_space<vmem>>, vector<512x256xbf16>
    %cst_8 = arith.constant dense<0.000000e+00> : vector<8x256xf32>
    %11 = tpu.matmul %9, %10, %cst_8 {dimension_numbers = #tpu.dot_dimension_numbers<[1], [0], [0], [1], [0, 0, 1, 1], [], []>} : vector<8x512xbf16>, vector<512x256xbf16>, vector<8x256xf32> -> vector<8x256xf32>
    %c0_9 = arith.constant 0 : index
    %c0_10 = arith.constant 0 : index
    %12 = vector.load %arg5[%c0_9, %c0_10] : memref<1x256xf32, #tpu.memory_space<vmem>>, vector<1x256xf32>
    %13 = vector.broadcast %12 : vector<1x256xf32> to vector<8x256xf32>
    %14 = arith.addf %11, %13 : vector<8x256xf32>
    %cst_11 = arith.constant 0.000000e+00 : f32
    %15 = vector.broadcast %cst_11 : f32 to vector<8x256xf32>
    %16 = arith.maximumf %14, %15 : vector<8x256xf32>
    %17 = arith.truncf %16 : vector<8x256xf32> to vector<8x256xbf16>
    %c0_12 = arith.constant 0 : index
    %c0_13 = arith.constant 0 : index
    %18 = vector.load %arg6[%c0_12, %c0_13] : memref<256x128xbf16, #tpu.memory_space<vmem>>, vector<256x128xbf16>
    %cst_14 = arith.constant dense<0.000000e+00> : vector<8x128xf32>
    %19 = tpu.matmul %17, %18, %cst_14 {dimension_numbers = #tpu.dot_dimension_numbers<[1], [0], [0], [1], [0, 0, 1, 1], [], []>} : vector<8x256xbf16>, vector<256x128xbf16>, vector<8x128xf32> -> vector<8x128xf32>
    %c0_15 = arith.constant 0 : index
    %c0_16 = arith.constant 0 : index
    %20 = vector.load %arg7[%c0_15, %c0_16] : memref<1x128xf32, #tpu.memory_space<vmem>>, vector<1x128xf32>
    %21 = vector.broadcast %20 : vector<1x128xf32> to vector<8x128xf32>
    %22 = arith.addf %19, %21 : vector<8x128xf32>
    %23 = arith.truncf %22 : vector<8x128xf32> to vector<8x128xbf16>
    %c0_17 = arith.constant 0 : index
    %c0_18 = arith.constant 0 : index
    %24 = vector.load %arg8[%c0_17, %c0_18] : memref<128x256xbf16, #tpu.memory_space<vmem>>, vector<128x256xbf16>
    %cst_19 = arith.constant dense<0.000000e+00> : vector<8x256xf32>
    %25 = tpu.matmul %23, %24, %cst_19 {dimension_numbers = #tpu.dot_dimension_numbers<[1], [0], [0], [1], [0, 0, 1, 1], [], []>} : vector<8x128xbf16>, vector<128x256xbf16>, vector<8x256xf32> -> vector<8x256xf32>
    %c0_20 = arith.constant 0 : index
    %c0_21 = arith.constant 0 : index
    %26 = vector.load %arg9[%c0_20, %c0_21] : memref<1x256xf32, #tpu.memory_space<vmem>>, vector<1x256xf32>
    %27 = vector.broadcast %26 : vector<1x256xf32> to vector<8x256xf32>
    %28 = arith.addf %25, %27 : vector<8x256xf32>
    %cst_22 = arith.constant 0.000000e+00 : f32
    %29 = vector.broadcast %cst_22 : f32 to vector<8x256xf32>
    %30 = arith.maximumf %28, %29 : vector<8x256xf32>
    %31 = arith.truncf %30 : vector<8x256xf32> to vector<8x256xbf16>
    %c0_23 = arith.constant 0 : index
    %c0_24 = arith.constant 0 : index
    %32 = vector.load %arg10[%c0_23, %c0_24] : memref<256x512xbf16, #tpu.memory_space<vmem>>, vector<256x512xbf16>
    %cst_25 = arith.constant dense<0.000000e+00> : vector<8x512xf32>
    %33 = tpu.matmul %31, %32, %cst_25 {dimension_numbers = #tpu.dot_dimension_numbers<[1], [0], [0], [1], [0, 0, 1, 1], [], []>} : vector<8x256xbf16>, vector<256x512xbf16>, vector<8x512xf32> -> vector<8x512xf32>
    %c0_26 = arith.constant 0 : index
    %c0_27 = arith.constant 0 : index
    %34 = vector.load %arg11[%c0_26, %c0_27] : memref<1x512xf32, #tpu.memory_space<vmem>>, vector<1x512xf32>
    %35 = vector.broadcast %34 : vector<1x512xf32> to vector<8x512xf32>
    %36 = arith.addf %33, %35 : vector<8x512xf32>
    %cst_28 = arith.constant 0.000000e+00 : f32
    %37 = vector.broadcast %cst_28 : f32 to vector<8x512xf32>
    %38 = arith.maximumf %36, %37 : vector<8x512xf32>
    %39 = arith.truncf %38 : vector<8x512xf32> to vector<8x512xbf16>
    %c0_29 = arith.constant 0 : index
    %c0_30 = arith.constant 0 : index
    %40 = vector.load %arg12[%c0_29, %c0_30] : memref<512x1024xbf16, #tpu.memory_space<vmem>>, vector<512x1024xbf16>
    %cst_31 = arith.constant dense<0.000000e+00> : vector<8x1024xf32>
    %41 = tpu.matmul %39, %40, %cst_31 {dimension_numbers = #tpu.dot_dimension_numbers<[1], [0], [0], [1], [0, 0, 1, 1], [], []>} : vector<8x512xbf16>, vector<512x1024xbf16>, vector<8x1024xf32> -> vector<8x1024xf32>
    %c0_32 = arith.constant 0 : index
    %c0_33 = arith.constant 0 : index
    %42 = vector.load %arg13[%c0_32, %c0_33] : memref<1x1024xf32, #tpu.memory_space<vmem>>, vector<1x1024xf32>
    %43 = vector.broadcast %42 : vector<1x1024xf32> to vector<8x1024xf32>
    %44 = arith.addf %41, %43 : vector<8x1024xf32>
    %cst_34 = arith.constant 0.000000e+00 : f32
    %45 = vector.broadcast %cst_34 : f32 to vector<8x1024xf32>
    %46 = arith.maximumf %44, %45 : vector<8x1024xf32>
    %47 = arith.truncf %46 : vector<8x1024xf32> to vector<8x1024xbf16>
    %c0_35 = arith.constant 0 : index
    %c0_36 = arith.constant 0 : index
    %48 = vector.load %arg14[%c0_35, %c0_36] : memref<1024x256xbf16, #tpu.memory_space<vmem>>, vector<1024x256xbf16>
    %cst_37 = arith.constant dense<0.000000e+00> : vector<8x256xf32>
    %49 = tpu.matmul %47, %48, %cst_37 {dimension_numbers = #tpu.dot_dimension_numbers<[1], [0], [0], [1], [0, 0, 1, 1], [], []>} : vector<8x1024xbf16>, vector<1024x256xbf16>, vector<8x256xf32> -> vector<8x256xf32>
    %c0_38 = arith.constant 0 : index
    %c0_39 = arith.constant 0 : index
    %50 = vector.load %arg15[%c0_38, %c0_39] : memref<1x256xf32, #tpu.memory_space<vmem>>, vector<1x256xf32>
    %51 = vector.broadcast %50 : vector<1x256xf32> to vector<8x256xf32>
    %52 = arith.addf %49, %51 : vector<8x256xf32>
    %cst_40 = arith.constant 0.000000e+00 : f32
    %53 = vector.broadcast %cst_40 : f32 to vector<8x256xf32>
    %54 = arith.maximumf %52, %53 : vector<8x256xf32>
    %55 = arith.truncf %54 : vector<8x256xf32> to vector<8x256xbf16>
    %c0_41 = arith.constant 0 : index
    %c0_42 = arith.constant 0 : index
    %56 = vector.load %arg16[%c0_41, %c0_42] : memref<256x256xbf16, #tpu.memory_space<vmem>>, vector<256x256xbf16>
    %cst_43 = arith.constant dense<0.000000e+00> : vector<8x256xf32>
    %57 = tpu.matmul %55, %56, %cst_43 {dimension_numbers = #tpu.dot_dimension_numbers<[1], [0], [0], [1], [0, 0, 1, 1], [], []>} : vector<8x256xbf16>, vector<256x256xbf16>, vector<8x256xf32> -> vector<8x256xf32>
    %c0_44 = arith.constant 0 : index
    %c0_45 = arith.constant 0 : index
    %58 = vector.load %arg17[%c0_44, %c0_45] : memref<1x256xf32, #tpu.memory_space<vmem>>, vector<1x256xf32>
    %59 = vector.broadcast %58 : vector<1x256xf32> to vector<8x256xf32>
    %60 = arith.addf %57, %59 : vector<8x256xf32>
    %cst_46 = arith.constant 0.000000e+00 : f32
    %61 = vector.broadcast %cst_46 : f32 to vector<8x256xf32>
    %62 = arith.maximumf %60, %61 : vector<8x256xf32>
    %63 = arith.truncf %62 : vector<8x256xf32> to vector<8x256xbf16>
    %c0_47 = arith.constant 0 : index
    %c0_48 = arith.constant 0 : index
    %64 = vector.load %arg18[%c0_47, %c0_48] : memref<256x128xbf16, #tpu.memory_space<vmem>>, vector<256x128xbf16>
    %cst_49 = arith.constant dense<0.000000e+00> : vector<8x128xf32>
    %65 = tpu.matmul %63, %64, %cst_49 {dimension_numbers = #tpu.dot_dimension_numbers<[1], [0], [0], [1], [0, 0, 1, 1], [], []>} : vector<8x256xbf16>, vector<256x128xbf16>, vector<8x128xf32> -> vector<8x128xf32>
    %c0_50 = arith.constant 0 : index
    %c0_51 = arith.constant 0 : index
    %66 = vector.load %arg19[%c0_50, %c0_51] : memref<1x128xf32, #tpu.memory_space<vmem>>, vector<1x128xf32>
    %67 = vector.broadcast %66 : vector<1x128xf32> to vector<8x128xf32>
    %68 = arith.addf %65, %67 : vector<8x128xf32>
    %c0_52 = arith.constant 0 : index
    %c0_53 = arith.constant 0 : index
    %69 = vector.load %arg20[%c0_52, %c0_53] : memref<8x128xf32, #tpu.memory_space<vmem>>, vector<8x128xf32>
    tpu.vector_store %arg20[%c0_52, %c0_53], %68 {strides = array<i32>} : memref<8x128xf32, #tpu.memory_space<vmem>>, vector<8x128xf32>,
    return
  }
  func.func @transform_0(%arg0: i32) -> (i32, i32) {
    %c0_i32 = arith.constant 0 : i32
    %c0_i32_0 = arith.constant 0 : i32
    return %arg0, %c0_i32 : i32, i32
  }
  func.func @transform_1(%arg0: i32) -> (i32, i32) {
    %c0_i32 = arith.constant 0 : i32
    %c0_i32_0 = arith.constant 0 : i32
    %c0_i32_1 = arith.constant 0 : i32
    return %c0_i32, %c0_i32_0 : i32, i32
  }
  func.func @transform_2(%arg0: i32) -> (i32, i32) {
    %c0_i32 = arith.constant 0 : i32
    %c0_i32_0 = arith.constant 0 : i32
    %c0_i32_1 = arith.constant 0 : i32
    return %c0_i32, %c0_i32_0 : i32, i32
  }
  func.func @transform_3(%arg0: i32) -> (i32, i32) {
    %c0_i32 = arith.constant 0 : i32
    %c0_i32_0 = arith.constant 0 : i32
    %c0_i32_1 = arith.constant 0 : i32
    return %c0_i32, %c0_i32_0 : i32, i32
  }
  func.func @transform_4(%arg0: i32) -> (i32, i32) {
    %c0_i32 = arith.constant 0 : i32
    %c0_i32_0 = arith.constant 0 : i32
    %c0_i32_1 = arith.constant 0 : i32
    return %c0_i32, %c0_i32_0 : i32, i32
  }
  func.func @transform_5(%arg0: i32) -> (i32, i32) {
    %c0_i32 = arith.constant 0 : i32
    %c0_i32_0 = arith.constant 0 : i32
    %c0_i32_1 = arith.constant 0 : i32
    return %c0_i32, %c0_i32_0 : i32, i32
  }
  func.func @transform_6(%arg0: i32) -> (i32, i32) {
    %c0_i32 = arith.constant 0 : i32
    %c0_i32_0 = arith.constant 0 : i32
    %c0_i32_1 = arith.constant 0 : i32
    return %c0_i32, %c0_i32_0 : i32, i32
  }
  func.func @transform_7(%arg0: i32) -> (i32, i32) {
    %c0_i32 = arith.constant 0 : i32
    %c0_i32_0 = arith.constant 0 : i32
    %c0_i32_1 = arith.constant 0 : i32
    return %c0_i32, %c0_i32_0 : i32, i32
  }
  func.func @transform_8(%arg0: i32) -> (i32, i32) {
    %c0_i32 = arith.constant 0 : i32
    %c0_i32_0 = arith.constant 0 : i32
    %c0_i32_1 = arith.constant 0 : i32
    return %c0_i32, %c0_i32_0 : i32, i32
  }
  func.func @transform_9(%arg0: i32) -> (i32, i32) {
    %c0_i32 = arith.constant 0 : i32
    %c0_i32_0 = arith.constant 0 : i32
    %c0_i32_1 = arith.constant 0 : i32
    return %c0_i32, %c0_i32_0 : i32, i32
  }
  func.func @transform_10(%arg0: i32) -> (i32, i32) {
    %c0_i32 = arith.constant 0 : i32
    %c0_i32_0 = arith.constant 0 : i32
    %c0_i32_1 = arith.constant 0 : i32
    return %c0_i32, %c0_i32_0 : i32, i32
  }
  func.func @transform_11(%arg0: i32) -> (i32, i32) {
    %c0_i32 = arith.constant 0 : i32
    %c0_i32_0 = arith.constant 0 : i32
    %c0_i32_1 = arith.constant 0 : i32
    return %c0_i32, %c0_i32_0 : i32, i32
  }
  func.func @transform_12(%arg0: i32) -> (i32, i32) {
    %c0_i32 = arith.constant 0 : i32
    %c0_i32_0 = arith.constant 0 : i32
    %c0_i32_1 = arith.constant 0 : i32
    return %c0_i32, %c0_i32_0 : i32, i32
  }
  func.func @transform_13(%arg0: i32) -> (i32, i32) {
    %c0_i32 = arith.constant 0 : i32
    %c0_i32_0 = arith.constant 0 : i32
    %c0_i32_1 = arith.constant 0 : i32
    return %c0_i32, %c0_i32_0 : i32, i32
  }
  func.func @transform_14(%arg0: i32) -> (i32, i32) {
    %c0_i32 = arith.constant 0 : i32
    %c0_i32_0 = arith.constant 0 : i32
    %c0_i32_1 = arith.constant 0 : i32
    return %c0_i32, %c0_i32_0 : i32, i32
  }
  func.func @transform_15(%arg0: i32) -> (i32, i32) {
    %c0_i32 = arith.constant 0 : i32
    %c0_i32_0 = arith.constant 0 : i32
    %c0_i32_1 = arith.constant 0 : i32
    return %c0_i32, %c0_i32_0 : i32, i32
  }
  func.func @transform_16(%arg0: i32) -> (i32, i32) {
    %c0_i32 = arith.constant 0 : i32
    %c0_i32_0 = arith.constant 0 : i32
    %c0_i32_1 = arith.constant 0 : i32
    return %c0_i32, %c0_i32_0 : i32, i32
  }
  func.func @transform_17(%arg0: i32) -> (i32, i32) {
    %c0_i32 = arith.constant 0 : i32
    %c0_i32_0 = arith.constant 0 : i32
    %c0_i32_1 = arith.constant 0 : i32
    return %c0_i32, %c0_i32_0 : i32, i32
  }
  func.func @transform_18(%arg0: i32) -> (i32, i32) {
    %c0_i32 = arith.constant 0 : i32
    %c0_i32_0 = arith.constant 0 : i32
    %c0_i32_1 = arith.constant 0 : i32
    return %c0_i32, %c0_i32_0 : i32, i32
  }
  func.func @transform_19(%arg0: i32) -> (i32, i32) {
    %c0_i32 = arith.constant 0 : i32
    %c0_i32_0 = arith.constant 0 : i32
    return %arg0, %c0_i32 : i32, i32
  }
}

</mosaic_0001>

<bundles_post_ra>
// kernel: vae_classifier_forward.1
= control target key start
LH: loop header
LB: loop body
LE: loop exit
PB: predicated region body
PF: predicated region fallthrough
CT: control target
= control target key end

     0   :  { %s9029_s0 = inlined_call_operand.vmem [shape: f32[8,1024], index: 0, kind: input, shape index: {}]   ;;  %s9030_s1 = inlined_call_operand.hbm [shape: bf16[1024,512], index: 1, kind: input, shape index: {}]   ;;  %s9031_s2 = inlined_call_operand.vmem [shape: f32[1,512], index: 2, kind: input, shape index: {}]   ;;  %s9032_s3 = inlined_call_operand.hbm [shape: bf16[512,256], index: 3, kind: input, shape index: {}]   ;;  %s9033_s4 = inlined_call_operand.vmem [shape: f32[1,256], index: 4, kind: input, shape index: {}]   ;;  %s9034_s5 = inlined_call_operand.vmem [shape: bf16[256,128], index: 5, kind: input, shape index: {}]   ;;  %s9035_s6 = inlined_call_operand.vmem [shape: f32[1,128], index: 6, kind: input, shape index: {}]   ;;  %s9036_s7 = inlined_call_operand.hbm [shape: bf16[128,256], index: 7, kind: input, shape index: {}]   ;;  %s9037_s8 = inlined_call_operand.vmem [shape: f32[1,256], index: 8, kind: input, shape index: {}]   ;;  %s9038_s9 = inlined_call_operand.hbm [shape: bf16[256,512], index: 9, kind: input, shape index: {}]   ;;  %s9039_s10 = inlined_call_operand.vmem [shape: f32[1,512], index: 10, kind: input, shape index: {}]   ;;  %s9040_s11 = inlined_call_operand.hbm [shape: bf16[512,1024], index: 11, kind: input, shape index: {}]   ;;  %s9041_s12 = inlined_call_operand.vmem [shape: f32[1,1024], index: 12, kind: input, shape index: {}]   ;;  %s9042_s13 = inlined_call_operand.hbm [shape: bf16[1024,256], index: 13, kind: input, shape index: {}]   ;;  %s9043_s14 = inlined_call_operand.vmem [shape: f32[1,256], index: 14, kind: input, shape index: {}]   ;;  %s9044_s15 = inlined_call_operand.hbm [shape: bf16[256,256], index: 15, kind: input, shape index: {}]   ;;  %s9045_s16 = inlined_call_operand.vmem [shape: f32[1,256], index: 16, kind: input, shape index: {}]   ;;  %s9046_s17 = inlined_call_operand.hbm [shape: bf16[256,128], index: 17, kind: input, shape index: {}]   ;;  %s9047_s18 = inlined_call_operand.vmem [shape: f32[1,128], index: 18, kind: input, shape index: {}]   ;;  %s9048_s19 = inlined_call_operand.vmem [shape: f32[8,128], index: 19, kind: output, shape index: {}]  }
   0x1   :  { %9050 = sst [smem:[#allocation20_spill]] %s9029_s0 }
   0x2   :  { %9051 = sst [smem:[#allocation21_spill]] %s9030_s1 }
   0x3   :  { %9052 = sst [smem:[#allocation22_spill]] %s9031_s2 }
   0x4   :  { %9053 = sst [smem:[#allocation23_spill]] %s9032_s3 }
   0x5   :  { %24 = vsyncpa [#allocation3], 0 }
   0x6   :  { %25 = vsyncpa [#allocation5], 0 }
   0x7   :  { %26 = vsyncpa [#allocation8], 0 }
   0x8   :  { %27 = vsyncpa [#allocation11], 0 }
   0x9   :  { %28 = vsyncpa [#allocation14], 0  ;;  %s8646_s0 = smov [#allocation4]  }
   0xa   :  { %s50_s30 = sshll.u32 %s8646_s0, 4  ;;  %s51_s30 = int_to_ptr.vmem [resolvable:$true] %s50_s30 }
   0xb   :  { %s8484_s20 = scalar_lea.vmem %s51_s30, 8192  ;;  %p8489_p1 = scmp.lt.s32.totalorder %s51_s30, %s51_s30 }
   0xc   :  { %p8485_p0 = scmp.ne.s32.totalorder %s51_s30, %s8484_s20  ;;  %p8490_p2 = scmp.lt.s32.totalorder %s8484_s20, %s8484_s20 }
   0xe   :  { %p8491_p3 = por %p8490_p2, %p8489_p1 }
  0x10   :  { %p8492_p4 = pnand %p8491_p3, %p8485_p0 }
  0x12   :  { %8495 = shalt.err (!%p8492_p4)
}
  0x13   :  { %s8647_s21 = smov 128   ;;  %s8648_s1 = smov 8  }
  0x14   :  { %s9054_s23 = sld [smem:[#allocation23_spill]]  ;;  %s8649_s24 = smov [#allocation7]  }
  0x15   :  { %s82_s25 = sshll.u32 %s8649_s24, 4  ;;  %s8650_s3 = smov [#allocation10]   ;;  %s83_s25 = int_to_ptr.vmem [resolvable:$true] %s82_s25 }
  0x16   :  { %s110_s26 = sshll.u32 %s8650_s3, 4  ;;  %s8504_s27 = scalar_lea.vmem %s83_s25, 8192  ;;  %s111_s26 = int_to_ptr.vmem [resolvable:$true] %s110_s26 }
  0x17   :  { %p8505_p5 = scmp.ne.s32.totalorder %s83_s25, %s8504_s27  ;;  %p8509_p6 = scmp.lt.s32.totalorder %s83_s25, %s83_s25 }
  0x18   :  { %p8510_p7 = scmp.lt.s32.totalorder %s8504_s27, %s8504_s27 }
  0x1a   :  { %56 = dma.hbm_to_vmem [thread:$0]  %s9054_s23, 8192, %s51_s30, [#allocation5], %s8647_s21, %s8647_s21, %s8648_s1  }
  0x1b   :  { %p8511_p8 = por %p8510_p7, %p8509_p6 }
  0x1d   :  { %p8512_p9 = pnand %p8511_p8, %p8505_p5 }
  0x1f   :  { %8515 = shalt.err (!%p8512_p9)
}
  0x20   :  { %s8651_s28 = smov 256   ;;  %s8652_s29 = smov 16  }
  0x21   :  { %88 = dma.hbm_to_vmem [thread:$0]  %s9038_s9, 8192, %s83_s25, [#allocation8], %s8651_s28, %s8651_s28, %s8652_s29  }
  0x22   :  { %s8524_s30 = scalar_lea.vmem %s111_s26, 16384  ;;  %p8529_p11 = scmp.lt.s32.totalorder %s111_s26, %s111_s26 }
  0x23   :  { %p8525_p10 = scmp.ne.s32.totalorder %s111_s26, %s8524_s30  ;;  %p8530_p12 = scmp.lt.s32.totalorder %s8524_s30, %s8524_s30 }
  0x25   :  { %p8531_p13 = por %p8530_p12, %p8529_p11 }
  0x27   :  { %p8532_p0 = pnand %p8531_p13, %p8525_p10 }
  0x29   :  { %8535 = shalt.err (!%p8532_p0)
}
  0x2a   :  { %116 = dma.hbm_to_vmem [thread:$0]  %s9042_s13, 16384, %s111_s26, [#allocation11], %s8647_s21, %s8647_s21, %s8648_s1  }
  0x2b   :  { %s8653_s23 = smov [#allocation2]   ;;  %s8654_s3 = smov [#allocation6]  }
  0x2c   :  { %s36_s24 = sshll.u32 %s8653_s23, 4  ;;  %s68_s9 = sshll.u32 %s8654_s3, 4  ;;  %s37_s24 = int_to_ptr.vmem [resolvable:$true] %s36_s24  ;;  %s69_s9 = int_to_ptr.vmem [resolvable:$true] %s68_s9 }
  0x2d   :  { %s8544_s25 = scalar_lea.vmem %s37_s24, 32768  ;;  %p8549_p2 = scmp.lt.s32.totalorder %s37_s24, %s37_s24 }
  0x2e   :  { %p8545_p1 = scmp.ne.s32.totalorder %s37_s24, %s8544_s25  ;;  %p8550_p3 = scmp.lt.s32.totalorder %s8544_s25, %s8544_s25 }
  0x30   :  { %p8551_p4 = por %p8550_p3, %p8549_p2 }
  0x32   :  { %p8552_p5 = pnand %p8551_p4, %p8545_p1 }
  0x34   :  { %8555 = shalt.err (!%p8552_p5)
}
  0x35   :  { %s9055_s20 = sld [smem:[#allocation21_spill]]  ;;  %s8564_s30 = scalar_lea.vmem %s69_s9, 2048 }
  0x36   :  { %p8565_p6 = scmp.ne.s32.totalorder %s69_s9, %s8564_s30  ;;  %p8569_p7 = scmp.lt.s32.totalorder %s69_s9, %s69_s9 }
  0x37   :  { %p8570_p8 = scmp.lt.s32.totalorder %s8564_s30, %s8564_s30 }
  0x39   :  { %p8571_p9 = por %p8570_p8, %p8569_p7 }
  0x3b   :  { %42 = dma.hbm_to_vmem [thread:$0]  %s9055_s20, 32768, %s37_s24, [#allocation3], %s8651_s28, %s8651_s28, %s8652_s29  }
  0x3c   :  { %p8572_p10 = pnand %p8571_p9, %p8565_p6 }
  0x3e   :  { %8575 = shalt.err (!%p8572_p10)
}
  0x3f   :  { %74 = dma.hbm_to_vmem [thread:$0]  %s9036_s7, 2048, %s69_s9, [#allocation5], %s8647_s21, %s8647_s21, %s8648_s1  }
  0x40   :  { %s8655_s22 = smov [#allocation9]  }
  0x41   :  { %s96_s2 = sshll.u32 %s8655_s22, 4  ;;  %s97_s2 = int_to_ptr.vmem [resolvable:$true] %s96_s2 }
  0x42   :  { %s8584_s23 = scalar_lea.vmem %s97_s2, 32768  ;;  %p8589_p12 = scmp.lt.s32.totalorder %s97_s2, %s97_s2 }
  0x43   :  { %p8585_p11 = scmp.ne.s32.totalorder %s97_s2, %s8584_s23  ;;  %p8590_p13 = scmp.lt.s32.totalorder %s8584_s23, %s8584_s23 }
  0x45   :  { %p8591_p0 = por %p8590_p13, %p8589_p12 }
  0x47   :  { %p8592_p1 = pnand %p8591_p0, %p8585_p11 }
  0x49   :  { %8595 = shalt.err (!%p8592_p1)
}
  0x4a   :  { %s8656_s28 = smov 512   ;;  %s8657_s29 = smov 32  }
  0x4b   :  { %102 = dma.hbm_to_vmem [thread:$0]  %s9040_s11, 32768, %s97_s2, [#allocation8], %s8656_s28, %s8656_s28, %s8657_s29  }
  0x4c   :  { %s8658_s25 = smov [#allocation12]   ;;  %s8659_s0 = smov [#allocation13]  }
  0x4d   :  { %s124_s27 = sshll.u32 %s8658_s25, 4  ;;  %s138_s7 = sshll.u32 %s8659_s0, 4  ;;  %s125_s27 = int_to_ptr.vmem [resolvable:$true] %s124_s27  ;;  %s139_s7 = int_to_ptr.vmem [resolvable:$true] %s138_s7 }
  0x4e   :  { %s8604_s9 = scalar_lea.vmem %s125_s27, 4096  ;;  %p8609_p3 = scmp.lt.s32.totalorder %s125_s27, %s125_s27 }
  0x4f   :  { %p8605_p2 = scmp.ne.s32.totalorder %s125_s27, %s8604_s9  ;;  %p8610_p4 = scmp.lt.s32.totalorder %s8604_s9, %s8604_s9 }
  0x51   :  { %p8611_p5 = por %p8610_p4, %p8609_p3 }
  0x53   :  { %p8612_p6 = pnand %p8611_p5, %p8605_p2 }
  0x55   :  { %8615 = shalt.err (!%p8612_p6)
}
  0x56   :  { %130 = dma.hbm_to_vmem [thread:$0]  %s9044_s15, 4096, %s125_s27, [#allocation11], %s8647_s21, %s8647_s21, %s8648_s1  }
  0x57   :  { %s8624_s11 = scalar_lea.vmem %s139_s7, 2048  ;;  %p8629_p8 = scmp.lt.s32.totalorder %s139_s7, %s139_s7 }
  0x58   :  { %p8625_p7 = scmp.ne.s32.totalorder %s139_s7, %s8624_s11  ;;  %p8630_p9 = scmp.lt.s32.totalorder %s8624_s11, %s8624_s11 }
  0x5a   :  { %p8631_p10 = por %p8630_p9, %p8629_p8 }
  0x5c   :  { %p8632_p11 = pnand %p8631_p10, %p8625_p7 }
  0x5e   :  { %8635 = shalt.err (!%p8632_p11)
}
  0x5f   :  { %s8660_s13 = smov 64   ;;  %s8661_s26 = smov 4  }
  0x60   :  { %144 = dma.hbm_to_vmem [thread:$0]  %s9046_s17, 2048, %s139_s7, [#allocation14], %s8660_s13, %s8660_s13, %s8661_s26  }
  0x61   :  { %8636 = dma.done.wait [#allocation3], 32768  }
  0x62   :  { %8637 = vsyncadd [#allocation3], 4294934528 }
  0x63   :  { %8638 = dma.done.wait [#allocation5], 10240  }
  0x64   :  { %8639 = vsyncadd [#allocation5], 4294957056 }
  0x65   :  { %8640 = dma.done.wait [#allocation8], 40960  }
  0x66   :  { %8641 = vsyncadd [#allocation8], 4294926336 }
  0x67   :  { %8642 = dma.done.wait [#allocation11], 20480  }
  0x68   :  { %8643 = vsyncadd [#allocation11], 4294946816 }
  0x69   :  { %8644 = dma.done.wait [#allocation14], 2048  }
  0x6a   :  { %8645 = vsyncadd [#allocation14], 4294965248  ;;  %v7604_v0 = vld [vmem:[#allocation2 + $0xe4] ss:$16 sps:$4 sm:$0xff]   ;;  %v7608_v2 = vld [vmem:[#allocation2 + $0xe0] ss:$16 sps:$4 sm:$0xff]  }
  0x6b   :  { %v7606_v1 = vld [vmem:[#allocation2 + $0x2e4] ss:$16 sps:$4 sm:$0xff]   ;;  %1746 = vmatprep.subr.bf16.mxu0 %v7604_v0  ;;  %v7609_v3 = vld [vmem:[#allocation2 + $0x2e0] ss:$16 sps:$4 sm:$0xff]   ;;  %s9056_s21 = sld [smem:[#allocation20_spill]] }
  0x6c   :  { %1787 = vmatprep.subr.bf16.mxu1 %v7606_v1  ;;  %v7610_v4 = vld [vmem:[#allocation2 + $0xc4] ss:$16 sps:$4 sm:$0xff]   ;;  %1747 = vmatpush1.bf16.msra.mxu0 %v7608_v2  ;;  %v7614_v6 = vld [vmem:[#allocation2 + $0xc0] ss:$16 sps:$4 sm:$0xff]   ;;  %s9057_s22 = sld [smem:[#allocation22_spill]] }
  0x6d   :  { %1788 = vmatpush1.bf16.msra.mxu1 %v7609_v3  ;;  %v7612_v5 = vld [vmem:[#allocation2 + $0x2c4] ss:$16 sps:$4 sm:$0xff]   ;;  %1748 = vmatprep.subr.bf16.mxu0 %v7610_v4  ;;  %v7615_v7 = vld [vmem:[#allocation2 + $0x2c0] ss:$16 sps:$4 sm:$0xff]  }
  0x6e   :  { %1789 = vmatprep.subr.bf16.mxu1 %v7612_v5  ;;  %v7616_v8 = vld [vmem:[#allocation2 + $0xa4] ss:$16 sps:$4 sm:$0xff]   ;;  %v7620_v10 = vld [vmem:[#allocation2 + $0xa0] ss:$16 sps:$4 sm:$0xff]  }
  0x6f   :  { %v7618_v9 = vld [vmem:[#allocation2 + $0x2a4] ss:$16 sps:$4 sm:$0xff]   ;;  %v7621_v11 = vld [vmem:[#allocation2 + $0x2a0] ss:$16 sps:$4 sm:$0xff]  }
  0x70   :  { %1749 = vmatpush1.bf16.msra.mxu0 %v7614_v6  ;;  %v7622_v12 = vld [vmem:[#allocation2 + $0x84] ss:$16 sps:$4 sm:$0xff]   ;;  %v7626_v14 = vld [vmem:[#allocation2 + $0x80] ss:$16 sps:$4 sm:$0xff]  }
  0x71   :  { %1790 = vmatpush1.bf16.msra.mxu1 %v7615_v7  ;;  %1750 = vmatprep.subr.bf16.mxu0 %v7616_v8  ;;  %v7624_v13 = vld [vmem:[#allocation2 + $0x284] ss:$16 sps:$4 sm:$0xff]   ;;  %v7627_v15 = vld [vmem:[#allocation2 + $0x280] ss:$16 sps:$4 sm:$0xff]   ;;  %v173_v46 = vld [vmem:[%s9056_s21 + $0x8] sm:$0xff] }
  0x72   :  { %1791 = vmatprep.subr.bf16.mxu1 %v7618_v9  ;;  %v7628_v16 = vld [vmem:[#allocation2 + $0x64] ss:$16 sps:$4 sm:$0xff]   ;;  %v7632_v18 = vld [vmem:[#allocation2 + $0x60] ss:$16 sps:$4 sm:$0xff]   ;;  %v8802_v49 = vpack.c.bf16 %v173_v46, %v173_v46  ;;  %v175_v50 = vld [vmem:[%s9056_s21 + $0x18] sm:$0xff] }
  0x73   :  { %v7630_v17 = vld [vmem:[#allocation2 + $0x264] ss:$16 sps:$4 sm:$0xff]   ;;  %v7633_v19 = vld [vmem:[#allocation2 + $0x260] ss:$16 sps:$4 sm:$0xff]   ;;  %v8807_v52 = vpack.c.bf16 %v175_v50, %v175_v50 }
  0x74   :  { %1751 = vmatpush1.bf16.msra.mxu0 %v7620_v10  ;;  %v7634_v20 = vld [vmem:[#allocation2 + $0x44] ss:$16 sps:$4 sm:$0xff]   ;;  %v7638_v22 = vld [vmem:[#allocation2 + $0x40] ss:$16 sps:$4 sm:$0xff]   ;;  %1778 = vmatprep.mubr.bf16.mxu0 %v8802_v49 }
  0x75   :  { %1792 = vmatpush1.bf16.msra.mxu1 %v7621_v11  ;;  %1752 = vmatprep.subr.bf16.mxu0 %v7622_v12  ;;  %v7636_v21 = vld [vmem:[#allocation2 + $0x244] ss:$16 sps:$4 sm:$0xff]   ;;  %v7639_v23 = vld [vmem:[#allocation2 + $0x240] ss:$16 sps:$4 sm:$0xff]  }
  0x76   :  { %1793 = vmatprep.subr.bf16.mxu1 %v7624_v13  ;;  %v7640_v24 = vld [vmem:[#allocation2 + $0x24] ss:$16 sps:$4 sm:$0xff]   ;;  %v7644_v26 = vld [vmem:[#allocation2 + $0x20] ss:$16 sps:$4 sm:$0xff]   ;;  %1819 = vmatprep.mubr.bf16.mxu1 %v8807_v52 }
  0x77   :  { %v7642_v25 = vld [vmem:[#allocation2 + $0x224] ss:$16 sps:$4 sm:$0xff]   ;;  %v7645_v27 = vld [vmem:[#allocation2 + $0x220] ss:$16 sps:$4 sm:$0xff]  }
  0x78   :  { %1753 = vmatpush1.bf16.msra.mxu0 %v7626_v14  ;;  %v7646_v28 = vld [vmem:[#allocation2 + $0x4] ss:$16 sps:$4 sm:$0xff]   ;;  %v7650_v30 = vld [vmem:[#allocation2] ss:$16 sps:$4 sm:$0xff]  }
  0x79   :  { %1794 = vmatpush1.bf16.msra.mxu1 %v7627_v15  ;;  %1754 = vmatprep.subr.bf16.mxu0 %v7628_v16  ;;  %v7648_v29 = vld [vmem:[#allocation2 + $0x204] ss:$16 sps:$4 sm:$0xff]   ;;  %v7651_v31 = vld [vmem:[#allocation2 + $0x200] ss:$16 sps:$4 sm:$0xff]  }
  0x7a   :  { %1795 = vmatprep.subr.bf16.mxu1 %v7630_v17  ;;  %v7652_v32 = vld [vmem:[#allocation2 + $0x1e4] ss:$16 sps:$4 sm:$0xff]   ;;  %v7656_v34 = vld [vmem:[#allocation2 + $0x1e0] ss:$16 sps:$4 sm:$0xff]  }
  0x7b   :  { %v7654_v33 = vld [vmem:[#allocation2 + $0x3e4] ss:$16 sps:$4 sm:$0xff]   ;;  %v7657_v35 = vld [vmem:[#allocation2 + $0x3e0] ss:$16 sps:$4 sm:$0xff]  }
  0x7c   :  { %1755 = vmatpush1.bf16.msra.mxu0 %v7632_v18  ;;  %v7658_v36 = vld [vmem:[#allocation2 + $0x1c4] ss:$16 sps:$4 sm:$0xff]   ;;  %v7662_v38 = vld [vmem:[#allocation2 + $0x1c0] ss:$16 sps:$4 sm:$0xff]  }
  0x7d   :  { %1796 = vmatpush1.bf16.msra.mxu1 %v7633_v19  ;;  %1756 = vmatprep.subr.bf16.mxu0 %v7634_v20  ;;  %v7660_v37 = vld [vmem:[#allocation2 + $0x3c4] ss:$16 sps:$4 sm:$0xff]   ;;  %v7663_v39 = vld [vmem:[#allocation2 + $0x3c0] ss:$16 sps:$4 sm:$0xff]  }
  0x7e   :  { %1797 = vmatprep.subr.bf16.mxu1 %v7636_v21  ;;  %v7664_v40 = vld [vmem:[#allocation2 + $0x1a4] ss:$16 sps:$4 sm:$0xff]   ;;  %v7668_v42 = vld [vmem:[#allocation2 + $0x1a0] ss:$16 sps:$4 sm:$0xff]  }
  0x7f   :  { %v7666_v41 = vld [vmem:[#allocation2 + $0x3a4] ss:$16 sps:$4 sm:$0xff]   ;;  %v7669_v43 = vld [vmem:[#allocation2 + $0x3a0] ss:$16 sps:$4 sm:$0xff]  }
  0x80   :  { %1757 = vmatpush1.bf16.msra.mxu0 %v7638_v22  ;;  %v7670_v44 = vld [vmem:[#allocation2 + $0x184] ss:$16 sps:$4 sm:$0xff]   ;;  %v7674_v47 = vld [vmem:[#allocation2 + $0x180] ss:$16 sps:$4 sm:$0xff]  }
  0x81   :  { %1798 = vmatpush1.bf16.msra.mxu1 %v7639_v23  ;;  %1758 = vmatprep.subr.bf16.mxu0 %v7640_v24  ;;  %v7672_v45 = vld [vmem:[#allocation2 + $0x384] ss:$16 sps:$4 sm:$0xff]   ;;  %v7675_v48 = vld [vmem:[#allocation2 + $0x380] ss:$16 sps:$4 sm:$0xff]  }
  0x82   :  { %1799 = vmatprep.subr.bf16.mxu1 %v7642_v25  ;;  %v7676_v51 = vld [vmem:[#allocation2 + $0x164] ss:$16 sps:$4 sm:$0xff]   ;;  %v7680_v54 = vld [vmem:[#allocation2 + $0x160] ss:$16 sps:$4 sm:$0xff]  }
  0x83   :  { %v7678_v53 = vld [vmem:[#allocation2 + $0x364] ss:$16 sps:$4 sm:$0xff]   ;;  %v7681_v55 = vld [vmem:[#allocation2 + $0x360] ss:$16 sps:$4 sm:$0xff]  }
  0x84   :  { %1759 = vmatpush1.bf16.msra.mxu0 %v7644_v26  ;;  %v7682_v56 = vld [vmem:[#allocation2 + $0x144] ss:$16 sps:$4 sm:$0xff]   ;;  %v7686_v58 = vld [vmem:[#allocation2 + $0x140] ss:$16 sps:$4 sm:$0xff]  }
  0x85   :  { %1800 = vmatpush1.bf16.msra.mxu1 %v7645_v27  ;;  %1760 = vmatprep.subr.bf16.mxu0 %v7646_v28  ;;  %v7684_v57 = vld [vmem:[#allocation2 + $0x344] ss:$16 sps:$4 sm:$0xff]   ;;  %v7687_v59 = vld [vmem:[#allocation2 + $0x340] ss:$16 sps:$4 sm:$0xff]  }
  0x86   :  { %1801 = vmatprep.subr.bf16.mxu1 %v7648_v29  ;;  %v7688_v60 = vld [vmem:[#allocation2 + $0x124] ss:$16 sps:$4 sm:$0xff]   ;;  %v7692_v62 = vld [vmem:[#allocation2 + $0x120] ss:$16 sps:$4 sm:$0xff]  }
  0x87   :  { %v7690_v61 = vld [vmem:[#allocation2 + $0x324] ss:$16 sps:$4 sm:$0xff]   ;;  %v7693_v63 = vld [vmem:[#allocation2 + $0x320] ss:$16 sps:$4 sm:$0xff]  }
  0x88   :  { %1761 = vmatpush1.bf16.msra.mxu0 %v7650_v30  ;;  %v7694_v0 = vld [vmem:[#allocation2 + $0x104] ss:$16 sps:$4 sm:$0xff]   ;;  %v7698_v2 = vld [vmem:[#allocation2 + $0x100] ss:$16 sps:$4 sm:$0xff]  }
  0x89   :  { %1802 = vmatpush1.bf16.msra.mxu1 %v7651_v31  ;;  %1762 = vmatprep.subr.bf16.mxu0 %v7652_v32  ;;  %v7696_v1 = vld [vmem:[#allocation2 + $0x304] ss:$16 sps:$4 sm:$0xff]   ;;  %v7699_v3 = vld [vmem:[#allocation2 + $0x300] ss:$16 sps:$4 sm:$0xff]  }
  0x8a   :  { %1803 = vmatprep.subr.bf16.mxu1 %v7654_v33  ;;  %v172_v4 = vld [vmem:[%s9056_s21] sm:$0xff]  ;;  %v174_v5 = vld [vmem:[%s9056_s21 + $0x10] sm:$0xff] }
  0x8b   :  { %v7702_v6 = vld [vmem:[#allocation2 + $0x4e4] ss:$16 sps:$4 sm:$0xff]   ;;  %v8817_v8 = vpack.c.bf16 %v172_v4, %v172_v4  ;;  %v8819_v9 = vpack.c.bf16 %v174_v5, %v174_v5  ;;  %v7700_v10 = vld [vmem:[#allocation2 + $0x4e0] ss:$16 sps:$4 sm:$0xff]  }
  0x8c   :  { %1763 = vmatpush2.bf16.msra.mxu0 %v7656_v34  ;;  %v7705_v7 = vld [vmem:[#allocation2 + $0x6e4] ss:$16 sps:$4 sm:$0xff]   ;;  %v7703_v11 = vld [vmem:[#allocation2 + $0x6e0] ss:$16 sps:$4 sm:$0xff]   ;;  %v177_v34 = vld [vmem:[%s9056_s21 + $0x28] sm:$0xff] }
  0x8d   :  { %1804 = vmatpush2.bf16.msra.mxu1 %v7657_v35  ;;  %1764 = vmatprep.subr.bf16.mxu0 %v7658_v36  ;;  %v7708_v12 = vld [vmem:[#allocation2 + $0x4c4] ss:$16 sps:$4 sm:$0xff]   ;;  %v7706_v14 = vld [vmem:[#allocation2 + $0x4c0] ss:$16 sps:$4 sm:$0xff]  }
  0x8e   :  { %1805 = vmatprep.subr.bf16.mxu1 %v7660_v37  ;;  %v7711_v13 = vld [vmem:[#allocation2 + $0x6c4] ss:$16 sps:$4 sm:$0xff]   ;;  %v7709_v15 = vld [vmem:[#allocation2 + $0x6c0] ss:$16 sps:$4 sm:$0xff]   ;;  %v8826_v37 = vpack.c.bf16 %v177_v34, %v177_v34  ;;  %v7814_v34 = vld [vmem:[#allocation2 + $0x88] ss:$16 sps:$4 sm:$0xff]  }
  0x8f   :  { %v7714_v16 = vld [vmem:[#allocation2 + $0x4a4] ss:$16 sps:$4 sm:$0xff]   ;;  %v7712_v18 = vld [vmem:[#allocation2 + $0x4a0] ss:$16 sps:$4 sm:$0xff]  }
  0x90   :  { %1765 = vmatpush2.bf16.msra.mxu0 %v7662_v38  ;;  %v7717_v17 = vld [vmem:[#allocation2 + $0x6a4] ss:$16 sps:$4 sm:$0xff]   ;;  %v7715_v19 = vld [vmem:[#allocation2 + $0x6a0] ss:$16 sps:$4 sm:$0xff]   ;;  %v179_v38 = vld [vmem:[%s9056_s21 + $0x38] sm:$0xff] }
  0x91   :  { %1806 = vmatpush2.bf16.msra.mxu1 %v7663_v39  ;;  %1766 = vmatprep.subr.bf16.mxu0 %v7664_v40  ;;  %v7720_v20 = vld [vmem:[#allocation2 + $0x484] ss:$16 sps:$4 sm:$0xff]   ;;  %v7718_v22 = vld [vmem:[#allocation2 + $0x480] ss:$16 sps:$4 sm:$0xff]   ;;  %v8831_v40 = vpack.c.bf16 %v179_v38, %v179_v38  ;;  %v7825_v38 = vld [vmem:[#allocation2 + $0x26c] ss:$16 sps:$4 sm:$0xff]  }
  0x92   :  { %1807 = vmatprep.subr.bf16.mxu1 %v7666_v41  ;;  %v7723_v21 = vld [vmem:[#allocation2 + $0x684] ss:$16 sps:$4 sm:$0xff]   ;;  %v7721_v23 = vld [vmem:[#allocation2 + $0x680] ss:$16 sps:$4 sm:$0xff]  }
  0x93   :  { %v7726_v24 = vld [vmem:[#allocation2 + $0x464] ss:$16 sps:$4 sm:$0xff]   ;;  %v7724_v26 = vld [vmem:[#allocation2 + $0x460] ss:$16 sps:$4 sm:$0xff]  }
  0x94   :  { %1767 = vmatpush2.bf16.msra.mxu0 %v7668_v42  ;;  %v7729_v25 = vld [vmem:[#allocation2 + $0x664] ss:$16 sps:$4 sm:$0xff]   ;;  %v7727_v27 = vld [vmem:[#allocation2 + $0x660] ss:$16 sps:$4 sm:$0xff]  }
  0x95   :  { %1808 = vmatpush2.bf16.msra.mxu1 %v7669_v43  ;;  %1768 = vmatprep.subr.bf16.mxu0 %v7670_v44  ;;  %v7732_v28 = vld [vmem:[#allocation2 + $0x444] ss:$16 sps:$4 sm:$0xff]   ;;  %v7730_v30 = vld [vmem:[#allocation2 + $0x440] ss:$16 sps:$4 sm:$0xff]  }
  0x96   :  { %1809 = vmatprep.subr.bf16.mxu1 %v7672_v45  ;;  %v7735_v29 = vld [vmem:[#allocation2 + $0x644] ss:$16 sps:$4 sm:$0xff]   ;;  %v7733_v31 = vld [vmem:[#allocation2 + $0x640] ss:$16 sps:$4 sm:$0xff]  }
  0x97   :  { %v7738_v32 = vld [vmem:[#allocation2 + $0x424] ss:$16 sps:$4 sm:$0xff]   ;;  %v7736_v35 = vld [vmem:[#allocation2 + $0x420] ss:$16 sps:$4 sm:$0xff]  }
  0x98   :  { %1769 = vmatpush2.bf16.msra.mxu0 %v7674_v47  ;;  %v7741_v33 = vld [vmem:[#allocation2 + $0x624] ss:$16 sps:$4 sm:$0xff]   ;;  %v7739_v36 = vld [vmem:[#allocation2 + $0x620] ss:$16 sps:$4 sm:$0xff]  }
  0x99   :  { %1810 = vmatpush2.bf16.msra.mxu1 %v7675_v48  ;;  %1770 = vmatprep.subr.bf16.mxu0 %v7676_v51  ;;  %v7744_v39 = vld [vmem:[#allocation2 + $0x404] ss:$16 sps:$4 sm:$0xff]   ;;  %v7742_v42 = vld [vmem:[#allocation2 + $0x400] ss:$16 sps:$4 sm:$0xff]  }
  0x9a   :  { %1811 = vmatprep.subr.bf16.mxu1 %v7678_v53  ;;  %v7747_v41 = vld [vmem:[#allocation2 + $0x604] ss:$16 sps:$4 sm:$0xff]   ;;  %v7745_v43 = vld [vmem:[#allocation2 + $0x600] ss:$16 sps:$4 sm:$0xff]  }
  0x9b   :  { %v7750_v44 = vld [vmem:[#allocation2 + $0x5e4] ss:$16 sps:$4 sm:$0xff]   ;;  %v7748_v46 = vld [vmem:[#allocation2 + $0x5e0] ss:$16 sps:$4 sm:$0xff]  }
  0x9c   :  { %1771 = vmatpush2.bf16.msra.mxu0 %v7680_v54  ;;  %v7753_v45 = vld [vmem:[#allocation2 + $0x7e4] ss:$16 sps:$4 sm:$0xff]   ;;  %v7751_v47 = vld [vmem:[#allocation2 + $0x7e0] ss:$16 sps:$4 sm:$0xff]  }
  0x9d   :  { %1812 = vmatpush2.bf16.msra.mxu1 %v7681_v55  ;;  %1772 = vmatprep.subr.bf16.mxu0 %v7682_v56  ;;  %v7756_v48 = vld [vmem:[#allocation2 + $0x5c4] ss:$16 sps:$4 sm:$0xff]   ;;  %v7754_v51 = vld [vmem:[#allocation2 + $0x5c0] ss:$16 sps:$4 sm:$0xff]  }
  0x9e   :  { %1813 = vmatprep.subr.bf16.mxu1 %v7684_v57  ;;  %v7759_v50 = vld [vmem:[#allocation2 + $0x7c4] ss:$16 sps:$4 sm:$0xff]   ;;  %v7757_v53 = vld [vmem:[#allocation2 + $0x7c0] ss:$16 sps:$4 sm:$0xff]  }
  0x9f   :  { %v7762_v54 = vld [vmem:[#allocation2 + $0x5a4] ss:$16 sps:$4 sm:$0xff]   ;;  %v7760_v56 = vld [vmem:[#allocation2 + $0x5a0] ss:$16 sps:$4 sm:$0xff]  }
  0xa0   :  { %1773 = vmatpush2.bf16.msra.mxu0 %v7686_v58  ;;  %v7765_v55 = vld [vmem:[#allocation2 + $0x7a4] ss:$16 sps:$4 sm:$0xff]   ;;  %v7763_v57 = vld [vmem:[#allocation2 + $0x7a0] ss:$16 sps:$4 sm:$0xff]  }
  0xa1   :  { %1814 = vmatpush2.bf16.msra.mxu1 %v7687_v59  ;;  %1774 = vmatprep.subr.bf16.mxu0 %v7688_v60  ;;  %v7768_v58 = vld [vmem:[#allocation2 + $0x584] ss:$16 sps:$4 sm:$0xff]   ;;  %v7766_v60 = vld [vmem:[#allocation2 + $0x580] ss:$16 sps:$4 sm:$0xff]  }
  0xa2   :  { %1815 = vmatprep.subr.bf16.mxu1 %v7690_v61  ;;  %v7771_v59 = vld [vmem:[#allocation2 + $0x784] ss:$16 sps:$4 sm:$0xff]   ;;  %v7769_v61 = vld [vmem:[#allocation2 + $0x780] ss:$16 sps:$4 sm:$0xff]  }
  0xa3   :  { %v7778_v4 = vld [vmem:[#allocation2 + $0x540] ss:$16 sps:$4 sm:$0xff]  }
  0xa4   :  { %1775 = vmatpush2.bf16.msra.mxu0 %v7692_v62  ;;  %v7774_v62 = vld [vmem:[#allocation2 + $0x564] ss:$16 sps:$4 sm:$0xff]   ;;  %v7781_v5 = vld [vmem:[#allocation2 + $0x740] ss:$16 sps:$4 sm:$0xff]  }
  0xa5   :  { %1816 = vmatpush2.bf16.msra.mxu1 %v7693_v63  ;;  %1776 = vmatprep.subr.bf16.mxu0 %v7694_v0  ;;  %v7777_v63 = vld [vmem:[#allocation2 + $0x764] ss:$16 sps:$4 sm:$0xff]   ;;  %v7772_v0 = vld [vmem:[#allocation2 + $0x560] ss:$16 sps:$4 sm:$0xff]  }
  0xa6   :  { %1817 = vmatprep.subr.bf16.mxu1 %v7696_v1  ;;  %v7775_v1 = vld [vmem:[#allocation2 + $0x760] ss:$16 sps:$4 sm:$0xff]  }
  0xa8   :  { %1777 = vmatpush2.bf16.msra.mxu0 %v7698_v2  ;;  %v7780_v2 = vld [vmem:[#allocation2 + $0x544] ss:$16 sps:$4 sm:$0xff]  }
  0xa9   :  { %1818 = vmatpush2.bf16.msra.mxu1 %v7699_v3  ;;  %1828 = vmatprep.subr.bf16.mxu0 %v7702_v6  ;;  %v7783_v3 = vld [vmem:[#allocation2 + $0x744] ss:$16 sps:$4 sm:$0xff]  }
  0xaa   :  { %1869 = vmatprep.subr.bf16.mxu1 %v7705_v7  ;;  %v7786_v6 = vld [vmem:[#allocation2 + $0x524] ss:$16 sps:$4 sm:$0xff]  }
  0xab   :  { %1779 = vmatmul.mubr.bf16.vlgmr.msra.gmra.mxu0 %v8817_v8  ;;  %v7789_v7 = vld [vmem:[#allocation2 + $0x724] ss:$16 sps:$4 sm:$0xff]  }
  0xac   :  { %1820 = vmatmul.mubr.bf16.vlgmr.msra.gmra.mxu1 %v8819_v9  ;;  %1829 = vmatpush1.bf16.msra.mxu0 %v7700_v10  ;;  %v7784_v10 = vld [vmem:[#allocation2 + $0x520] ss:$16 sps:$4 sm:$0xff]  }
  0xad   :  { %1870 = vmatpush1.bf16.msra.mxu1 %v7703_v11  ;;  %1830 = vmatprep.subr.bf16.mxu0 %v7708_v12  ;;  %v7787_v11 = vld [vmem:[#allocation2 + $0x720] ss:$16 sps:$4 sm:$0xff]   ;;  %v7792_v12 = vld [vmem:[#allocation2 + $0x504] ss:$16 sps:$4 sm:$0xff]  }
  0xae   :  { %1871 = vmatprep.subr.bf16.mxu1 %v7711_v13  ;;  %1860 = vmatprep.mubr.bf16.mxu0 %v8826_v37  ;;  %v7795_v13 = vld [vmem:[#allocation2 + $0x704] ss:$16 sps:$4 sm:$0xff]  }
  0xaf   :  { %1901 = vmatprep.mubr.bf16.mxu1 %v8831_v40 }
  0xb0   :  { %1831 = vmatpush1.bf16.msra.mxu0 %v7706_v14  ;;  %v7790_v14 = vld [vmem:[#allocation2 + $0x500] ss:$16 sps:$4 sm:$0xff]  }
  0xb1   :  { %1872 = vmatpush1.bf16.msra.mxu1 %v7709_v15  ;;  %1832 = vmatprep.subr.bf16.mxu0 %v7714_v16  ;;  %v7793_v15 = vld [vmem:[#allocation2 + $0x700] ss:$16 sps:$4 sm:$0xff]  }
  0xb2   :  { %1873 = vmatprep.subr.bf16.mxu1 %v7717_v17  ;;  %v176_v16 = vld [vmem:[%s9056_s21 + $0x20] sm:$0xff]  ;;  %v178_v17 = vld [vmem:[%s9056_s21 + $0x30] sm:$0xff] }
  0xb4   :  { %1833 = vmatpush1.bf16.msra.mxu0 %v7712_v18  ;;  %v7798_v18 = vld [vmem:[#allocation2 + $0xec] ss:$16 sps:$4 sm:$0xff]  }
  0xb5   :  { %1874 = vmatpush1.bf16.msra.mxu1 %v7715_v19  ;;  %1834 = vmatprep.subr.bf16.mxu0 %v7720_v20  ;;  %v7801_v19 = vld [vmem:[#allocation2 + $0x2ec] ss:$16 sps:$4 sm:$0xff]   ;;  %v8841_v20 = vpack.c.bf16 %v176_v16, %v176_v16 }
  0xb6   :  { %1875 = vmatprep.subr.bf16.mxu1 %v7723_v21  ;;  %v8843_v21 = vpack.c.bf16 %v178_v17, %v178_v17  ;;  %v7882_v16 = vld [vmem:[#allocation2 + $0x12c] ss:$16 sps:$4 sm:$0xff]  }
  0xb7   :  { %v7885_v17 = vld [vmem:[#allocation2 + $0x32c] ss:$16 sps:$4 sm:$0xff]  }
  0xb8   :  { %1835 = vmatpush1.bf16.msra.mxu0 %v7718_v22  ;;  %v7796_v22 = vld [vmem:[#allocation2 + $0xe8] ss:$16 sps:$4 sm:$0xff]  }
  0xb9   :  { %1876 = vmatpush1.bf16.msra.mxu1 %v7721_v23  ;;  %1836 = vmatprep.subr.bf16.mxu0 %v7726_v24  ;;  %v7799_v23 = vld [vmem:[#allocation2 + $0x2e8] ss:$16 sps:$4 sm:$0xff]   ;;  %v7804_v24 = vld [vmem:[#allocation2 + $0xcc] ss:$16 sps:$4 sm:$0xff]  }
  0xba   :  { %1877 = vmatprep.subr.bf16.mxu1 %v7729_v25  ;;  %v7807_v25 = vld [vmem:[#allocation2 + $0x2cc] ss:$16 sps:$4 sm:$0xff]  }
  0xbc   :  { %1837 = vmatpush1.bf16.msra.mxu0 %v7724_v26  ;;  %v7802_v26 = vld [vmem:[#allocation2 + $0xc8] ss:$16 sps:$4 sm:$0xff]  }
  0xbd   :  { %1878 = vmatpush1.bf16.msra.mxu1 %v7727_v27  ;;  %1838 = vmatprep.subr.bf16.mxu0 %v7732_v28  ;;  %v7805_v27 = vld [vmem:[#allocation2 + $0x2c8] ss:$16 sps:$4 sm:$0xff]   ;;  %v7810_v28 = vld [vmem:[#allocation2 + $0xac] ss:$16 sps:$4 sm:$0xff]  }
  0xbe   :  { %1879 = vmatprep.subr.bf16.mxu1 %v7735_v29  ;;  %v7813_v29 = vld [vmem:[#allocation2 + $0x2ac] ss:$16 sps:$4 sm:$0xff]  }
  0xc0   :  { %1839 = vmatpush1.bf16.msra.mxu0 %v7730_v30  ;;  %v7808_v30 = vld [vmem:[#allocation2 + $0xa8] ss:$16 sps:$4 sm:$0xff]  }
  0xc1   :  { %1880 = vmatpush1.bf16.msra.mxu1 %v7733_v31  ;;  %1840 = vmatprep.subr.bf16.mxu0 %v7738_v32  ;;  %v7811_v31 = vld [vmem:[#allocation2 + $0x2a8] ss:$16 sps:$4 sm:$0xff]   ;;  %v7816_v32 = vld [vmem:[#allocation2 + $0x8c] ss:$16 sps:$4 sm:$0xff]  }
  0xc2   :  { %1881 = vmatprep.subr.bf16.mxu1 %v7741_v33  ;;  %v7819_v33 = vld [vmem:[#allocation2 + $0x28c] ss:$16 sps:$4 sm:$0xff]  }
  0xc4   :  { %1841 = vmatpush1.bf16.msra.mxu0 %v7736_v35  ;;  %v7817_v35 = vld [vmem:[#allocation2 + $0x288] ss:$16 sps:$4 sm:$0xff]  }
  0xc5   :  { %1882 = vmatpush1.bf16.msra.mxu1 %v7739_v36  ;;  %1842 = vmatprep.subr.bf16.mxu0 %v7744_v39  ;;  %v7822_v36 = vld [vmem:[#allocation2 + $0x6c] ss:$16 sps:$4 sm:$0xff]   ;;  %v7820_v39 = vld [vmem:[#allocation2 + $0x68] ss:$16 sps:$4 sm:$0xff]  }
  0xc6   :  { %1883 = vmatprep.subr.bf16.mxu1 %v7747_v41  ;;  %v7831_v41 = vld [vmem:[#allocation2 + $0x24c] ss:$16 sps:$4 sm:$0xff]  }
  0xc8   :  { %1843 = vmatpush1.bf16.msra.mxu0 %v7742_v42  ;;  %v7826_v42 = vld [vmem:[#allocation2 + $0x48] ss:$16 sps:$4 sm:$0xff]  }
  0xc9   :  { %1884 = vmatpush1.bf16.msra.mxu1 %v7745_v43  ;;  %1844 = vmatprep.subr.bf16.mxu0 %v7750_v44  ;;  %v7829_v43 = vld [vmem:[#allocation2 + $0x248] ss:$16 sps:$4 sm:$0xff]   ;;  %v7834_v44 = vld [vmem:[#allocation2 + $0x2c] ss:$16 sps:$4 sm:$0xff]  }
  0xca   :  { %1885 = vmatprep.subr.bf16.mxu1 %v7753_v45  ;;  %v7837_v45 = vld [vmem:[#allocation2 + $0x22c] ss:$16 sps:$4 sm:$0xff]  }
  0xcc   :  { %1845 = vmatpush2.bf16.msra.mxu0 %v7748_v46  ;;  %v7832_v46 = vld [vmem:[#allocation2 + $0x28] ss:$16 sps:$4 sm:$0xff]  }
  0xcd   :  { %1886 = vmatpush2.bf16.msra.mxu1 %v7751_v47  ;;  %1846 = vmatprep.subr.bf16.mxu0 %v7756_v48  ;;  %v7835_v47 = vld [vmem:[#allocation2 + $0x228] ss:$16 sps:$4 sm:$0xff]   ;;  %v7840_v48 = vld [vmem:[#allocation2 + $0xc] ss:$16 sps:$4 sm:$0xff]  }
  0xce   :  { %1887 = vmatprep.subr.bf16.mxu1 %v7759_v50  ;;  %v7843_v50 = vld [vmem:[#allocation2 + $0x20c] ss:$16 sps:$4 sm:$0xff]  }
  0xd0   :  { %1847 = vmatpush2.bf16.msra.mxu0 %v7754_v51  ;;  %v7838_v51 = vld [vmem:[#allocation2 + $0x8] ss:$16 sps:$4 sm:$0xff]  }
  0xd1   :  { %1888 = vmatpush2.bf16.msra.mxu1 %v7757_v53  ;;  %1848 = vmatprep.subr.bf16.mxu0 %v7762_v54  ;;  %v7841_v53 = vld [vmem:[#allocation2 + $0x208] ss:$16 sps:$4 sm:$0xff]   ;;  %v7846_v54 = vld [vmem:[#allocation2 + $0x1ec] ss:$16 sps:$4 sm:$0xff]  }
  0xd2   :  { %1889 = vmatprep.subr.bf16.mxu1 %v7765_v55  ;;  %v7849_v55 = vld [vmem:[#allocation2 + $0x3ec] ss:$16 sps:$4 sm:$0xff]  }
  0xd4   :  { %1849 = vmatpush2.bf16.msra.mxu0 %v7760_v56  ;;  %v7844_v56 = vld [vmem:[#allocation2 + $0x1e8] ss:$16 sps:$4 sm:$0xff]  }
  0xd5   :  { %1890 = vmatpush2.bf16.msra.mxu1 %v7763_v57  ;;  %1850 = vmatprep.subr.bf16.mxu0 %v7768_v58  ;;  %v7847_v57 = vld [vmem:[#allocation2 + $0x3e8] ss:$16 sps:$4 sm:$0xff]   ;;  %v7852_v58 = vld [vmem:[#allocation2 + $0x1cc] ss:$16 sps:$4 sm:$0xff]  }
  0xd6   :  { %1891 = vmatprep.subr.bf16.mxu1 %v7771_v59  ;;  %v7855_v59 = vld [vmem:[#allocation2 + $0x3cc] ss:$16 sps:$4 sm:$0xff]  }
  0xd8   :  { %1851 = vmatpush2.bf16.msra.mxu0 %v7766_v60  ;;  %v7850_v60 = vld [vmem:[#allocation2 + $0x1c8] ss:$16 sps:$4 sm:$0xff]  }
  0xd9   :  { %1892 = vmatpush2.bf16.msra.mxu1 %v7769_v61  ;;  %1852 = vmatprep.subr.bf16.mxu0 %v7774_v62  ;;  %v7853_v61 = vld [vmem:[#allocation2 + $0x3c8] ss:$16 sps:$4 sm:$0xff]   ;;  %v7858_v62 = vld [vmem:[#allocation2 + $0x1ac] ss:$16 sps:$4 sm:$0xff]  }
  0xda   :  { %1893 = vmatprep.subr.bf16.mxu1 %v7777_v63  ;;  %v7861_v63 = vld [vmem:[#allocation2 + $0x3ac] ss:$16 sps:$4 sm:$0xff]  }
  0xdc   :  { %1853 = vmatpush2.bf16.msra.mxu0 %v7772_v0  ;;  %v7856_v0 = vld [vmem:[#allocation2 + $0x1a8] ss:$16 sps:$4 sm:$0xff]  }
  0xdd   :  { %1894 = vmatpush2.bf16.msra.mxu1 %v7775_v1  ;;  %1854 = vmatprep.subr.bf16.mxu0 %v7780_v2  ;;  %v7859_v1 = vld [vmem:[#allocation2 + $0x3a8] ss:$16 sps:$4 sm:$0xff]   ;;  %v7864_v2 = vld [vmem:[#allocation2 + $0x18c] ss:$16 sps:$4 sm:$0xff]  }
  0xde   :  { %1895 = vmatprep.subr.bf16.mxu1 %v7783_v3  ;;  %v7867_v3 = vld [vmem:[#allocation2 + $0x38c] ss:$16 sps:$4 sm:$0xff]  }
  0xe0   :  { %1855 = vmatpush2.bf16.msra.mxu0 %v7778_v4  ;;  %v7862_v4 = vld [vmem:[#allocation2 + $0x188] ss:$16 sps:$4 sm:$0xff]  }
  0xe1   :  { %1896 = vmatpush2.bf16.msra.mxu1 %v7781_v5  ;;  %1856 = vmatprep.subr.bf16.mxu0 %v7786_v6  ;;  %v7865_v5 = vld [vmem:[#allocation2 + $0x388] ss:$16 sps:$4 sm:$0xff]   ;;  %v7870_v6 = vld [vmem:[#allocation2 + $0x16c] ss:$16 sps:$4 sm:$0xff]  }
  0xe2   :  { %1897 = vmatprep.subr.bf16.mxu1 %v7789_v7  ;;  %v7873_v7 = vld [vmem:[#allocation2 + $0x36c] ss:$16 sps:$4 sm:$0xff]  }
  0xe4   :  { %1857 = vmatpush2.bf16.msra.mxu0 %v7784_v10  ;;  %v7868_v10 = vld [vmem:[#allocation2 + $0x168] ss:$16 sps:$4 sm:$0xff]  }
  0xe5   :  { %1898 = vmatpush2.bf16.msra.mxu1 %v7787_v11  ;;  %1858 = vmatprep.subr.bf16.mxu0 %v7792_v12  ;;  %v7871_v11 = vld [vmem:[#allocation2 + $0x368] ss:$16 sps:$4 sm:$0xff]   ;;  %v7876_v12 = vld [vmem:[#allocation2 + $0x14c] ss:$16 sps:$4 sm:$0xff]  }
  0xe6   :  { %1899 = vmatprep.subr.bf16.mxu1 %v7795_v13  ;;  %v7879_v13 = vld [vmem:[#allocation2 + $0x34c] ss:$16 sps:$4 sm:$0xff]  }
  0xe8   :  { %1859 = vmatpush2.bf16.msra.mxu0 %v7790_v14  ;;  %v7874_v14 = vld [vmem:[#allocation2 + $0x148] ss:$16 sps:$4 sm:$0xff]  }
  0xe9   :  { %1900 = vmatpush2.bf16.msra.mxu1 %v7793_v15  ;;  %1910 = vmatprep.subr.bf16.mxu0 %v7798_v18  ;;  %v7877_v15 = vld [vmem:[#allocation2 + $0x348] ss:$16 sps:$4 sm:$0xff]  }
  0xea   :  { %1951 = vmatprep.subr.bf16.mxu1 %v7801_v19  ;;  %v7880_v18 = vld [vmem:[#allocation2 + $0x128] ss:$16 sps:$4 sm:$0xff]  }
  0xeb   :  { %1861 = vmatmul.mubr.bf16.vlgmr.msra.gmra.mxu0 %v8841_v20  ;;  %v7883_v19 = vld [vmem:[#allocation2 + $0x328] ss:$16 sps:$4 sm:$0xff]  }
  0xec   :  { %1902 = vmatmul.mubr.bf16.vlgmr.msra.gmra.mxu1 %v8843_v21  ;;  %1911 = vmatpush1.bf16.msra.mxu0 %v7796_v22  ;;  %v7888_v22 = vld [vmem:[#allocation2 + $0x10c] ss:$16 sps:$4 sm:$0xff]  }
  0xed   :  { %1952 = vmatpush1.bf16.msra.mxu1 %v7799_v23  ;;  %1912 = vmatprep.subr.bf16.mxu0 %v7804_v24  ;;  %v7891_v23 = vld [vmem:[#allocation2 + $0x30c] ss:$16 sps:$4 sm:$0xff]   ;;  %v7886_v24 = vld [vmem:[#allocation2 + $0x108] ss:$16 sps:$4 sm:$0xff]  }
  0xee   :  { %1953 = vmatprep.subr.bf16.mxu1 %v7807_v25  ;;  %1942 = vmatprep.mubr.bf16.mxu0 %v8802_v49  ;;  %v7823_v49 = vld [vmem:[#allocation2 + $0x268] ss:$16 sps:$4 sm:$0xff]  }
  0xef   :  { %1983 = vmatprep.mubr.bf16.mxu1 %v8807_v52  ;;  %v7828_v52 = vld [vmem:[#allocation2 + $0x4c] ss:$16 sps:$4 sm:$0xff]   ;;  %v7889_v25 = vld [vmem:[#allocation2 + $0x308] ss:$16 sps:$4 sm:$0xff]  }
  0xf0   :  { %1913 = vmatpush1.bf16.msra.mxu0 %v7802_v26  ;;  %v7894_v26 = vld [vmem:[#allocation2 + $0x4ec] ss:$16 sps:$4 sm:$0xff]  }
  0xf1   :  { %1954 = vmatpush1.bf16.msra.mxu1 %v7805_v27  ;;  %1914 = vmatprep.subr.bf16.mxu0 %v7810_v28  ;;  %v7897_v27 = vld [vmem:[#allocation2 + $0x6ec] ss:$16 sps:$4 sm:$0xff]   ;;  %v7892_v28 = vld [vmem:[#allocation2 + $0x4e8] ss:$16 sps:$4 sm:$0xff]  }
  0xf2   :  { %1955 = vmatprep.subr.bf16.mxu1 %v7813_v29  ;;  %v7895_v29 = vld [vmem:[#allocation2 + $0x6e8] ss:$16 sps:$4 sm:$0xff]  }
  0xf4   :  { %1915 = vmatpush1.bf16.msra.mxu0 %v7808_v30  ;;  %v7900_v30 = vld [vmem:[#allocation2 + $0x4cc] ss:$16 sps:$4 sm:$0xff]  }
  0xf5   :  { %1956 = vmatpush1.bf16.msra.mxu1 %v7811_v31  ;;  %1916 = vmatprep.subr.bf16.mxu0 %v7816_v32  ;;  %v7903_v31 = vld [vmem:[#allocation2 + $0x6cc] ss:$16 sps:$4 sm:$0xff]   ;;  %v7898_v32 = vld [vmem:[#allocation2 + $0x4c8] ss:$16 sps:$4 sm:$0xff]  }
  0xf6   :  { %1957 = vmatprep.subr.bf16.mxu1 %v7819_v33  ;;  %v7901_v33 = vld [vmem:[#allocation2 + $0x6c8] ss:$16 sps:$4 sm:$0xff]  }
  0xf8   :  { %1917 = vmatpush1.bf16.msra.mxu0 %v7814_v34  ;;  %v7906_v34 = vld [vmem:[#allocation2 + $0x4ac] ss:$16 sps:$4 sm:$0xff]  }
  0xf9   :  { %1958 = vmatpush1.bf16.msra.mxu1 %v7817_v35  ;;  %1918 = vmatprep.subr.bf16.mxu0 %v7822_v36  ;;  %v7909_v35 = vld [vmem:[#allocation2 + $0x6ac] ss:$16 sps:$4 sm:$0xff]   ;;  %v7904_v36 = vld [vmem:[#allocation2 + $0x4a8] ss:$16 sps:$4 sm:$0xff]  }
  0xfa   :  { %1959 = vmatprep.subr.bf16.mxu1 %v7825_v38  ;;  %v7907_v38 = vld [vmem:[#allocation2 + $0x6a8] ss:$16 sps:$4 sm:$0xff]  }
  0xfc   :  { %1919 = vmatpush1.bf16.msra.mxu0 %v7820_v39  ;;  %v7912_v39 = vld [vmem:[#allocation2 + $0x48c] ss:$16 sps:$4 sm:$0xff]  }
  0xfd   :  { %1960 = vmatpush1.bf16.msra.mxu1 %v7823_v49  ;;  %1920 = vmatprep.subr.bf16.mxu0 %v7828_v52  ;;  %v7910_v49 = vld [vmem:[#allocation2 + $0x488] ss:$16 sps:$4 sm:$0xff]   ;;  %v7918_v52 = vld [vmem:[#allocation2 + $0x46c] ss:$16 sps:$4 sm:$0xff]  }
  0xfe   :  { %1961 = vmatprep.subr.bf16.mxu1 %v7831_v41  ;;  %v7921_v41 = vld [vmem:[#allocation2 + $0x66c] ss:$16 sps:$4 sm:$0xff]  }
 0x100   :  { %1921 = vmatpush1.bf16.msra.mxu0 %v7826_v42  ;;  %v7916_v42 = vld [vmem:[#allocation2 + $0x468] ss:$16 sps:$4 sm:$0xff]  }
 0x101   :  { %1962 = vmatpush1.bf16.msra.mxu1 %v7829_v43  ;;  %1922 = vmatprep.subr.bf16.mxu0 %v7834_v44  ;;  %v7919_v43 = vld [vmem:[#allocation2 + $0x668] ss:$16 sps:$4 sm:$0xff]   ;;  %v7924_v44 = vld [vmem:[#allocation2 + $0x44c] ss:$16 sps:$4 sm:$0xff]  }
 0x102   :  { %1963 = vmatprep.subr.bf16.mxu1 %v7837_v45  ;;  %v7925_v45 = vld [vmem:[#allocation2 + $0x648] ss:$16 sps:$4 sm:$0xff]  }
 0x104   :  { %1923 = vmatpush1.bf16.msra.mxu0 %v7832_v46  ;;  %v7930_v46 = vld [vmem:[#allocation2 + $0x42c] ss:$16 sps:$4 sm:$0xff]  }
 0x105   :  { %1964 = vmatpush1.bf16.msra.mxu1 %v7835_v47  ;;  %1924 = vmatprep.subr.bf16.mxu0 %v7840_v48  ;;  %v7933_v47 = vld [vmem:[#allocation2 + $0x62c] ss:$16 sps:$4 sm:$0xff]   ;;  %v7928_v48 = vld [vmem:[#allocation2 + $0x428] ss:$16 sps:$4 sm:$0xff]  }
 0x106   :  { %1965 = vmatprep.subr.bf16.mxu1 %v7843_v50  ;;  %v7931_v50 = vld [vmem:[#allocation2 + $0x628] ss:$16 sps:$4 sm:$0xff]  }
 0x108   :  { %1925 = vmatpush1.bf16.msra.mxu0 %v7838_v51  ;;  %v7936_v51 = vld [vmem:[#allocation2 + $0x40c] ss:$16 sps:$4 sm:$0xff]  }
 0x109   :  { %1966 = vmatpush1.bf16.msra.mxu1 %v7841_v53  ;;  %1926 = vmatprep.subr.bf16.mxu0 %v7846_v54  ;;  %v7939_v53 = vld [vmem:[#allocation2 + $0x60c] ss:$16 sps:$4 sm:$0xff]   ;;  %v7934_v54 = vld [vmem:[#allocation2 + $0x408] ss:$16 sps:$4 sm:$0xff]  }
 0x10a   :  { %1967 = vmatprep.subr.bf16.mxu1 %v7849_v55  ;;  %v7937_v55 = vld [vmem:[#allocation2 + $0x608] ss:$16 sps:$4 sm:$0xff]  }
 0x10c   :  { %1927 = vmatpush2.bf16.msra.mxu0 %v7844_v56  ;;  %v7942_v56 = vld [vmem:[#allocation2 + $0x5ec] ss:$16 sps:$4 sm:$0xff]  }
 0x10d   :  { %1968 = vmatpush2.bf16.msra.mxu1 %v7847_v57  ;;  %1928 = vmatprep.subr.bf16.mxu0 %v7852_v58  ;;  %v7945_v57 = vld [vmem:[#allocation2 + $0x7ec] ss:$16 sps:$4 sm:$0xff]   ;;  %v7940_v58 = vld [vmem:[#allocation2 + $0x5e8] ss:$16 sps:$4 sm:$0xff]  }
 0x10e   :  { %1969 = vmatprep.subr.bf16.mxu1 %v7855_v59  ;;  %v7943_v59 = vld [vmem:[#allocation2 + $0x7e8] ss:$16 sps:$4 sm:$0xff]  }
 0x110   :  { %1929 = vmatpush2.bf16.msra.mxu0 %v7850_v60  ;;  %v7948_v60 = vld [vmem:[#allocation2 + $0x5cc] ss:$16 sps:$4 sm:$0xff]  }
 0x111   :  { %1970 = vmatpush2.bf16.msra.mxu1 %v7853_v61  ;;  %1930 = vmatprep.subr.bf16.mxu0 %v7858_v62  ;;  %v7951_v61 = vld [vmem:[#allocation2 + $0x7cc] ss:$16 sps:$4 sm:$0xff]   ;;  %v7946_v62 = vld [vmem:[#allocation2 + $0x5c8] ss:$16 sps:$4 sm:$0xff]  }
 0x112   :  { %1971 = vmatprep.subr.bf16.mxu1 %v7861_v63  ;;  %v7949_v63 = vld [vmem:[#allocation2 + $0x7c8] ss:$16 sps:$4 sm:$0xff]  }
 0x114   :  { %1931 = vmatpush2.bf16.msra.mxu0 %v7856_v0  ;;  %v7954_v0 = vld [vmem:[#allocation2 + $0x5ac] ss:$16 sps:$4 sm:$0xff]  }
 0x115   :  { %1972 = vmatpush2.bf16.msra.mxu1 %v7859_v1  ;;  %1932 = vmatprep.subr.bf16.mxu0 %v7864_v2  ;;  %v7957_v1 = vld [vmem:[#allocation2 + $0x7ac] ss:$16 sps:$4 sm:$0xff]   ;;  %v7952_v2 = vld [vmem:[#allocation2 + $0x5a8] ss:$16 sps:$4 sm:$0xff]  }
 0x116   :  { %1973 = vmatprep.subr.bf16.mxu1 %v7867_v3  ;;  %v7955_v3 = vld [vmem:[#allocation2 + $0x7a8] ss:$16 sps:$4 sm:$0xff]  }
 0x118   :  { %1933 = vmatpush2.bf16.msra.mxu0 %v7862_v4  ;;  %v7960_v4 = vld [vmem:[#allocation2 + $0x58c] ss:$16 sps:$4 sm:$0xff]  }
 0x119   :  { %1974 = vmatpush2.bf16.msra.mxu1 %v7865_v5  ;;  %1934 = vmatprep.subr.bf16.mxu0 %v7870_v6  ;;  %v7963_v5 = vld [vmem:[#allocation2 + $0x78c] ss:$16 sps:$4 sm:$0xff]   ;;  %v7958_v6 = vld [vmem:[#allocation2 + $0x588] ss:$16 sps:$4 sm:$0xff]  }
 0x11a   :  { %1975 = vmatprep.subr.bf16.mxu1 %v7873_v7  ;;  %v7961_v7 = vld [vmem:[#allocation2 + $0x788] ss:$16 sps:$4 sm:$0xff]  }
 0x11c   :  { %1935 = vmatpush2.bf16.msra.mxu0 %v7868_v10  ;;  %v7966_v10 = vld [vmem:[#allocation2 + $0x56c] ss:$16 sps:$4 sm:$0xff]  }
 0x11d   :  { %1976 = vmatpush2.bf16.msra.mxu1 %v7871_v11  ;;  %1936 = vmatprep.subr.bf16.mxu0 %v7876_v12  ;;  %v7969_v11 = vld [vmem:[#allocation2 + $0x76c] ss:$16 sps:$4 sm:$0xff]   ;;  %v7964_v12 = vld [vmem:[#allocation2 + $0x568] ss:$16 sps:$4 sm:$0xff]  }
 0x11e   :  { %1977 = vmatprep.subr.bf16.mxu1 %v7879_v13  ;;  %v7967_v13 = vld [vmem:[#allocation2 + $0x768] ss:$16 sps:$4 sm:$0xff]  }
 0x120   :  { %1937 = vmatpush2.bf16.msra.mxu0 %v7874_v14  ;;  %v7972_v14 = vld [vmem:[#allocation2 + $0x54c] ss:$16 sps:$4 sm:$0xff]  }
 0x121   :  { %1978 = vmatpush2.bf16.msra.mxu1 %v7877_v15  ;;  %1938 = vmatprep.subr.bf16.mxu0 %v7882_v16  ;;  %v7975_v15 = vld [vmem:[#allocation2 + $0x74c] ss:$16 sps:$4 sm:$0xff]   ;;  %v7970_v16 = vld [vmem:[#allocation2 + $0x548] ss:$16 sps:$4 sm:$0xff]  }
 0x122   :  { %1979 = vmatprep.subr.bf16.mxu1 %v7885_v17  ;;  %v7973_v17 = vld [vmem:[#allocation2 + $0x748] ss:$16 sps:$4 sm:$0xff]  }
 0x124   :  { %1939 = vmatpush2.bf16.msra.mxu0 %v7880_v18  ;;  %v7978_v18 = vld [vmem:[#allocation2 + $0x52c] ss:$16 sps:$4 sm:$0xff]  }
 0x125   :  { %1980 = vmatpush2.bf16.msra.mxu1 %v7883_v19  ;;  %1940 = vmatprep.subr.bf16.mxu0 %v7888_v22  ;;  %v7981_v19 = vld [vmem:[#allocation2 + $0x72c] ss:$16 sps:$4 sm:$0xff]   ;;  %v7976_v22 = vld [vmem:[#allocation2 + $0x528] ss:$16 sps:$4 sm:$0xff]  }
 0x126   :  { %1981 = vmatprep.subr.bf16.mxu1 %v7891_v23  ;;  %v7979_v23 = vld [vmem:[#allocation2 + $0x728] ss:$16 sps:$4 sm:$0xff]  }
 0x128   :  { %1941 = vmatpush2.bf16.msra.mxu0 %v7886_v24  ;;  %v7984_v24 = vld [vmem:[#allocation2 + $0x50c] ss:$16 sps:$4 sm:$0xff]  }
 0x129   :  { %1982 = vmatpush2.bf16.msra.mxu1 %v7889_v25  ;;  %1992 = vmatprep.subr.bf16.mxu0 %v7894_v26  ;;  %v7987_v25 = vld [vmem:[#allocation2 + $0x70c] ss:$16 sps:$4 sm:$0xff]   ;;  %v7982_v26 = vld [vmem:[#allocation2 + $0x508] ss:$16 sps:$4 sm:$0xff]  }
 0x12a   :  { %2033 = vmatprep.subr.bf16.mxu1 %v7897_v27  ;;  %v7985_v27 = vld [vmem:[#allocation2 + $0x708] ss:$16 sps:$4 sm:$0xff]  }
 0x12b   :  { %1943 = vmatmul.mubr.bf16.vlgmr.msra.gmra.mxu0 %v8817_v8  ;;  %v7915_v8 = vld [vmem:[#allocation2 + $0x68c] ss:$16 sps:$4 sm:$0xff]  }
 0x12c   :  { %1984 = vmatmul.mubr.bf16.vlgmr.msra.gmra.mxu1 %v8819_v9  ;;  %1993 = vmatpush1.bf16.msra.mxu0 %v7892_v28  ;;  %v7913_v9 = vld [vmem:[#allocation2 + $0x688] ss:$16 sps:$4 sm:$0xff]   ;;  %v7990_v28 = vld [vmem:[#allocation4 + $0x74] ss:$8 sps:$4 sm:$0xff]  }
 0x12d   :  { %2034 = vmatpush1.bf16.msra.mxu1 %v7895_v29  ;;  %1994 = vmatprep.subr.bf16.mxu0 %v7900_v30  ;;  %v7988_v29 = vld [vmem:[#allocation4 + $0x70] ss:$8 sps:$4 sm:$0xff]   ;;  %v7993_v30 = vld [vmem:[#allocation4 + $0x64] ss:$8 sps:$4 sm:$0xff]  }
 0x12e   :  { %2035 = vmatprep.subr.bf16.mxu1 %v7903_v31  ;;  %2024 = vmatprep.mubr.bf16.mxu0 %v8826_v37  ;;  %v7927_v37 = vld [vmem:[#allocation2 + $0x64c] ss:$16 sps:$4 sm:$0xff]   ;;  %v7991_v31 = vld [vmem:[#allocation4 + $0x60] ss:$8 sps:$4 sm:$0xff]  }
 0x12f   :  { %2065 = vmatprep.mubr.bf16.mxu1 %v8831_v40  ;;  %v7922_v40 = vld [vmem:[#allocation2 + $0x448] ss:$16 sps:$4 sm:$0xff]  }
 0x130   :  { %1995 = vmatpush1.bf16.msra.mxu0 %v7898_v32 }
 0x131   :  { %2036 = vmatpush1.bf16.msra.mxu1 %v7901_v33  ;;  %1996 = vmatprep.subr.bf16.mxu0 %v7906_v34  ;;  %v7996_v34 = vld [vmem:[#allocation4 + $0x54] ss:$8 sps:$4 sm:$0xff]  }
 0x132   :  { %2037 = vmatprep.subr.bf16.mxu1 %v7909_v35 }
 0x134   :  { %1997 = vmatpush1.bf16.msra.mxu0 %v7904_v36 }
 0x135   :  { %2038 = vmatpush1.bf16.msra.mxu1 %v7907_v38  ;;  %1998 = vmatprep.subr.bf16.mxu0 %v7912_v39  ;;  %v7994_v38 = vld [vmem:[#allocation4 + $0x50] ss:$8 sps:$4 sm:$0xff]  }
 0x136   :  { %2039 = vmatprep.subr.bf16.mxu1 %v7915_v8 }
 0x138   :  { %1999 = vmatpush1.bf16.msra.mxu0 %v7910_v49 }
 0x139   :  { %2040 = vmatpush1.bf16.msra.mxu1 %v7913_v9  ;;  %2000 = vmatprep.subr.bf16.mxu0 %v7918_v52  ;;  %v7999_v52 = vld [vmem:[#allocation4 + $0x44] ss:$8 sps:$4 sm:$0xff]  }
 0x13a   :  { %2041 = vmatprep.subr.bf16.mxu1 %v7921_v41  ;;  %v8036_v41 = vld [vmem:[#allocation4 + $0x170] ss:$8 sps:$4 sm:$0xff]  }
 0x13c   :  { %2001 = vmatpush1.bf16.msra.mxu0 %v7916_v42  ;;  %v8038_v42 = vld [vmem:[#allocation4 + $0x174] ss:$8 sps:$4 sm:$0xff]  }
 0x13d   :  { %2042 = vmatpush1.bf16.msra.mxu1 %v7919_v43  ;;  %2002 = vmatprep.subr.bf16.mxu0 %v7924_v44  ;;  %v8039_v43 = vld [vmem:[#allocation4 + $0x160] ss:$8 sps:$4 sm:$0xff]   ;;  %v8002_v44 = vld [vmem:[#allocation4 + $0x34] ss:$8 sps:$4 sm:$0xff]  }
 0x13e   :  { %2043 = vmatprep.subr.bf16.mxu1 %v7927_v37  ;;  %v8044_v37 = vld [vmem:[#allocation4 + $0x154] ss:$8 sps:$4 sm:$0xff]  }
 0x140   :  { %2003 = vmatpush1.bf16.msra.mxu0 %v7922_v40  ;;  %v8000_v40 = vld [vmem:[#allocation4 + $0x30] ss:$8 sps:$4 sm:$0xff]  }
 0x141   :  { %2044 = vmatpush1.bf16.msra.mxu1 %v7925_v45  ;;  %2004 = vmatprep.subr.bf16.mxu0 %v7930_v46  ;;  %v8042_v45 = vld [vmem:[#allocation4 + $0x150] ss:$8 sps:$4 sm:$0xff]   ;;  %v8005_v46 = vld [vmem:[#allocation4 + $0x24] ss:$8 sps:$4 sm:$0xff]  }
 0x142   :  { %2045 = vmatprep.subr.bf16.mxu1 %v7933_v47  ;;  %v8047_v47 = vld [vmem:[#allocation4 + $0x144] ss:$8 sps:$4 sm:$0xff]  }
 0x144   :  { %2005 = vmatpush1.bf16.msra.mxu0 %v7928_v48  ;;  %v8003_v48 = vld [vmem:[#allocation4 + $0x20] ss:$8 sps:$4 sm:$0xff]  }
 0x145   :  { %2046 = vmatpush1.bf16.msra.mxu1 %v7931_v50  ;;  %2006 = vmatprep.subr.bf16.mxu0 %v7936_v51  ;;  %v8045_v50 = vld [vmem:[#allocation4 + $0x140] ss:$8 sps:$4 sm:$0xff]   ;;  %v8008_v51 = vld [vmem:[#allocation4 + $0x14] ss:$8 sps:$4 sm:$0xff]  }
 0x146   :  { %2047 = vmatprep.subr.bf16.mxu1 %v7939_v53  ;;  %v8050_v53 = vld [vmem:[#allocation4 + $0x134] ss:$8 sps:$4 sm:$0xff]  }
 0x148   :  { %2007 = vmatpush1.bf16.msra.mxu0 %v7934_v54  ;;  %v8006_v54 = vld [vmem:[#allocation4 + $0x10] ss:$8 sps:$4 sm:$0xff]  }
 0x149   :  { %2048 = vmatpush1.bf16.msra.mxu1 %v7937_v55  ;;  %2008 = vmatprep.subr.bf16.mxu0 %v7942_v56  ;;  %v8048_v55 = vld [vmem:[#allocation4 + $0x130] ss:$8 sps:$4 sm:$0xff]   ;;  %v8011_v56 = vld [vmem:[#allocation4 + $0x4] ss:$8 sps:$4 sm:$0xff]  }
 0x14a   :  { %2049 = vmatprep.subr.bf16.mxu1 %v7945_v57  ;;  %v8053_v57 = vld [vmem:[#allocation4 + $0x124] ss:$8 sps:$4 sm:$0xff]  }
 0x14c   :  { %2009 = vmatpush2.bf16.msra.mxu0 %v7940_v58  ;;  %v8009_v58 = vld [vmem:[#allocation4] ss:$8 sps:$4 sm:$0xff]  }
 0x14d   :  { %2050 = vmatpush2.bf16.msra.mxu1 %v7943_v59  ;;  %2010 = vmatprep.subr.bf16.mxu0 %v7948_v60  ;;  %v8051_v59 = vld [vmem:[#allocation4 + $0x120] ss:$8 sps:$4 sm:$0xff]   ;;  %v8014_v60 = vld [vmem:[#allocation4 + $0xf4] ss:$8 sps:$4 sm:$0xff]  }
 0x14e   :  { %2051 = vmatprep.subr.bf16.mxu1 %v7951_v61  ;;  %v8056_v61 = vld [vmem:[#allocation4 + $0x114] ss:$8 sps:$4 sm:$0xff]  }
 0x150   :  { %2011 = vmatpush2.bf16.msra.mxu0 %v7946_v62  ;;  %v8012_v62 = vld [vmem:[#allocation4 + $0xf0] ss:$8 sps:$4 sm:$0xff]  }
 0x151   :  { %2052 = vmatpush2.bf16.msra.mxu1 %v7949_v63  ;;  %2012 = vmatprep.subr.bf16.mxu0 %v7954_v0  ;;  %v8054_v63 = vld [vmem:[#allocation4 + $0x110] ss:$8 sps:$4 sm:$0xff]   ;;  %v8017_v0 = vld [vmem:[#allocation4 + $0xe4] ss:$8 sps:$4 sm:$0xff]  }
 0x152   :  { %2053 = vmatprep.subr.bf16.mxu1 %v7957_v1  ;;  %v8059_v1 = vld [vmem:[#allocation4 + $0x104] ss:$8 sps:$4 sm:$0xff]  }
 0x154   :  { %2013 = vmatpush2.bf16.msra.mxu0 %v7952_v2  ;;  %v8015_v2 = vld [vmem:[#allocation4 + $0xe0] ss:$8 sps:$4 sm:$0xff]  }
 0x155   :  { %2054 = vmatpush2.bf16.msra.mxu1 %v7955_v3  ;;  %2014 = vmatprep.subr.bf16.mxu0 %v7960_v4  ;;  %v8057_v3 = vld [vmem:[#allocation4 + $0x100] ss:$8 sps:$4 sm:$0xff]   ;;  %v8020_v4 = vld [vmem:[#allocation4 + $0xd4] ss:$8 sps:$4 sm:$0xff]  }
 0x156   :  { %2055 = vmatprep.subr.bf16.mxu1 %v7963_v5  ;;  %v8062_v5 = vld [vmem:[#allocation4 + $0x1f4] ss:$8 sps:$4 sm:$0xff]  }
 0x158   :  { %2015 = vmatpush2.bf16.msra.mxu0 %v7958_v6  ;;  %v8018_v6 = vld [vmem:[#allocation4 + $0xd0] ss:$8 sps:$4 sm:$0xff]  }
 0x159   :  { %2056 = vmatpush2.bf16.msra.mxu1 %v7961_v7  ;;  %2016 = vmatprep.subr.bf16.mxu0 %v7966_v10  ;;  %v8060_v7 = vld [vmem:[#allocation4 + $0x1f0] ss:$8 sps:$4 sm:$0xff]   ;;  %v8023_v10 = vld [vmem:[#allocation4 + $0xc4] ss:$8 sps:$4 sm:$0xff]  }
 0x15a   :  { %2057 = vmatprep.subr.bf16.mxu1 %v7969_v11  ;;  %v8065_v11 = vld [vmem:[#allocation4 + $0x1e4] ss:$8 sps:$4 sm:$0xff]  }
 0x15c   :  { %2017 = vmatpush2.bf16.msra.mxu0 %v7964_v12  ;;  %v446_v12 = vlaneseq }
 0x15d   :  { %2058 = vmatpush2.bf16.msra.mxu1 %v7967_v13  ;;  %2018 = vmatprep.subr.bf16.mxu0 %v7972_v14  ;;  %v8021_v13 = vld [vmem:[#allocation4 + $0xc0] ss:$8 sps:$4 sm:$0xff]  }
 0x15e   :  { %2059 = vmatprep.subr.bf16.mxu1 %v7975_v15  ;;  %v8063_v14 = vld [vmem:[#allocation4 + $0x1e0] ss:$8 sps:$4 sm:$0xff]   ;;  %v8026_v15 = vld [vmem:[#allocation4 + $0xb4] ss:$8 sps:$4 sm:$0xff]  }
 0x160   :  { %2019 = vmatpush2.bf16.msra.mxu0 %v7970_v16  ;;  %v8068_v16 = vld [vmem:[#allocation4 + $0x1d4] ss:$8 sps:$4 sm:$0xff]  }
 0x161   :  { %2060 = vmatpush2.bf16.msra.mxu1 %v7973_v17  ;;  %2020 = vmatprep.subr.bf16.mxu0 %v7978_v18  ;;  %v8863_v17 = vshrl.u32 %v446_v12, 7  ;;  %v8024_v18 = vld [vmem:[#allocation4 + $0xb0] ss:$8 sps:$4 sm:$0xff]   ;;  %v8091_v12 = vld [vmem:[%s9034_s5 + $0x20] sm:$0xff]  }
 0x162   :  { %2061 = vmatprep.subr.bf16.mxu1 %v7981_v19  ;;  %v8066_v19 = vld [vmem:[#allocation4 + $0x1d0] ss:$8 sps:$4 sm:$0xff]  }
 0x164   :  { %2021 = vmatpush2.bf16.msra.mxu0 %v7976_v22  ;;  %v8029_v22 = vld [vmem:[#allocation4 + $0xa4] ss:$8 sps:$4 sm:$0xff]  }
 0x165   :  { %2062 = vmatpush2.bf16.msra.mxu1 %v7979_v23  ;;  %2022 = vmatprep.subr.bf16.mxu0 %v7984_v24  ;;  %v8071_v23 = vld [vmem:[#allocation4 + $0x1c4] ss:$8 sps:$4 sm:$0xff]   ;;  %v8866_v24 = vsub.s32 0, %v8863_v17 }
 0x166   :  { %2063 = vmatprep.subr.bf16.mxu1 %v7987_v25  ;;  %v8869_v25 = vsub.s32 1, %v8863_v17 }
 0x168   :  { %2023 = vmatpush2.bf16.msra.mxu0 %v7982_v26  ;;  %v8027_v26 = vld [vmem:[#allocation4 + $0xa0] ss:$8 sps:$4 sm:$0xff]  }
 0x169   :  { %2064 = vmatpush2.bf16.msra.mxu1 %v7985_v27  ;;  %2478 = vmatprep.subr.bf16.mxu0 %v7990_v28  ;;  %v8069_v27 = vld [vmem:[#allocation4 + $0x1c0] ss:$8 sps:$4 sm:$0xff]   ;;  %v8032_v28 = vld [vmem:[#allocation4 + $0x94] ss:$8 sps:$4 sm:$0xff]  }
 0x16a   :  { %2519 = vmatprep.subr.bf16.mxu1 %v8038_v42 }
 0x16b   :  { %v8853_v32 = vpop.f32.mrf.mxu0  ;;  %2025 = vmatmul.mubr.bf16.vlgmr.msra.gmra.mxu0 %v8841_v20  ;;  %v8041_v20 = vld [vmem:[#allocation4 + $0x164] ss:$8 sps:$4 sm:$0xff]  }
 0x16c   :  { %v8855_v33 = vpop.f32.mrf.mxu1  ;;  %2066 = vmatmul.mubr.bf16.vlgmr.msra.gmra.mxu1 %v8843_v21  ;;  %2479 = vmatpush1.bf16.msra.mxu0 %v7988_v29  ;;  %v7997_v21 = vld [vmem:[#allocation4 + $0x40] ss:$8 sps:$4 sm:$0xff]   ;;  %v8074_v29 = vld [vmem:[#allocation4 + $0x1b4] ss:$8 sps:$4 sm:$0xff]  }
 0x16d   :  { %v8859_v35 = vpop.f32.mrf.mxu0  ;;  %2480 = vmatprep.subr.bf16.mxu0 %v7993_v30  ;;  %2520 = vmatpush1.bf16.msra.mxu1 %v8036_v41  ;;  %v8874_v30 = vld [vmem:[%s9057_s22] sm:$0xf]  ;;  %v8077_v41 = vld [vmem:[#allocation4 + $0x1a4] ss:$8 sps:$4 sm:$0xff]  }
 0x16e   :  { %v8861_v36 = vpop.f32.mrf.mxu1  ;;  %2521 = vmatprep.subr.bf16.mxu1 %v8041_v20  ;;  %v8075_v20 = vld [vmem:[#allocation4 + $0x1a0] ss:$8 sps:$4 sm:$0xff]  }
 0x16f   :  { %v1784_v39 = vpop.f32.mrf.mxu0 }
 0x170   :  { %v1825_v8 = vpop.f32.mrf.mxu1  ;;  %2481 = vmatpush1.bf16.msra.mxu0 %v7991_v31  ;;  %v8030_v31 = vld [vmem:[#allocation4 + $0x90] ss:$8 sps:$4 sm:$0xff]   ;;  %v449_v39 = vrot.slane %v8874_v30, %v8866_v24 }
 0x171   :  { %v1785_v49 = vpop.f32.mrf.mxu0  ;;  %2482 = vmatprep.subr.bf16.mxu0 %v7996_v34  ;;  %2522 = vmatpush1.bf16.msra.mxu1 %v8039_v43  ;;  %v8072_v34 = vld [vmem:[#allocation4 + $0x1b0] ss:$8 sps:$4 sm:$0xff]   ;;  %v453_v8 = vrot.slane %v8874_v30, %v8869_v25 }
 0x172   :  { %v1826_v9 = vpop.f32.mrf.mxu1  ;;  %2523 = vmatprep.subr.bf16.mxu1 %v8044_v37  ;;  %v8033_v49 = vld [vmem:[#allocation4 + $0x80] ss:$8 sps:$4 sm:$0xff]  }
 0x173   :  { %v1781_v9 = vadd.f32 %v8853_v32, %v449_v39  ;;  %v8078_v32 = vld [vmem:[#allocation4 + $0x190] ss:$8 sps:$4 sm:$0xff]  }
 0x174   :  { %2483 = vmatpush1.bf16.msra.mxu0 %v7994_v38  ;;  %v8035_v38 = vld [vmem:[#allocation4 + $0x84] ss:$8 sps:$4 sm:$0xff]  }
 0x175   :  { %2484 = vmatprep.subr.bf16.mxu0 %v7999_v52  ;;  %2524 = vmatpush1.bf16.msra.mxu1 %v8042_v45  ;;  %v1783_v52 = vadd.f32 %v8859_v35, %v453_v8  ;;  %v1822_v42 = vadd.f32 %v8855_v33, %v1781_v9 }
 0x176   :  { %2525 = vmatprep.subr.bf16.mxu1 %v8047_v47 }
 0x178   :  { %2485 = vmatpush1.bf16.msra.mxu0 %v7997_v21 }
 0x179   :  { %2486 = vmatprep.subr.bf16.mxu0 %v8002_v44  ;;  %2526 = vmatpush1.bf16.msra.mxu1 %v8045_v50  ;;  %v1824_v44 = vadd.f32 %v8861_v36, %v1783_v52 }
 0x17a   :  { %2527 = vmatprep.subr.bf16.mxu1 %v8050_v53 }
 0x17c   :  { %2487 = vmatpush1.bf16.msra.mxu0 %v8000_v40 }
 0x17d   :  { %2488 = vmatprep.subr.bf16.mxu0 %v8005_v46  ;;  %2528 = vmatpush1.bf16.msra.mxu1 %v8048_v55  ;;  %v8080_v46 = vld [vmem:[#allocation4 + $0x194] ss:$8 sps:$4 sm:$0xff]   ;;  %v8083_v55 = vld [vmem:[#allocation4 + $0x184] ss:$8 sps:$4 sm:$0xff]  }
 0x17e   :  { %2529 = vmatprep.subr.bf16.mxu1 %v8053_v57  ;;  %v8081_v57 = vld [vmem:[#allocation4 + $0x180] ss:$8 sps:$4 sm:$0xff]  }
 0x180   :  { %2489 = vmatpush1.bf16.msra.mxu0 %v8003_v48 }
 0x181   :  { %2490 = vmatprep.subr.bf16.mxu0 %v8008_v51  ;;  %2530 = vmatpush1.bf16.msra.mxu1 %v8051_v59 }
 0x182   :  { %2531 = vmatprep.subr.bf16.mxu1 %v8056_v61 }
 0x184   :  { %2491 = vmatpush1.bf16.msra.mxu0 %v8006_v54 }
 0x185   :  { %2492 = vmatprep.subr.bf16.mxu0 %v8011_v56  ;;  %2532 = vmatpush1.bf16.msra.mxu1 %v8054_v63 }
 0x186   :  { %2533 = vmatprep.subr.bf16.mxu1 %v8059_v1 }
 0x188   :  { %2493 = vmatpush1.bf16.msra.mxu0 %v8009_v58 }
 0x189   :  { %2494 = vmatprep.subr.bf16.mxu0 %v8014_v60  ;;  %2534 = vmatpush1.bf16.msra.mxu1 %v8057_v3  ;;  %v8084_v3 = vld [vmem:[%s9034_s5 + $0x78] sm:$0xff]  }
 0x18a   :  { %2535 = vmatprep.subr.bf16.mxu1 %v8062_v5  ;;  %v8086_v5 = vld [vmem:[%s9034_s5 + $0x70] sm:$0xff]  }
 0x18c   :  { %2495 = vmatpush2.bf16.msra.mxu0 %v8012_v62 }
 0x18d   :  { %2496 = vmatprep.subr.bf16.mxu0 %v8017_v0  ;;  %2536 = vmatpush2.bf16.msra.mxu1 %v8060_v7  ;;  %v8088_v7 = vld [vmem:[%s9034_s5 + $0x68] sm:$0xff]  }
 0x18e   :  { %2537 = vmatprep.subr.bf16.mxu1 %v8065_v11  ;;  %v8090_v11 = vld [vmem:[%s9034_s5 + $0x60] sm:$0xff]  }
 0x190   :  { %2497 = vmatpush2.bf16.msra.mxu0 %v8015_v2 }
 0x191   :  { %2498 = vmatprep.subr.bf16.mxu0 %v8020_v4  ;;  %2538 = vmatpush2.bf16.msra.mxu1 %v8063_v14  ;;  %v8085_v4 = vld [vmem:[%s9034_s5 + $0x38] sm:$0xff]  }
 0x192   :  { %2539 = vmatprep.subr.bf16.mxu1 %v8068_v16  ;;  %v8093_v14 = vld [vmem:[%s9034_s5 + $0x18] sm:$0xff]   ;;  %v8095_v16 = vld [vmem:[%s9034_s5 + $0x10] sm:$0xff]  }
 0x194   :  { %2499 = vmatpush2.bf16.msra.mxu0 %v8018_v6  ;;  %v8087_v6 = vld [vmem:[%s9034_s5 + $0x30] sm:$0xff]  }
 0x195   :  { %2500 = vmatprep.subr.bf16.mxu0 %v8023_v10  ;;  %2540 = vmatpush2.bf16.msra.mxu1 %v8066_v19  ;;  %v8089_v10 = vld [vmem:[%s9034_s5 + $0x28] sm:$0xff]   ;;  %v8924_v19 = vsub.s32 3, %v8863_v17 }
 0x196   :  { %2541 = vmatprep.subr.bf16.mxu1 %v8071_v23 }
 0x197   :  { %v461_v23 = vrot.slane %v8874_v30, %v8924_v19 }
 0x198   :  { %2501 = vmatpush2.bf16.msra.mxu0 %v8021_v13  ;;  %v8092_v13 = vld [vmem:[%s9034_s5 + $0x58] sm:$0xff]  }
 0x199   :  { %2502 = vmatprep.subr.bf16.mxu0 %v8026_v15  ;;  %2542 = vmatpush2.bf16.msra.mxu1 %v8069_v27  ;;  %v8094_v15 = vld [vmem:[%s9034_s5 + $0x50] sm:$0xff]  }
 0x19a   :  { %2543 = vmatprep.subr.bf16.mxu1 %v8074_v29 }
 0x19c   :  { %2503 = vmatpush2.bf16.msra.mxu0 %v8024_v18  ;;  %v8921_v18 = vsub.s32 2, %v8863_v17 }
 0x19d   :  { %2504 = vmatprep.subr.bf16.mxu0 %v8029_v22  ;;  %2544 = vmatpush2.bf16.msra.mxu1 %v8072_v34 }
 0x19e   :  { %2545 = vmatprep.subr.bf16.mxu1 %v8077_v41  ;;  %v457_v22 = vrot.slane %v8874_v30, %v8921_v18 }
 0x1a0   :  { %2505 = vmatpush2.bf16.msra.mxu0 %v8027_v26 }
 0x1a1   :  { %2506 = vmatprep.subr.bf16.mxu0 %v8032_v28  ;;  %2546 = vmatpush2.bf16.msra.mxu1 %v8075_v20 }
 0x1a2   :  { %2547 = vmatprep.subr.bf16.mxu1 %v8080_v46  ;;  %v8097_v46 = vld [vmem:[%s9034_s5 + $0x8] sm:$0xff]  }
 0x1a4   :  { %2507 = vmatpush2.bf16.msra.mxu0 %v8030_v31 }
 0x1a5   :  { %2508 = vmatprep.subr.bf16.mxu0 %v8035_v38  ;;  %2548 = vmatpush2.bf16.msra.mxu1 %v8078_v32  ;;  %v8098_v32 = vld [vmem:[%s9034_s5 + $0x40] sm:$0xff]  }
 0x1a6   :  { %2549 = vmatprep.subr.bf16.mxu1 %v8083_v55  ;;  %v8108_v55 = vld [vmem:[#allocation6 + $0x54] ss:$8 sps:$4 sm:$0xff]  }
 0x1a8   :  { %2509 = vmatpush2.bf16.msra.mxu0 %v8033_v49 }
 0x1a9   :  { %2550 = vmatpush2.bf16.msra.mxu1 %v8081_v57  ;;  %7543 = vmatprep.subr.bf16.mxu0 %v8084_v3  ;;  %v8111_v57 = vld [vmem:[#allocation6 + $0x44] ss:$8 sps:$4 sm:$0xff]  }
 0x1ab   :  { %v1862_v21 = vpop.f32.mrf.mxu0 }
 0x1ac   :  { %v1903_v43 = vpop.f32.mrf.mxu1  ;;  %v1863_v37 = vadd.f32 %v1862_v21, %v1822_v42 }
 0x1ad   :  { %v1864_v40 = vpop.f32.mrf.mxu0 }
 0x1ae   :  { %v1905_v45 = vpop.f32.mrf.mxu1  ;;  %v1904_v47 = vadd.f32 %v1903_v43, %v1863_v37  ;;  %v1865_v48 = vadd.f32 %v1864_v40, %v1824_v44 }
 0x1af   :  { %v1866_v50 = vpop.f32.mrf.mxu0 }
 0x1b0   :  { %v1907_v35 = vpop.f32.mrf.mxu1  ;;  %v1906_v51 = vadd.f32 %v1905_v45, %v1865_v48  ;;  %v2074_v33 = vmax.f32 %v1904_v47, 0.0  ;;  %v8096_v45 = vld [vmem:[%s9034_s5 + $0x48] sm:$0xff]   ;;  %v8099_v50 = vld [vmem:[%s9034_s5] sm:$0xff]  }
 0x1b1   :  { %v1867_v53 = vpop.f32.mrf.mxu0 }
 0x1b2   :  { %v1908_v54 = vpop.f32.mrf.mxu1  ;;  %v2075_v56 = vmax.f32 %v1906_v51, 0.0  ;;  %v2078_v58 = vpack.c.bf16 %v2074_v33, %v2074_v33  ;;  %v8100_v51 = vld [vmem:[#allocation6 + $0x70] ss:$8 sps:$4 sm:$0xff]   ;;  %v8102_v33 = vld [vmem:[#allocation6 + $0x74] ss:$8 sps:$4 sm:$0xff]  }
 0x1b3   :  { %v8105_v53 = vld [vmem:[#allocation6 + $0x64] ss:$8 sps:$4 sm:$0xff]   ;;  %2848 = vmatprep.subr.bf16.mxu1 %v8102_v33  ;;  %v8103_v54 = vld [vmem:[#allocation6 + $0x60] ss:$8 sps:$4 sm:$0xff]  }
 0x1b4   :  { %v2079_v36 = vpack.c.bf16 %v2075_v56, %v2075_v56  ;;  %v8106_v56 = vld [vmem:[#allocation6 + $0x50] ss:$8 sps:$4 sm:$0xff]  }
 0x1b5   :  { %v8202_v33 = vld [vmem:[#allocation7 + $0x140] ss:$16 sps:$4 sm:$0xff]  }
 0x1b6   :  { %2510 = vmatprep.mubr.bf16.mxu0 %v2079_v36  ;;  %v8109_v36 = vld [vmem:[#allocation6 + $0x40] ss:$8 sps:$4 sm:$0xff]  }
 0x1b7   :  { %2511 = vmatmul.mubr.bf16.vlgmr.msra.gmra.mxu0 %v2078_v58  ;;  %v8114_v58 = vld [vmem:[#allocation6 + $0x34] ss:$8 sps:$4 sm:$0xff]  }
 0x1b8   :  { %7544 = vmatpush3.bf16.msra.mxu0 %v8085_v4 }
 0x1b9   :  { %7545 = vmatprep.subr.bf16.mxu0 %v8086_v5 }
 0x1bc   :  { %7546 = vmatpush3.bf16.msra.mxu0 %v8087_v6 }
 0x1bd   :  { %7547 = vmatprep.subr.bf16.mxu0 %v8088_v7 }
 0x1c0   :  { %7548 = vmatpush3.bf16.msra.mxu0 %v8089_v10 }
 0x1c1   :  { %7549 = vmatprep.subr.bf16.mxu0 %v8090_v11 }
 0x1c4   :  { %7550 = vmatpush3.bf16.msra.mxu0 %v8091_v12 }
 0x1c5   :  { %7551 = vmatprep.subr.bf16.mxu0 %v8092_v13 }
 0x1c8   :  { %7552 = vmatpush3.bf16.msra.mxu0 %v8093_v14 }
 0x1c9   :  { %7553 = vmatprep.subr.bf16.mxu0 %v8094_v15  ;;  %v8120_v15 = vld [vmem:[#allocation6 + $0x14] ss:$8 sps:$4 sm:$0xff]  }
 0x1cc   :  { %7554 = vmatpush3.bf16.msra.mxu0 %v8095_v16  ;;  %v8118_v16 = vld [vmem:[#allocation6 + $0x10] ss:$8 sps:$4 sm:$0xff]  }
 0x1cd   :  { %7555 = vmatprep.subr.bf16.mxu0 %v8096_v45  ;;  %v8178_v45 = vld [vmem:[#allocation7 + $0x1c0] ss:$16 sps:$4 sm:$0xff]  }
 0x1d0   :  { %7556 = vmatpush3.bf16.msra.mxu0 %v8097_v46  ;;  %v8186_v46 = vld [vmem:[#allocation7 + $0x1a4] ss:$16 sps:$4 sm:$0xff]  }
 0x1d1   :  { %7557 = vmatprep.subr.bf16.mxu0 %v8098_v32  ;;  %v8190_v32 = vld [vmem:[#allocation7 + $0x180] ss:$16 sps:$4 sm:$0xff]  }
 0x1d4   :  { %7558 = vmatpush3.bf16.msra.mxu0 %v8099_v50  ;;  %v8198_v50 = vld [vmem:[#allocation7 + $0x164] ss:$16 sps:$4 sm:$0xff]  }
 0x1eb   :  { %v1944_v59 = vpop.f32.mrf.mxu0 }
 0x1ec   :  { %v1985_v60 = vpop.f32.mrf.mxu1  ;;  %v1945_v26 = vadd.f32 %v1944_v59, %v457_v22  ;;  %v8112_v59 = vld [vmem:[#allocation6 + $0x30] ss:$8 sps:$4 sm:$0xff]   ;;  %v8123_v22 = vld [vmem:[#allocation6 + $0x4] ss:$8 sps:$4 sm:$0xff]  }
 0x1ed   :  { %v1946_v61 = vpop.f32.mrf.mxu0 }
 0x1ee   :  { %v1987_v62 = vpop.f32.mrf.mxu1  ;;  %v1947_v27 = vadd.f32 %v1946_v61, %v461_v23  ;;  %v1986_v28 = vadd.f32 %v1985_v60, %v1945_v26  ;;  %v8117_v60 = vld [vmem:[#allocation6 + $0x24] ss:$8 sps:$4 sm:$0xff]   ;;  %v8115_v61 = vld [vmem:[#allocation6 + $0x20] ss:$8 sps:$4 sm:$0xff]   ;;  %v8662_v26 = vmov 0  }
 0x1ef   :  { %v1948_v63 = vpop.f32.mrf.mxu0  ;;  %v8121_v23 = vld [vmem:[#allocation6] ss:$8 sps:$4 sm:$0xff]  }
 0x1f0   :  { %v1989_v0 = vpop.f32.mrf.mxu1  ;;  %v1988_v34 = vadd.f32 %v1987_v62, %v1947_v27  ;;  %v2146_v62 = vld [vmem:[%s9033_s4] sm:$0x3] }
 0x1f1   :  { %v1949_v1 = vpop.f32.mrf.mxu0  ;;  %v2151_v63 = vrot.slane %v2146_v62, %v8866_v24  ;;  %v2155_v0 = vrot.slane %v2146_v62, %v8869_v25  ;;  %v8124_v27 = vld [vmem:[#allocation7 + $0xe0] ss:$16 sps:$4 sm:$0xff]   ;;  %v8133_v62 = vld [vmem:[#allocation7 + $0xc8] ss:$16 sps:$4 sm:$0xff]  }
 0x1f2   :  { %v1990_v2 = vpop.f32.mrf.mxu1 }
 0x22b   :  { %v2026_v29 = vpop.f32.mrf.mxu0 }
 0x22c   :  { %v2067_v31 = vpop.f32.mrf.mxu1  ;;  %v2027_v38 = vadd.f32 %v2026_v29, %v1986_v28  ;;  %v8126_v28 = vld [vmem:[#allocation7 + $0xe4] ss:$16 sps:$4 sm:$0xff]   ;;  %v8129_v29 = vld [vmem:[#allocation7 + $0xec] ss:$16 sps:$4 sm:$0xff]  }
 0x22d   :  { %v2028_v39 = vpop.f32.mrf.mxu0  ;;  %3299 = vmatprep.subr.bf16.mxu0 %v8126_v28  ;;  %v8201_v28 = vld [vmem:[#allocation7 + $0x16c] ss:$16 sps:$4 sm:$0xff]  }
 0x22e   :  { %v2069_v8 = vpop.f32.mrf.mxu1  ;;  %v2068_v49 = vadd.f32 %v2067_v31, %v2027_v38  ;;  %v2029_v9 = vadd.f32 %v2028_v39, %v1988_v34  ;;  %v8132_v31 = vld [vmem:[#allocation7 + $0xc4] ss:$16 sps:$4 sm:$0xff]   ;;  %v8130_v34 = vld [vmem:[#allocation7 + $0xc0] ss:$16 sps:$4 sm:$0xff]  }
 0x22f   :  { %v2030_v52 = vpop.f32.mrf.mxu0  ;;  %v8138_v38 = vld [vmem:[#allocation7 + $0xa4] ss:$16 sps:$4 sm:$0xff]   ;;  %v8136_v39 = vld [vmem:[#allocation7 + $0xa0] ss:$16 sps:$4 sm:$0xff]  }
 0x230   :  { %v2071_v41 = vpop.f32.mrf.mxu1  ;;  %v2070_v42 = vadd.f32 %v2069_v8, %v2029_v9  ;;  %v2076_v20 = vmax.f32 %v2068_v49, 0.0  ;;  %v8144_v8 = vld [vmem:[#allocation7 + $0x84] ss:$16 sps:$4 sm:$0xff]   ;;  %v8142_v49 = vld [vmem:[#allocation7 + $0x80] ss:$16 sps:$4 sm:$0xff]  }
 0x231   :  { %v2031_v21 = vpop.f32.mrf.mxu0  ;;  %v8150_v9 = vld [vmem:[#allocation7 + $0x64] ss:$16 sps:$4 sm:$0xff]   ;;  %v8148_v52 = vld [vmem:[#allocation7 + $0x60] ss:$16 sps:$4 sm:$0xff]  }
 0x232   :  { %v2072_v43 = vpop.f32.mrf.mxu1  ;;  %v2077_v44 = vmax.f32 %v2070_v42, 0.0  ;;  %v2080_v30 = vpack.c.bf16 %v2076_v20, %v2076_v20  ;;  %v8156_v41 = vld [vmem:[#allocation7 + $0x44] ss:$16 sps:$4 sm:$0xff]   ;;  %v8154_v42 = vld [vmem:[#allocation7 + $0x40] ss:$16 sps:$4 sm:$0xff]  }
 0x233   :  { %v8162_v20 = vld [vmem:[#allocation7 + $0x24] ss:$16 sps:$4 sm:$0xff]   ;;  %v8160_v21 = vld [vmem:[#allocation7 + $0x20] ss:$16 sps:$4 sm:$0xff]  }
 0x234   :  { %v2081_v37 = vpack.c.bf16 %v2077_v44, %v2077_v44  ;;  %v8168_v43 = vld [vmem:[#allocation7 + $0x4] ss:$16 sps:$4 sm:$0xff]   ;;  %v8166_v44 = vld [vmem:[#allocation7] ss:$16 sps:$4 sm:$0xff]  }
 0x236   :  { %2551 = vmatprep.mubr.bf16.mxu1 %v2081_v37  ;;  %v8174_v37 = vld [vmem:[#allocation7 + $0x1e4] ss:$16 sps:$4 sm:$0xff]  }
 0x237   :  { %2552 = vmatmul.mubr.bf16.vlgmr.msra.gmra.mxu1 %v2080_v30  ;;  %v8172_v30 = vld [vmem:[#allocation7 + $0x1e0] ss:$16 sps:$4 sm:$0xff]  }
 0x238   :  { %2849 = vmatpush1.bf16.msra.mxu1 %v8100_v51  ;;  %2880 = vmatprep.mubr.bf16.mxu1 %v8662_v26  ;;  %v8204_v51 = vld [vmem:[#allocation7 + $0x144] ss:$16 sps:$4 sm:$0xff]   ;;  %v8195_v26 = vld [vmem:[#allocation7 + $0x18c] ss:$16 sps:$4 sm:$0xff]  }
 0x239   :  { %2850 = vmatprep.subr.bf16.mxu1 %v8105_v53 }
 0x23c   :  { %2851 = vmatpush1.bf16.msra.mxu1 %v8103_v54  ;;  %v7013_v54 = vld [vmem:[%s9035_s6] ss:$0 sm:$0xff] }
 0x23d   :  { %2852 = vmatprep.subr.bf16.mxu1 %v8108_v55 }
 0x240   :  { %2853 = vmatpush1.bf16.msra.mxu1 %v8106_v56 }
 0x241   :  { %2854 = vmatprep.subr.bf16.mxu1 %v8111_v57 }
 0x244   :  { %2855 = vmatpush1.bf16.msra.mxu1 %v8109_v36 }
 0x245   :  { %2856 = vmatprep.subr.bf16.mxu1 %v8114_v58 }
 0x248   :  { %2857 = vmatpush1.bf16.msra.mxu1 %v8112_v59  ;;  %v8127_v59 = vld [vmem:[#allocation7 + $0xe8] ss:$16 sps:$4 sm:$0xff]  }
 0x249   :  { %2858 = vmatprep.subr.bf16.mxu1 %v8117_v60 }
 0x24c   :  { %2859 = vmatpush1.bf16.msra.mxu1 %v8115_v61  ;;  %v8135_v61 = vld [vmem:[#allocation7 + $0xcc] ss:$16 sps:$4 sm:$0xff]  }
 0x24d   :  { %2860 = vmatprep.subr.bf16.mxu1 %v8120_v15  ;;  %v8183_v15 = vld [vmem:[#allocation7 + $0x1cc] ss:$16 sps:$4 sm:$0xff]  }
 0x250   :  { %2861 = vmatpush1.bf16.msra.mxu1 %v8118_v16  ;;  %v8181_v16 = vld [vmem:[#allocation7 + $0x1c8] ss:$16 sps:$4 sm:$0xff]  }
 0x251   :  { %2862 = vmatprep.subr.bf16.mxu1 %v8123_v22  ;;  %v8189_v22 = vld [vmem:[#allocation7 + $0x1ac] ss:$16 sps:$4 sm:$0xff]  }
 0x254   :  { %2863 = vmatpush1.bf16.msra.mxu1 %v8121_v23  ;;  %v8187_v23 = vld [vmem:[#allocation7 + $0x1a8] ss:$16 sps:$4 sm:$0xff]  }
 0x255   :  { %3340 = vmatprep.subr.bf16.mxu1 %v8129_v29  ;;  %v8199_v29 = vld [vmem:[#allocation7 + $0x168] ss:$16 sps:$4 sm:$0xff]  }
 0x277   :  { %v2512_v40 = vpop.f32.mrf.mxu0 }
 0x278   :  { %v2513_v1 = vadd.f32 %v2512_v40, %v2151_v63  ;;  %v8180_v40 = vld [vmem:[#allocation7 + $0x1c4] ss:$16 sps:$4 sm:$0xff]   ;;  %v8141_v63 = vld [vmem:[#allocation7 + $0xac] ss:$16 sps:$4 sm:$0xff]  }
 0x279   :  { %v2514_v47 = vpop.f32.mrf.mxu0 }
 0x27a   :  { %v2515_v3 = vadd.f32 %v2514_v47, %v2155_v0  ;;  %v8184_v47 = vld [vmem:[#allocation7 + $0x1a0] ss:$16 sps:$4 sm:$0xff]   ;;  %v8139_v0 = vld [vmem:[#allocation7 + $0xa8] ss:$16 sps:$4 sm:$0xff]  }
 0x27b   :  { %v2516_v48 = vpop.f32.mrf.mxu0 }
 0x27c   :  { %v8192_v48 = vld [vmem:[#allocation7 + $0x184] ss:$16 sps:$4 sm:$0xff]  }
 0x27d   :  { %v2517_v35 = vpop.f32.mrf.mxu0 }
 0x27e   :  { %v8196_v35 = vld [vmem:[#allocation7 + $0x160] ss:$16 sps:$4 sm:$0xff]  }
 0x2f7   :  { %v2553_v2 = vpop.f32.mrf.mxu1 }
 0x2f8   :  { %v2554_v4 = vadd.f32 %v2553_v2, %v2513_v1  ;;  %v8147_v1 = vld [vmem:[#allocation7 + $0x8c] ss:$16 sps:$4 sm:$0xff]   ;;  %v8145_v2 = vld [vmem:[#allocation7 + $0x88] ss:$16 sps:$4 sm:$0xff]  }
 0x2f9   :  { %v2555_v5 = vpop.f32.mrf.mxu1 }
 0x2fa   :  { %v2556_v6 = vadd.f32 %v2555_v5, %v2515_v3  ;;  %v2560_v7 = vmax.f32 %v2554_v4, 0.0  ;;  %v8153_v3 = vld [vmem:[#allocation7 + $0x6c] ss:$16 sps:$4 sm:$0xff]   ;;  %v8151_v4 = vld [vmem:[#allocation7 + $0x68] ss:$16 sps:$4 sm:$0xff]  }
 0x2fb   :  { %v2557_v10 = vpop.f32.mrf.mxu1  ;;  %v8159_v5 = vld [vmem:[#allocation7 + $0x4c] ss:$16 sps:$4 sm:$0xff]  }
 0x2fc   :  { %v2561_v11 = vmax.f32 %v2556_v6, 0.0  ;;  %v2562_v14 = vpack.c.bf16 %v2560_v7, %v2560_v7  ;;  %v8157_v6 = vld [vmem:[#allocation7 + $0x48] ss:$16 sps:$4 sm:$0xff]   ;;  %v8165_v7 = vld [vmem:[#allocation7 + $0x2c] ss:$16 sps:$4 sm:$0xff]  }
 0x2fd   :  { %v2558_v12 = vpop.f32.mrf.mxu1  ;;  %v8163_v10 = vld [vmem:[#allocation7 + $0x28] ss:$16 sps:$4 sm:$0xff]  }
 0x2fe   :  { %v2563_v13 = vpack.c.bf16 %v2561_v11, %v2561_v11  ;;  %v8171_v11 = vld [vmem:[#allocation7 + $0xc] ss:$16 sps:$4 sm:$0xff]   ;;  %v8169_v12 = vld [vmem:[#allocation7 + $0x8] ss:$16 sps:$4 sm:$0xff]  }
 0x300   :  { %2731 = vmatprep.mubr.bf16.mxu0 %v2563_v13  ;;  %v8177_v13 = vld [vmem:[#allocation7 + $0x1ec] ss:$16 sps:$4 sm:$0xff]  }
 0x301   :  { %2732 = vmatmul.mubr.bf16.vlgmr.msra.gmra.mxu0 %v2562_v14  ;;  %v8175_v14 = vld [vmem:[#allocation7 + $0x1e8] ss:$16 sps:$4 sm:$0xff]  }
 0x302   :  { %3300 = vmatpush1.bf16.msra.mxu0 %v8124_v27  ;;  %v8193_v27 = vld [vmem:[#allocation7 + $0x188] ss:$16 sps:$4 sm:$0xff]  }
 0x303   :  { %3301 = vmatprep.subr.bf16.mxu0 %v8132_v31  ;;  %v8207_v31 = vld [vmem:[#allocation7 + $0x14c] ss:$16 sps:$4 sm:$0xff]  }
 0x306   :  { %3302 = vmatpush1.bf16.msra.mxu0 %v8130_v34  ;;  %v8205_v34 = vld [vmem:[#allocation7 + $0x148] ss:$16 sps:$4 sm:$0xff]  }
 0x307   :  { %3303 = vmatprep.subr.bf16.mxu0 %v8138_v38  ;;  %v8210_v38 = vld [vmem:[#allocation7 + $0x124] ss:$16 sps:$4 sm:$0xff]  }
 0x30a   :  { %3304 = vmatpush1.bf16.msra.mxu0 %v8136_v39  ;;  %v8213_v39 = vld [vmem:[#allocation7 + $0x12c] ss:$16 sps:$4 sm:$0xff]  }
 0x30b   :  { %3305 = vmatprep.subr.bf16.mxu0 %v8144_v8  ;;  %v8208_v8 = vld [vmem:[#allocation7 + $0x120] ss:$16 sps:$4 sm:$0xff]  }
 0x30e   :  { %3306 = vmatpush1.bf16.msra.mxu0 %v8142_v49  ;;  %v8211_v49 = vld [vmem:[#allocation7 + $0x128] ss:$16 sps:$4 sm:$0xff]  }
 0x30f   :  { %3307 = vmatprep.subr.bf16.mxu0 %v8150_v9  ;;  %v8216_v9 = vld [vmem:[#allocation7 + $0x104] ss:$16 sps:$4 sm:$0xff]  }
 0x312   :  { %3308 = vmatpush1.bf16.msra.mxu0 %v8148_v52  ;;  %v8219_v52 = vld [vmem:[#allocation7 + $0x10c] ss:$16 sps:$4 sm:$0xff]  }
 0x313   :  { %3309 = vmatprep.subr.bf16.mxu0 %v8156_v41  ;;  %v8214_v41 = vld [vmem:[#allocation7 + $0x100] ss:$16 sps:$4 sm:$0xff]  }
 0x316   :  { %3310 = vmatpush1.bf16.msra.mxu0 %v8154_v42  ;;  %v8217_v42 = vld [vmem:[#allocation7 + $0x108] ss:$16 sps:$4 sm:$0xff]  }
 0x317   :  { %3311 = vmatprep.subr.bf16.mxu0 %v8162_v20  ;;  %v3445_v20 = vld [vmem:[#allocation9 + $0x1c0] sm:$0xff] }
 0x31a   :  { %3312 = vmatpush1.bf16.msra.mxu0 %v8160_v21  ;;  %v3449_v21 = vld [vmem:[#allocation9 + $0x1e0] sm:$0xff] }
 0x31b   :  { %3313 = vmatprep.subr.bf16.mxu0 %v8168_v43  ;;  %v3573_v43 = vld [vmem:[#allocation9 + $0x5c0] sm:$0xff] }
 0x31e   :  { %3314 = vmatpush1.bf16.msra.mxu0 %v8166_v44  ;;  %v7166_v44 = vcombine.low %v3445_v20, %v3449_v21 }
 0x31f   :  { %3315 = vmatprep.subr.bf16.mxu0 %v8174_v37  ;;  %v7167_v37 = vcombine.high %v3445_v20, %v3449_v21  ;;  %v3397_v20 = vld [vmem:[#allocation9 + $0x40] sm:$0xff] }
 0x320   :  { %v3401_v21 = vld [vmem:[#allocation9 + $0x60] sm:$0xff] }
 0x322   :  { %3316 = vmatpush2.bf16.msra.mxu0 %v8172_v30  ;;  %v3577_v30 = vld [vmem:[#allocation9 + $0x5e0] sm:$0xff] }
 0x323   :  { %3317 = vmatprep.subr.bf16.mxu0 %v8180_v40  ;;  %v7294_v40 = vcombine.low %v3573_v43, %v3577_v30 }
 0x326   :  { %3318 = vmatpush2.bf16.msra.mxu0 %v8178_v45  ;;  %v7295_v45 = vcombine.high %v3573_v43, %v3577_v30  ;;  %v3525_v43 = vld [vmem:[#allocation9 + $0x440] sm:$0xff] }
 0x327   :  { %3319 = vmatprep.subr.bf16.mxu0 %v8186_v46  ;;  %v2756_v46 = vld [vmem:[%s9037_s8] sm:$0x3] }
 0x32a   :  { %3320 = vmatpush2.bf16.msra.mxu0 %v8184_v47  ;;  %v2761_v47 = vrot.slane %v2756_v46, %v8866_v24 }
 0x32b   :  { %3321 = vmatprep.subr.bf16.mxu0 %v8192_v48  ;;  %v2765_v48 = vrot.slane %v2756_v46, %v8869_v25  ;;  %v3389_v46 = vld [vmem:[#allocation9] sm:$0xff] }
 0x32e   :  { %3322 = vmatpush2.bf16.msra.mxu0 %v8190_v32 }
 0x32f   :  { %3323 = vmatprep.subr.bf16.mxu0 %v8198_v50 }
 0x332   :  { %3324 = vmatpush2.bf16.msra.mxu0 %v8196_v35 }
 0x333   :  { %3325 = vmatprep.subr.bf16.mxu0 %v8204_v51 }
 0x336   :  { %3326 = vmatpush2.bf16.msra.mxu0 %v8202_v33 }
 0x337   :  { %3327 = vmatprep.subr.bf16.mxu0 %v8210_v38  ;;  %v3405_v38 = vld [vmem:[#allocation9 + $0x80] sm:$0xff] }
 0x33a   :  { %3328 = vmatpush2.bf16.msra.mxu0 %v8208_v8  ;;  %v3533_v8 = vld [vmem:[#allocation9 + $0x480] sm:$0xff] }
 0x33b   :  { %3329 = vmatprep.subr.bf16.mxu0 %v8216_v9 }
 0x33e   :  { %3330 = vmatpush2.bf16.msra.mxu0 %v8214_v41 }
 0x33f   :  { %4967 = vmatprep.subr.bf16.mxu0 %v7167_v37 }
 0x3c1   :  { %v7559_v53 = vpop.f32.mrf.mxu0 }
 0x3c3   :  { %v7560_v55 = vpop.f32.mrf.mxu0 }
 0x3c4   :  { %v7561_v56 = vadd.f32 %v7560_v55, %v7559_v53 }
 0x3c5   :  { %v7562_v57 = vpop.f32.mrf.mxu0 }
 0x3c6   :  { %v2734_v36 = vadd.f32 %v7561_v56, %v7013_v54  ;;  %v3437_v54 = vld [vmem:[#allocation9 + $0x180] sm:$0xff] }
 0x3c7   :  { %v7563_v58 = vpop.f32.mrf.mxu0  ;;  %v3441_v56 = vld [vmem:[#allocation9 + $0x1a0] sm:$0xff] }
 0x3c8   :  { %v2739_v60 = vpack.c.bf16 %v2734_v36, %v2734_v36  ;;  %v3565_v57 = vld [vmem:[#allocation9 + $0x580] sm:$0xff] }
 0x3c9   :  { %v3569_v36 = vld [vmem:[#allocation9 + $0x5a0] sm:$0xff] }
 0x3ca   :  { %2881 = vmatmul.mubr.bf16.vlgmr.msra.gmra.mxu1 %v2739_v60 }
 0x3cb   :  { %3341 = vmatpush1.bf16.msra.mxu1 %v8127_v59 }
 0x3cc   :  { %3342 = vmatprep.subr.bf16.mxu1 %v8135_v61  ;;  %v7159_v61 = vcombine.high %v3437_v54, %v3441_v56 }
 0x3cf   :  { %3343 = vmatpush1.bf16.msra.mxu1 %v8133_v62  ;;  %v7287_v62 = vcombine.high %v3565_v57, %v3569_v36 }
 0x3d0   :  { %3344 = vmatprep.subr.bf16.mxu1 %v8141_v63  ;;  %v3429_v63 = vld [vmem:[#allocation9 + $0x140] sm:$0xff] }
 0x3d3   :  { %3345 = vmatpush1.bf16.msra.mxu1 %v8139_v0  ;;  %v3433_v0 = vld [vmem:[#allocation9 + $0x160] sm:$0xff] }
 0x3d4   :  { %3346 = vmatprep.subr.bf16.mxu1 %v8147_v1  ;;  %v3557_v1 = vld [vmem:[#allocation9 + $0x540] sm:$0xff] }
 0x3d7   :  { %3347 = vmatpush1.bf16.msra.mxu1 %v8145_v2  ;;  %v3561_v2 = vld [vmem:[#allocation9 + $0x560] sm:$0xff] }
 0x3d8   :  { %3348 = vmatprep.subr.bf16.mxu1 %v8153_v3  ;;  %v7158_v3 = vcombine.low %v3437_v54, %v3441_v56  ;;  %v3513_v54 = vld [vmem:[#allocation9 + $0x3e0] sm:$0xff] }
 0x3d9   :  { %v3641_v56 = vld [vmem:[#allocation9 + $0x7e0] sm:$0xff] }
 0x3db   :  { %3349 = vmatpush1.bf16.msra.mxu1 %v8151_v4  ;;  %v7286_v4 = vcombine.low %v3565_v57, %v3569_v36 }
 0x3dc   :  { %3350 = vmatprep.subr.bf16.mxu1 %v8159_v5  ;;  %v7151_v5 = vcombine.high %v3429_v63, %v3433_v0 }
 0x3df   :  { %3351 = vmatpush1.bf16.msra.mxu1 %v8157_v6  ;;  %v7279_v6 = vcombine.high %v3557_v1, %v3561_v2 }
 0x3e0   :  { %3352 = vmatprep.subr.bf16.mxu1 %v8165_v7  ;;  %v3421_v7 = vld [vmem:[#allocation9 + $0x100] sm:$0xff] }
 0x3e3   :  { %3353 = vmatpush1.bf16.msra.mxu1 %v8163_v10  ;;  %v3425_v10 = vld [vmem:[#allocation9 + $0x120] sm:$0xff] }
 0x3e4   :  { %3354 = vmatprep.subr.bf16.mxu1 %v8171_v11  ;;  %v3549_v11 = vld [vmem:[#allocation9 + $0x500] sm:$0xff] }
 0x3e7   :  { %3355 = vmatpush1.bf16.msra.mxu1 %v8169_v12  ;;  %v3553_v12 = vld [vmem:[#allocation9 + $0x520] sm:$0xff] }
 0x3e8   :  { %3356 = vmatprep.subr.bf16.mxu1 %v8177_v13  ;;  %v7150_v13 = vcombine.low %v3429_v63, %v3433_v0  ;;  %v3633_v63 = vld [vmem:[#allocation9 + $0x7a0] sm:$0xff] }
 0x3eb   :  { %3357 = vmatpush2.bf16.msra.mxu1 %v8175_v14  ;;  %v7278_v14 = vcombine.low %v3557_v1, %v3561_v2 }
 0x3ec   :  { %3358 = vmatprep.subr.bf16.mxu1 %v8183_v15  ;;  %v7143_v15 = vcombine.high %v3421_v7, %v3425_v10 }
 0x3ef   :  { %3359 = vmatpush2.bf16.msra.mxu1 %v8181_v16  ;;  %v7271_v16 = vcombine.high %v3549_v11, %v3553_v12 }
 0x3f0   :  { %3360 = vmatprep.subr.bf16.mxu1 %v8189_v22  ;;  %v3413_v22 = vld [vmem:[#allocation9 + $0xc0] sm:$0xff] }
 0x3f3   :  { %3361 = vmatpush2.bf16.msra.mxu1 %v8187_v23  ;;  %v3417_v23 = vld [vmem:[#allocation9 + $0xe0] sm:$0xff] }
 0x3f4   :  { %3362 = vmatprep.subr.bf16.mxu1 %v8195_v26  ;;  %v3541_v26 = vld [vmem:[#allocation9 + $0x4c0] sm:$0xff]  ;;  %v7134_v9 = vcombine.low %v3413_v22, %v3417_v23 }
 0x3f7   :  { %3363 = vmatpush2.bf16.msra.mxu1 %v8193_v27  ;;  %v3545_v27 = vld [vmem:[#allocation9 + $0x4e0] sm:$0xff] }
 0x3f8   :  { %3364 = vmatprep.subr.bf16.mxu1 %v8201_v28  ;;  %v7142_v28 = vcombine.low %v3421_v7, %v3425_v10  ;;  %v3625_v7 = vld [vmem:[#allocation9 + $0x760] sm:$0xff] }
 0x3fb   :  { %3365 = vmatpush2.bf16.msra.mxu1 %v8199_v29  ;;  %v7270_v29 = vcombine.low %v3549_v11, %v3553_v12 }
 0x3fc   :  { %3366 = vmatprep.subr.bf16.mxu1 %v8207_v31  ;;  %v7135_v31 = vcombine.high %v3413_v22, %v3417_v23  ;;  %v3617_v22 = vld [vmem:[#allocation9 + $0x720] sm:$0xff] }
 0x3ff   :  { %3367 = vmatpush2.bf16.msra.mxu1 %v8205_v34  ;;  %v7263_v34 = vcombine.high %v3541_v26, %v3545_v27 }
 0x400   :  { %3368 = vmatprep.subr.bf16.mxu1 %v8213_v39  ;;  %v3409_v39 = vld [vmem:[#allocation9 + $0xa0] sm:$0xff] }
 0x401   :  { %v7127_v41 = vcombine.high %v3405_v38, %v3409_v39  ;;  %v7126_v37 = vcombine.low %v3405_v38, %v3409_v39  ;;  %v3609_v38 = vld [vmem:[#allocation9 + $0x6e0] sm:$0xff] }
 0x403   :  { %3369 = vmatpush2.bf16.msra.mxu1 %v8211_v49  ;;  %v3537_v49 = vld [vmem:[#allocation9 + $0x4a0] sm:$0xff] }
 0x404   :  { %3370 = vmatprep.subr.bf16.mxu1 %v8219_v52  ;;  %v7262_v52 = vcombine.low %v3541_v26, %v3545_v27  ;;  %v7254_v30 = vcombine.low %v3533_v8, %v3537_v49 }
 0x407   :  { %3371 = vmatpush2.bf16.msra.mxu1 %v8217_v42  ;;  %v7255_v42 = vcombine.high %v3533_v8, %v3537_v49 }
 0x408   :  { %5008 = vmatprep.subr.bf16.mxu1 %v7295_v45 }
 0x48a   :  { %v2882_v32 = vpop.f32.mrf.mxu1 }
 0x48b   :  { %v2883_v50 = vadd.f32 %v2882_v32, %v2761_v47  ;;  %v3393_v47 = vld [vmem:[#allocation9 + $0x20] sm:$0xff] }
 0x48c   :  { %v2884_v35 = vpop.f32.mrf.mxu1  ;;  %v3521_v32 = vld [vmem:[#allocation9 + $0x420] sm:$0xff]  ;;  %v7110_v57 = vcombine.low %v3389_v46, %v3393_v47 }
 0x48d   :  { %v2885_v51 = vadd.f32 %v2884_v35, %v2765_v48  ;;  %v2889_v33 = vmax.f32 %v2883_v50, 0.0  ;;  %v3517_v48 = vld [vmem:[#allocation9 + $0x400] sm:$0xff]  ;;  %v7118_v50 = vcombine.low %v3397_v20, %v3401_v21 }
 0x48e   :  { %v2886_v53 = vpop.f32.mrf.mxu1  ;;  %v7238_v36 = vcombine.low %v3517_v48, %v3521_v32 }
 0x48f   :  { %v2890_v55 = vmax.f32 %v2885_v51, 0.0  ;;  %v2891_v60 = vpack.c.bf16 %v2889_v33, %v2889_v33  ;;  %v7111_v51 = vcombine.high %v3389_v46, %v3393_v47  ;;  %v7239_v33 = vcombine.high %v3517_v48, %v3521_v32  ;;  %v3509_v53 = vld [vmem:[#allocation9 + $0x3c0] sm:$0xff] }
 0x490   :  { %v2887_v58 = vpop.f32.mrf.mxu1  ;;  %v7230_v0 = vcombine.low %v3509_v53, %v3513_v54  ;;  %v3465_v46 = vld [vmem:[#allocation9 + $0x260] sm:$0xff] }
 0x491   :  { %v2892_v59 = vpack.c.bf16 %v2890_v55, %v2890_v55  ;;  %v3637_v55 = vld [vmem:[#allocation9 + $0x7c0] sm:$0xff]  ;;  %v7231_v58 = vcombine.high %v3509_v53, %v3513_v54 }
 0x492   :  { %v7358_v1 = vcombine.low %v3637_v55, %v3641_v56  ;;  %v3589_v47 = vld [vmem:[#allocation9 + $0x640] sm:$0xff] }
 0x493   :  { %3331 = vmatprep.mubr.bf16.mxu0 %v2892_v59  ;;  %3372 = vmatprep.mubr.bf16.mxu1 %v2892_v59  ;;  %v7359_v59 = vcombine.high %v3637_v55, %v3641_v56  ;;  %v3593_v32 = vld [vmem:[#allocation9 + $0x660] sm:$0xff] }
 0x494   :  { %3332 = vmatmul.mubr.bf16.vlgmr.msra.gmra.mxu0 %v2891_v60  ;;  %3373 = vmatmul.mubr.bf16.vlgmr.msra.gmra.mxu1 %v2891_v60  ;;  %v3501_v60 = vld [vmem:[#allocation9 + $0x380] sm:$0xff] }
 0x495   :  { %4968 = vmatpush1.bf16.msra.mxu0 %v7166_v44  ;;  %5009 = vmatpush1.bf16.msra.mxu1 %v7294_v40  ;;  %v3529_v44 = vld [vmem:[#allocation9 + $0x460] sm:$0xff]  ;;  %v7119_v40 = vcombine.high %v3397_v20, %v3401_v21 }
 0x496   :  { %4969 = vmatprep.subr.bf16.mxu0 %v7159_v61  ;;  %5010 = vmatprep.subr.bf16.mxu1 %v7287_v62  ;;  %v7247_v45 = vcombine.high %v3525_v43, %v3529_v44  ;;  %v7246_v35 = vcombine.low %v3525_v43, %v3529_v44  ;;  %v3505_v61 = vld [vmem:[#allocation9 + $0x3a0] sm:$0xff] }
 0x497   :  { %v3629_v62 = vld [vmem:[#allocation9 + $0x780] sm:$0xff]  ;;  %v7223_v2 = vcombine.high %v3501_v60, %v3505_v61  ;;  %v7222_v10 = vcombine.low %v3501_v60, %v3505_v61  ;;  %v3450_v60 = vld [vmem:[#allocation9 + $0x1e8] sm:$0xff] }
 0x498   :  { %v7350_v11 = vcombine.low %v3629_v62, %v3633_v63  ;;  %v3601_v20 = vld [vmem:[#allocation9 + $0x6a0] sm:$0xff]  ;;  %v3574_v61 = vld [vmem:[#allocation9 + $0x5c8] sm:$0xff] }
 0x499   :  { %4970 = vmatpush1.bf16.msra.mxu0 %v7158_v3  ;;  %5011 = vmatpush1.bf16.msra.mxu1 %v7286_v4  ;;  %v7351_v3 = vcombine.high %v3629_v62, %v3633_v63  ;;  %v3493_v4 = vld [vmem:[#allocation9 + $0x340] sm:$0xff]  ;;  %v3578_v63 = vld [vmem:[#allocation9 + $0x5e8] sm:$0xff] }
 0x49a   :  { %4971 = vmatprep.subr.bf16.mxu0 %v7151_v5  ;;  %5012 = vmatprep.subr.bf16.mxu1 %v7279_v6  ;;  %v3497_v5 = vld [vmem:[#allocation9 + $0x360] sm:$0xff] }
 0x49b   :  { %v3621_v6 = vld [vmem:[#allocation9 + $0x740] sm:$0xff]  ;;  %v7215_v12 = vcombine.high %v3493_v4, %v3497_v5  ;;  %v7214_v23 = vcombine.low %v3493_v4, %v3497_v5 }
 0x49c   :  { %v7342_v26 = vcombine.low %v3621_v6, %v3625_v7  ;;  %v3457_v53 = vld [vmem:[#allocation9 + $0x220] sm:$0xff] }
 0x49d   :  { %4972 = vmatpush1.bf16.msra.mxu0 %v7150_v13  ;;  %5013 = vmatpush1.bf16.msra.mxu1 %v7278_v14  ;;  %v7343_v13 = vcombine.high %v3621_v6, %v3625_v7  ;;  %v3485_v14 = vld [vmem:[#allocation9 + $0x300] sm:$0xff] }
 0x49e   :  { %4973 = vmatprep.subr.bf16.mxu0 %v7143_v15  ;;  %5014 = vmatprep.subr.bf16.mxu1 %v7271_v16  ;;  %v3489_v15 = vld [vmem:[#allocation9 + $0x320] sm:$0xff] }
 0x49f   :  { %v3613_v16 = vld [vmem:[#allocation9 + $0x700] sm:$0xff]  ;;  %v7207_v27 = vcombine.high %v3485_v14, %v3489_v15  ;;  %v7206_v39 = vcombine.low %v3485_v14, %v3489_v15 }
 0x4a0   :  { %v7334_v8 = vcombine.low %v3613_v16, %v3617_v22  ;;  %v3581_v54 = vld [vmem:[#allocation9 + $0x600] sm:$0xff] }
 0x4a1   :  { %4974 = vmatpush1.bf16.msra.mxu0 %v7142_v28  ;;  %5015 = vmatpush1.bf16.msra.mxu1 %v7270_v29  ;;  %v7335_v28 = vcombine.high %v3613_v16, %v3617_v22  ;;  %v3477_v29 = vld [vmem:[#allocation9 + $0x2c0] sm:$0xff] }
 0x4a2   :  { %4975 = vmatprep.subr.bf16.mxu0 %v7135_v31  ;;  %5016 = vmatprep.subr.bf16.mxu1 %v7263_v34  ;;  %v3481_v31 = vld [vmem:[#allocation9 + $0x2e0] sm:$0xff] }
 0x4a3   :  { %v3605_v34 = vld [vmem:[#allocation9 + $0x6c0] sm:$0xff]  ;;  %v7199_v49 = vcombine.high %v3477_v29, %v3481_v31  ;;  %v7198_v21 = vcombine.low %v3477_v29, %v3481_v31 }
 0x4a4   :  { %v7326_v43 = vcombine.low %v3605_v34, %v3609_v38  ;;  %v3585_v56 = vld [vmem:[#allocation9 + $0x620] sm:$0xff] }
 0x4a5   :  { %4976 = vmatpush1.bf16.msra.mxu0 %v7134_v9  ;;  %5017 = vmatpush1.bf16.msra.mxu1 %v7262_v52  ;;  %v7327_v9 = vcombine.high %v3605_v34, %v3609_v38  ;;  %v3469_v52 = vld [vmem:[#allocation9 + $0x280] sm:$0xff]  ;;  %v3438_v34 = vld [vmem:[#allocation9 + $0x188] sm:$0xff] }
 0x4a6   :  { %4977 = vmatprep.subr.bf16.mxu0 %v7127_v41  ;;  %5018 = vmatprep.subr.bf16.mxu1 %v7255_v42  ;;  %v3473_v41 = vld [vmem:[#allocation9 + $0x2a0] sm:$0xff] }
 0x4a7   :  { %v3597_v42 = vld [vmem:[#allocation9 + $0x680] sm:$0xff]  ;;  %v7191_v44 = vcombine.high %v3469_v52, %v3473_v41 }
 0x4a9   :  { %4978 = vmatpush1.bf16.msra.mxu0 %v7126_v37  ;;  %5019 = vmatpush1.bf16.msra.mxu1 %v7254_v30  ;;  %v7319_v37 = vcombine.high %v3597_v42, %v3601_v20  ;;  %v7190_v30 = vcombine.low %v3469_v52, %v3473_v41 }
 0x4aa   :  { %4979 = vmatprep.subr.bf16.mxu0 %v7119_v40  ;;  %5020 = vmatprep.subr.bf16.mxu1 %v7247_v45  ;;  %v7318_v40 = vcombine.low %v3597_v42, %v3601_v20  ;;  %v3461_v45 = vld [vmem:[#allocation9 + $0x240] sm:$0xff] }
 0x4ab   :  { %v7183_v48 = vcombine.high %v3461_v45, %v3465_v46 }
 0x4ad   :  { %4980 = vmatpush1.bf16.msra.mxu0 %v7118_v50  ;;  %5021 = vmatpush1.bf16.msra.mxu1 %v7246_v35  ;;  %v7182_v50 = vcombine.low %v3461_v45, %v3465_v46  ;;  %v7310_v35 = vcombine.low %v3589_v47, %v3593_v32 }
 0x4ae   :  { %4981 = vmatprep.subr.bf16.mxu0 %v7111_v51  ;;  %5022 = vmatprep.subr.bf16.mxu1 %v7239_v33  ;;  %v7311_v51 = vcombine.high %v3589_v47, %v3593_v32  ;;  %v3453_v33 = vld [vmem:[#allocation9 + $0x200] sm:$0xff]  ;;  %v3422_v32 = vld [vmem:[#allocation9 + $0x108] sm:$0xff] }
 0x4af   :  { %v7175_v55 = vcombine.high %v3453_v33, %v3457_v53 }
 0x4b1   :  { %4982 = vmatpush1.bf16.msra.mxu0 %v7110_v57  ;;  %5023 = vmatpush1.bf16.msra.mxu1 %v7238_v36  ;;  %v7174_v57 = vcombine.low %v3453_v33, %v3457_v53  ;;  %v7302_v36 = vcombine.low %v3581_v54, %v3585_v56 }
 0x4b2   :  { %4983 = vmatprep.subr.bf16.mxu0 %v7231_v58  ;;  %5024 = vmatprep.subr.bf16.mxu1 %v7359_v59  ;;  %v7303_v58 = vcombine.high %v3581_v54, %v3585_v56  ;;  %v3446_v59 = vld [vmem:[#allocation9 + $0x1c8] sm:$0xff] }
 0x4b3   :  { %v7169_v62 = vcombine.high %v3446_v59, %v3450_v60  ;;  %v3414_v56 = vld [vmem:[#allocation9 + $0xc8] sm:$0xff] }
 0x4b5   :  { %4984 = vmatpush2.bf16.msra.mxu0 %v7230_v0  ;;  %5025 = vmatpush2.bf16.msra.mxu1 %v7358_v1  ;;  %v7168_v0 = vcombine.low %v3446_v59, %v3450_v60  ;;  %v7296_v1 = vcombine.low %v3574_v61, %v3578_v63 }
 0x4b6   :  { %4985 = vmatprep.subr.bf16.mxu0 %v7223_v2  ;;  %5026 = vmatprep.subr.bf16.mxu1 %v7351_v3  ;;  %v7297_v2 = vcombine.high %v3574_v61, %v3578_v63  ;;  %v2957_v3 = vld [vmem:[%s9039_s10] sm:$0xf]  ;;  %v3406_v63 = vld [vmem:[#allocation9 + $0x88] sm:$0xff] }
 0x4b7   :  { %v2962_v4 = vrot.slane %v2957_v3, %v8866_v24  ;;  %v2970_v5 = vrot.slane %v2957_v3, %v8921_v18  ;;  %v2966_v6 = vrot.slane %v2957_v3, %v8869_v25  ;;  %v2974_v7 = vrot.slane %v2957_v3, %v8924_v19 }
 0x4b9   :  { %4986 = vmatpush2.bf16.msra.mxu0 %v7222_v10  ;;  %5027 = vmatpush2.bf16.msra.mxu1 %v7350_v11 }
 0x4ba   :  { %4987 = vmatprep.subr.bf16.mxu0 %v7215_v12  ;;  %5028 = vmatprep.subr.bf16.mxu1 %v7343_v13 }
 0x4bd   :  { %4988 = vmatpush2.bf16.msra.mxu0 %v7214_v23  ;;  %5029 = vmatpush2.bf16.msra.mxu1 %v7342_v26 }
 0x4be   :  { %4989 = vmatprep.subr.bf16.mxu0 %v7207_v27  ;;  %5030 = vmatprep.subr.bf16.mxu1 %v7335_v28 }
 0x4c1   :  { %4990 = vmatpush2.bf16.msra.mxu0 %v7206_v39  ;;  %5031 = vmatpush2.bf16.msra.mxu1 %v7334_v8  ;;  %v3442_v8 = vld [vmem:[#allocation9 + $0x1a8] sm:$0xff] }
 0x4c2   :  { %4991 = vmatprep.subr.bf16.mxu0 %v7199_v49  ;;  %5032 = vmatprep.subr.bf16.mxu1 %v7327_v9  ;;  %v3566_v49 = vld [vmem:[#allocation9 + $0x588] sm:$0xff]  ;;  %v7160_v45 = vcombine.low %v3438_v34, %v3442_v8 }
 0x4c3   :  { %v3570_v9 = vld [vmem:[#allocation9 + $0x5a8] sm:$0xff] }
 0x4c4   :  { %v7288_v46 = vcombine.low %v3566_v49, %v3570_v9 }
 0x4c5   :  { %4992 = vmatpush2.bf16.msra.mxu0 %v7198_v21  ;;  %5033 = vmatpush2.bf16.msra.mxu1 %v7326_v43  ;;  %v3430_v21 = vld [vmem:[#allocation9 + $0x148] sm:$0xff]  ;;  %v7161_v43 = vcombine.high %v3438_v34, %v3442_v8 }
 0x4c6   :  { %4993 = vmatprep.subr.bf16.mxu0 %v7191_v44  ;;  %5034 = vmatprep.subr.bf16.mxu1 %v7319_v37  ;;  %v7289_v44 = vcombine.high %v3566_v49, %v3570_v9  ;;  %v3434_v37 = vld [vmem:[#allocation9 + $0x168] sm:$0xff] }
 0x4c7   :  { %v7153_v47 = vcombine.high %v3430_v21, %v3434_v37  ;;  %v7152_v33 = vcombine.low %v3430_v21, %v3434_v37  ;;  %v3638_v8 = vld [vmem:[#allocation9 + $0x7c8] sm:$0xff] }
 0x4c8   :  { %v3642_v49 = vld [vmem:[#allocation9 + $0x7e8] sm:$0xff] }
 0x4c9   :  { %4994 = vmatpush2.bf16.msra.mxu0 %v7190_v30  ;;  %5035 = vmatpush2.bf16.msra.mxu1 %v7318_v40  ;;  %v3558_v30 = vld [vmem:[#allocation9 + $0x548] sm:$0xff] }
 0x4ca   :  { %4995 = vmatprep.subr.bf16.mxu0 %v7183_v48  ;;  %5036 = vmatprep.subr.bf16.mxu1 %v7311_v51  ;;  %v3562_v40 = vld [vmem:[#allocation9 + $0x568] sm:$0xff] }
 0x4cb   :  { %v7281_v48 = vcombine.high %v3558_v30, %v3562_v40  ;;  %v3554_v51 = vld [vmem:[#allocation9 + $0x528] sm:$0xff]  ;;  %v7280_v53 = vcombine.low %v3558_v30, %v3562_v40 }
 0x4cc   :  { %v3502_v37 = vld [vmem:[#allocation9 + $0x388] sm:$0xff] }
 0x4cd   :  { %4996 = vmatpush2.bf16.msra.mxu0 %v7182_v50  ;;  %5037 = vmatpush2.bf16.msra.mxu1 %v7310_v35  ;;  %v3426_v50 = vld [vmem:[#allocation9 + $0x128] sm:$0xff] }
 0x4ce   :  { %4997 = vmatprep.subr.bf16.mxu0 %v7175_v55  ;;  %5038 = vmatprep.subr.bf16.mxu1 %v7303_v58  ;;  %v3550_v35 = vld [vmem:[#allocation9 + $0x508] sm:$0xff]  ;;  %v7145_v54 = vcombine.high %v3422_v32, %v3426_v50  ;;  %v7144_v59 = vcombine.low %v3422_v32, %v3426_v50 }
 0x4cf   :  { %v7273_v55 = vcombine.high %v3550_v35, %v3554_v51  ;;  %v3546_v58 = vld [vmem:[#allocation9 + $0x4e8] sm:$0xff]  ;;  %v7272_v60 = vcombine.low %v3550_v35, %v3554_v51 }
 0x4d0   :  { %v3506_v30 = vld [vmem:[#allocation9 + $0x3a8] sm:$0xff] }
 0x4d1   :  { %4998 = vmatpush2.bf16.msra.mxu0 %v7174_v57  ;;  %5039 = vmatpush2.bf16.msra.mxu1 %v7302_v36  ;;  %v3418_v57 = vld [vmem:[#allocation9 + $0xe8] sm:$0xff] }
 0x4d2   :  { %5049 = vmatprep.subr.bf16.mxu0 %v7169_v62  ;;  %5090 = vmatprep.subr.bf16.mxu1 %v7297_v2  ;;  %v3542_v36 = vld [vmem:[#allocation9 + $0x4c8] sm:$0xff]  ;;  %v7137_v61 = vcombine.high %v3414_v56, %v3418_v57  ;;  %v7136_v3 = vcombine.low %v3414_v56, %v3418_v57 }
 0x4d3   :  { %v7265_v62 = vcombine.high %v3542_v36, %v3546_v58  ;;  %v3538_v2 = vld [vmem:[#allocation9 + $0x4a8] sm:$0xff] }
 0x4d4   :  { %v3630_v40 = vld [vmem:[#allocation9 + $0x788] sm:$0xff] }
 0x4d5   :  { %v3494_v50 = vld [vmem:[#allocation9 + $0x348] sm:$0xff] }
 0x4d6   :  { %v3498_v35 = vld [vmem:[#allocation9 + $0x368] sm:$0xff] }
 0x4d7   :  { %v3622_v51 = vld [vmem:[#allocation9 + $0x748] sm:$0xff] }
 0x4d8   :  { %v3486_v57 = vld [vmem:[#allocation9 + $0x308] sm:$0xff] }
 0x554   :  { %v3333_v10 = vpop.f32.mrf.mxu0  ;;  %v3374_v11 = vpop.f32.mrf.mxu1 }
 0x555   :  { %v3334_v12 = vadd.f32 %v3333_v10, %v2962_v4  ;;  %v3375_v13 = vadd.f32 %v3374_v11, %v2970_v5  ;;  %v7264_v4 = vcombine.low %v3542_v36, %v3546_v58  ;;  %v3402_v10 = vld [vmem:[#allocation9 + $0x68] sm:$0xff] }
 0x556   :  { %v3335_v14 = vpop.f32.mrf.mxu0  ;;  %v3376_v15 = vpop.f32.mrf.mxu1  ;;  %v3526_v11 = vld [vmem:[#allocation9 + $0x448] sm:$0xff] }
 0x557   :  { %v3336_v16 = vadd.f32 %v3335_v14, %v2966_v6  ;;  %v3377_v22 = vadd.f32 %v3376_v15, %v2974_v7  ;;  %v3381_v23 = vmax.f32 %v3334_v12, 0.0  ;;  %v3383_v26 = vmax.f32 %v3375_v13, 0.0  ;;  %v3398_v7 = vld [vmem:[#allocation9 + $0x48] sm:$0xff] }
 0x558   :  { %v3337_v27 = vpop.f32.mrf.mxu0  ;;  %v3378_v28 = vpop.f32.mrf.mxu1  ;;  %v3530_v12 = vld [vmem:[#allocation9 + $0x468] sm:$0xff]  ;;  %v7121_v15 = vcombine.high %v3398_v7, %v3402_v10 }
 0x559   :  { %v3382_v29 = vmax.f32 %v3336_v16, 0.0  ;;  %v3384_v31 = vmax.f32 %v3377_v22, 0.0  ;;  %v8966_v42 = vpack.c.bf16 %v3381_v23, %v3381_v23  ;;  %v8968_v20 = vpack.c.bf16 %v3383_v26, %v3383_v26  ;;  %v3390_v22 = vld [vmem:[#allocation9 + $0x8] sm:$0xff] }
 0x55a   :  { %v3338_v38 = vpop.f32.mrf.mxu0  ;;  %v3379_v39 = vpop.f32.mrf.mxu1  ;;  %v7249_v16 = vcombine.high %v3526_v11, %v3530_v12  ;;  %v3394_v23 = vld [vmem:[#allocation9 + $0x28] sm:$0xff]  ;;  %v7120_v28 = vcombine.low %v3398_v7, %v3402_v10 }
 0x55b   :  { %v8962_v52 = vpack.c.bf16 %v3382_v29, %v3382_v29  ;;  %v8964_v41 = vpack.c.bf16 %v3384_v31, %v3384_v31  ;;  %v3518_v26 = vld [vmem:[#allocation9 + $0x408] sm:$0xff]  ;;  %v7248_v29 = vcombine.low %v3526_v11, %v3530_v12  ;;  %v7113_v31 = vcombine.high %v3390_v22, %v3394_v23 }
 0x55c   :  { %v3522_v27 = vld [vmem:[#allocation9 + $0x428] sm:$0xff]  ;;  %v7112_v9 = vcombine.low %v3390_v22, %v3394_v23 }
 0x55d   :  { %4999 = vmatprep.mubr.bf16.mxu0 %v8962_v52  ;;  %5040 = vmatprep.mubr.bf16.mxu1 %v8964_v41  ;;  %v7241_v34 = vcombine.high %v3518_v26, %v3522_v27  ;;  %v3510_v38 = vld [vmem:[#allocation9 + $0x3c8] sm:$0xff]  ;;  %v7240_v21 = vcombine.low %v3518_v26, %v3522_v27 }
 0x55e   :  { %5000 = vmatmul.mubr.bf16.vlgmr.msra.gmra.mxu0 %v8966_v42  ;;  %5041 = vmatmul.mubr.bf16.vlgmr.msra.gmra.mxu1 %v8968_v20  ;;  %v3514_v39 = vld [vmem:[#allocation9 + $0x3e8] sm:$0xff] }
 0x55f   :  { %5050 = vmatpush1.bf16.msra.mxu0 %v7168_v0  ;;  %5091 = vmatpush1.bf16.msra.mxu1 %v7296_v1  ;;  %v3410_v0 = vld [vmem:[#allocation9 + $0xa8] sm:$0xff] }
 0x560   :  { %5081 = vmatprep.mubr.bf16.mxu0 %v8962_v52  ;;  %5122 = vmatprep.mubr.bf16.mxu1 %v8964_v41  ;;  %v3534_v1 = vld [vmem:[#allocation9 + $0x488] sm:$0xff]  ;;  %v7129_v5 = vcombine.high %v3406_v63, %v3410_v0  ;;  %v7128_v13 = vcombine.low %v3406_v63, %v3410_v0 }
 0x561   :  { %5051 = vmatprep.subr.bf16.mxu0 %v7161_v43  ;;  %5092 = vmatprep.subr.bf16.mxu1 %v7289_v44  ;;  %v7257_v6 = vcombine.high %v3534_v1, %v3538_v2  ;;  %v7256_v14 = vcombine.low %v3534_v1, %v3538_v2  ;;  %v7233_v43 = vcombine.high %v3510_v38, %v3514_v39  ;;  %v3490_v36 = vld [vmem:[#allocation9 + $0x328] sm:$0xff] }
 0x562   :  { %v7361_v44 = vcombine.high %v3638_v8, %v3642_v49  ;;  %v3614_v58 = vld [vmem:[#allocation9 + $0x708] sm:$0xff] }
 0x563   :  { %5052 = vmatpush1.bf16.msra.mxu0 %v7160_v45  ;;  %5093 = vmatpush1.bf16.msra.mxu1 %v7288_v46  ;;  %v3634_v45 = vld [vmem:[#allocation9 + $0x7a8] sm:$0xff]  ;;  %v7232_v46 = vcombine.low %v3510_v38, %v3514_v39 }
 0x564   :  { %5053 = vmatprep.subr.bf16.mxu0 %v7153_v47  ;;  %5094 = vmatprep.subr.bf16.mxu1 %v7281_v48  ;;  %v7360_v47 = vcombine.low %v3638_v8, %v3642_v49  ;;  %v7225_v48 = vcombine.high %v3502_v37, %v3506_v30  ;;  %v7353_v32 = vcombine.high %v3630_v40, %v3634_v45  ;;  %v3478_v0 = vld [vmem:[#allocation9 + $0x2c8] sm:$0xff] }
 0x565   :  { %v3482_v1 = vld [vmem:[#allocation9 + $0x2e8] sm:$0xff] }
 0x566   :  { %v3606_v2 = vld [vmem:[#allocation9 + $0x6c8] sm:$0xff] }
 0x567   :  { %5054 = vmatpush1.bf16.msra.mxu0 %v7152_v33  ;;  %5095 = vmatpush1.bf16.msra.mxu1 %v7280_v53  ;;  %v3626_v33 = vld [vmem:[#allocation9 + $0x768] sm:$0xff]  ;;  %v7224_v53 = vcombine.low %v3502_v37, %v3506_v30  ;;  %v3447_v30 = vld [vmem:[#allocation9 + $0x1d0] sm:$0xff] }
 0x568   :  { %5055 = vmatprep.subr.bf16.mxu0 %v7145_v54  ;;  %5096 = vmatprep.subr.bf16.mxu1 %v7273_v55  ;;  %v7352_v54 = vcombine.low %v3630_v40, %v3634_v45  ;;  %v7217_v55 = vcombine.high %v3494_v50, %v3498_v35  ;;  %v7345_v56 = vcombine.high %v3622_v51, %v3626_v33  ;;  %v3470_v10 = vld [vmem:[#allocation9 + $0x288] sm:$0xff]  ;;  %v3451_v40 = vld [vmem:[#allocation9 + $0x1f0] sm:$0xff] }
 0x569   :  { %v3474_v11 = vld [vmem:[#allocation9 + $0x2a8] sm:$0xff]  ;;  %v3575_v45 = vld [vmem:[#allocation9 + $0x5d0] sm:$0xff] }
 0x56a   :  { %v3598_v12 = vld [vmem:[#allocation9 + $0x688] sm:$0xff] }
 0x56b   :  { %5056 = vmatpush1.bf16.msra.mxu0 %v7144_v59  ;;  %5097 = vmatpush1.bf16.msra.mxu1 %v7272_v60  ;;  %v3618_v59 = vld [vmem:[#allocation9 + $0x728] sm:$0xff]  ;;  %v7216_v60 = vcombine.low %v3494_v50, %v3498_v35  ;;  %v3439_v35 = vld [vmem:[#allocation9 + $0x190] sm:$0xff] }
 0x56c   :  { %5057 = vmatprep.subr.bf16.mxu0 %v7137_v61  ;;  %5098 = vmatprep.subr.bf16.mxu1 %v7265_v62  ;;  %v7344_v61 = vcombine.low %v3622_v51, %v3626_v33  ;;  %v7209_v62 = vcombine.high %v3486_v57, %v3490_v36  ;;  %v7337_v63 = vcombine.high %v3614_v58, %v3618_v59  ;;  %v3462_v23 = vld [vmem:[#allocation9 + $0x248] sm:$0xff]  ;;  %v3443_v51 = vld [vmem:[#allocation9 + $0x1b0] sm:$0xff] }
 0x56d   :  { %v3466_v26 = vld [vmem:[#allocation9 + $0x268] sm:$0xff]  ;;  %v3567_v33 = vld [vmem:[#allocation9 + $0x590] sm:$0xff] }
 0x56e   :  { %v3590_v27 = vld [vmem:[#allocation9 + $0x648] sm:$0xff] }
 0x56f   :  { %5058 = vmatpush1.bf16.msra.mxu0 %v7136_v3  ;;  %5099 = vmatpush1.bf16.msra.mxu1 %v7264_v4  ;;  %v3610_v3 = vld [vmem:[#allocation9 + $0x6e8] sm:$0xff]  ;;  %v7208_v4 = vcombine.low %v3486_v57, %v3490_v36  ;;  %v3431_v36 = vld [vmem:[#allocation9 + $0x150] sm:$0xff] }
 0x570   :  { %5059 = vmatprep.subr.bf16.mxu0 %v7129_v5  ;;  %5100 = vmatprep.subr.bf16.mxu1 %v7257_v6  ;;  %v7336_v5 = vcombine.low %v3614_v58, %v3618_v59  ;;  %v7201_v6 = vcombine.high %v3478_v0, %v3482_v1  ;;  %v7329_v7 = vcombine.high %v3606_v2, %v3610_v3  ;;  %v3454_v39 = vld [vmem:[#allocation9 + $0x208] sm:$0xff]  ;;  %v3435_v58 = vld [vmem:[#allocation9 + $0x170] sm:$0xff] }
 0x571   :  { %v3458_v8 = vld [vmem:[#allocation9 + $0x228] sm:$0xff]  ;;  %v3559_v59 = vld [vmem:[#allocation9 + $0x550] sm:$0xff] }
 0x572   :  { %v3582_v49 = vld [vmem:[#allocation9 + $0x608] sm:$0xff] }
 0x573   :  { %5060 = vmatpush1.bf16.msra.mxu0 %v7128_v13  ;;  %5101 = vmatpush1.bf16.msra.mxu1 %v7256_v14  ;;  %v3602_v13 = vld [vmem:[#allocation9 + $0x6a8] sm:$0xff]  ;;  %v7200_v14 = vcombine.low %v3478_v0, %v3482_v1  ;;  %v3423_v1 = vld [vmem:[#allocation9 + $0x110] sm:$0xff] }
 0x574   :  { %5061 = vmatprep.subr.bf16.mxu0 %v7121_v15  ;;  %5102 = vmatprep.subr.bf16.mxu1 %v7249_v16  ;;  %v7328_v15 = vcombine.low %v3606_v2, %v3610_v3  ;;  %v7193_v16 = vcombine.high %v3470_v10, %v3474_v11  ;;  %v7321_v22 = vcombine.high %v3598_v12, %v3602_v13  ;;  %v3427_v2 = vld [vmem:[#allocation9 + $0x130] sm:$0xff] }
 0x575   :  { %v3551_v3 = vld [vmem:[#allocation9 + $0x510] sm:$0xff] }
 0x577   :  { %5062 = vmatpush1.bf16.msra.mxu0 %v7120_v28  ;;  %5103 = vmatpush1.bf16.msra.mxu1 %v7248_v29  ;;  %v3594_v28 = vld [vmem:[#allocation9 + $0x668] sm:$0xff]  ;;  %v7192_v29 = vcombine.low %v3470_v10, %v3474_v11  ;;  %v3415_v11 = vld [vmem:[#allocation9 + $0xd0] sm:$0xff] }
 0x578   :  { %5063 = vmatprep.subr.bf16.mxu0 %v7113_v31  ;;  %5104 = vmatprep.subr.bf16.mxu1 %v7241_v34  ;;  %v7320_v31 = vcombine.low %v3598_v12, %v3602_v13  ;;  %v7185_v34 = vcombine.high %v3462_v23, %v3466_v26  ;;  %v7313_v38 = vcombine.high %v3590_v27, %v3594_v28  ;;  %v3419_v12 = vld [vmem:[#allocation9 + $0xf0] sm:$0xff] }
 0x579   :  { %v3543_v13 = vld [vmem:[#allocation9 + $0x4d0] sm:$0xff] }
 0x57b   :  { %5064 = vmatpush1.bf16.msra.mxu0 %v7112_v9  ;;  %5105 = vmatpush1.bf16.msra.mxu1 %v7240_v21  ;;  %v3586_v9 = vld [vmem:[#allocation9 + $0x628] sm:$0xff]  ;;  %v7184_v21 = vcombine.low %v3462_v23, %v3466_v26  ;;  %v3407_v26 = vld [vmem:[#allocation9 + $0x90] sm:$0xff] }
 0x57c   :  { %5065 = vmatprep.subr.bf16.mxu0 %v7233_v43  ;;  %5106 = vmatprep.subr.bf16.mxu1 %v7361_v44  ;;  %v7312_v43 = vcombine.low %v3590_v27, %v3594_v28  ;;  %v7177_v44 = vcombine.high %v3454_v39, %v3458_v8  ;;  %v7305_v37 = vcombine.high %v3582_v49, %v3586_v9  ;;  %v3411_v27 = vld [vmem:[#allocation9 + $0xb0] sm:$0xff] }
 0x57d   :  { %v3535_v28 = vld [vmem:[#allocation9 + $0x490] sm:$0xff] }
 0x57f   :  { %5066 = vmatpush2.bf16.msra.mxu0 %v7232_v46  ;;  %5107 = vmatpush2.bf16.msra.mxu1 %v7360_v47  ;;  %v3579_v46 = vld [vmem:[#allocation9 + $0x5f0] sm:$0xff]  ;;  %v7176_v47 = vcombine.low %v3454_v39, %v3458_v8 }
 0x580   :  { %5067 = vmatprep.subr.bf16.mxu0 %v7225_v48  ;;  %5108 = vmatprep.subr.bf16.mxu1 %v7353_v32  ;;  %v7304_v48 = vcombine.low %v3582_v49, %v3586_v9  ;;  %v7171_v32 = vcombine.high %v3447_v30, %v3451_v40  ;;  %v7299_v50 = vcombine.high %v3575_v45, %v3579_v46  ;;  %v3399_v8 = vld [vmem:[#allocation9 + $0x50] sm:$0xff] }
 0x581   :  { %v3403_v49 = vld [vmem:[#allocation9 + $0x70] sm:$0xff] }
 0x582   :  { %v3527_v9 = vld [vmem:[#allocation9 + $0x450] sm:$0xff] }
 0x583   :  { %5068 = vmatpush2.bf16.msra.mxu0 %v7224_v53  ;;  %5109 = vmatpush2.bf16.msra.mxu1 %v7352_v54  ;;  %v3571_v53 = vld [vmem:[#allocation9 + $0x5b0] sm:$0xff]  ;;  %v7170_v54 = vcombine.low %v3447_v30, %v3451_v40 }
 0x584   :  { %5069 = vmatprep.subr.bf16.mxu0 %v7217_v55  ;;  %5110 = vmatprep.subr.bf16.mxu1 %v7345_v56  ;;  %v7298_v55 = vcombine.low %v3575_v45, %v3579_v46  ;;  %v7163_v56 = vcombine.high %v3439_v35, %v3443_v51  ;;  %v7291_v57 = vcombine.high %v3567_v33, %v3571_v53  ;;  %v3391_v40 = vld [vmem:[#allocation9 + $0x10] sm:$0xff] }
 0x585   :  { %v3395_v45 = vld [vmem:[#allocation9 + $0x30] sm:$0xff] }
 0x586   :  { %v3519_v46 = vld [vmem:[#allocation9 + $0x410] sm:$0xff] }
 0x587   :  { %5070 = vmatpush2.bf16.msra.mxu0 %v7216_v60  ;;  %5111 = vmatpush2.bf16.msra.mxu1 %v7344_v61  ;;  %v3563_v60 = vld [vmem:[#allocation9 + $0x570] sm:$0xff]  ;;  %v7162_v61 = vcombine.low %v3439_v35, %v3443_v51 }
 0x588   :  { %5071 = vmatprep.subr.bf16.mxu0 %v7209_v62  ;;  %5112 = vmatprep.subr.bf16.mxu1 %v7337_v63  ;;  %v7290_v62 = vcombine.low %v3567_v33, %v3571_v53  ;;  %v7155_v63 = vcombine.high %v3431_v36, %v3435_v58  ;;  %v7283_v0 = vcombine.high %v3559_v59, %v3563_v60  ;;  %v3511_v51 = vld [vmem:[#allocation9 + $0x3d0] sm:$0xff] }
 0x589   :  { %v3515_v33 = vld [vmem:[#allocation9 + $0x3f0] sm:$0xff] }
 0x58a   :  { %v3639_v53 = vld [vmem:[#allocation9 + $0x7d0] sm:$0xff] }
 0x58b   :  { %5072 = vmatpush2.bf16.msra.mxu0 %v7208_v4  ;;  %5113 = vmatpush2.bf16.msra.mxu1 %v7336_v5  ;;  %v3555_v4 = vld [vmem:[#allocation9 + $0x530] sm:$0xff]  ;;  %v7154_v5 = vcombine.low %v3431_v36, %v3435_v58 }
 0x58c   :  { %5073 = vmatprep.subr.bf16.mxu0 %v7201_v6  ;;  %5114 = vmatprep.subr.bf16.mxu1 %v7329_v7  ;;  %v7282_v6 = vcombine.low %v3559_v59, %v3563_v60  ;;  %v7147_v7 = vcombine.high %v3423_v1, %v3427_v2  ;;  %v7275_v10 = vcombine.high %v3551_v3, %v3555_v4  ;;  %v3503_v58 = vld [vmem:[#allocation9 + $0x390] sm:$0xff] }
 0x58d   :  { %v3507_v59 = vld [vmem:[#allocation9 + $0x3b0] sm:$0xff] }
 0x58e   :  { %v3631_v60 = vld [vmem:[#allocation9 + $0x790] sm:$0xff] }
 0x58f   :  { %5074 = vmatpush2.bf16.msra.mxu0 %v7200_v14  ;;  %5115 = vmatpush2.bf16.msra.mxu1 %v7328_v15  ;;  %v3547_v14 = vld [vmem:[#allocation9 + $0x4f0] sm:$0xff]  ;;  %v7146_v15 = vcombine.low %v3423_v1, %v3427_v2 }
 0x590   :  { %5075 = vmatprep.subr.bf16.mxu0 %v7193_v16  ;;  %5116 = vmatprep.subr.bf16.mxu1 %v7321_v22  ;;  %v7274_v16 = vcombine.low %v3551_v3, %v3555_v4  ;;  %v7139_v22 = vcombine.high %v3415_v11, %v3419_v12  ;;  %v7267_v23 = vcombine.high %v3543_v13, %v3547_v14  ;;  %v3495_v2 = vld [vmem:[#allocation9 + $0x350] sm:$0xff] }
 0x591   :  { %v3499_v3 = vld [vmem:[#allocation9 + $0x370] sm:$0xff] }
 0x592   :  { %v3623_v4 = vld [vmem:[#allocation9 + $0x750] sm:$0xff] }
 0x593   :  { %5076 = vmatpush2.bf16.msra.mxu0 %v7192_v29  ;;  %5117 = vmatpush2.bf16.msra.mxu1 %v7320_v31  ;;  %v3539_v29 = vld [vmem:[#allocation9 + $0x4b0] sm:$0xff]  ;;  %v7138_v31 = vcombine.low %v3415_v11, %v3419_v12 }
 0x594   :  { %5077 = vmatprep.subr.bf16.mxu0 %v7185_v34  ;;  %5118 = vmatprep.subr.bf16.mxu1 %v7313_v38  ;;  %v7266_v34 = vcombine.low %v3543_v13, %v3547_v14  ;;  %v7131_v38 = vcombine.high %v3407_v26, %v3411_v27  ;;  %v7259_v39 = vcombine.high %v3535_v28, %v3539_v29  ;;  %v3487_v12 = vld [vmem:[#allocation9 + $0x310] sm:$0xff] }
 0x595   :  { %v3491_v13 = vld [vmem:[#allocation9 + $0x330] sm:$0xff] }
 0x596   :  { %v3615_v14 = vld [vmem:[#allocation9 + $0x710] sm:$0xff] }
 0x597   :  { %5078 = vmatpush2.bf16.msra.mxu0 %v7184_v21  ;;  %5119 = vmatpush2.bf16.msra.mxu1 %v7312_v43  ;;  %v3531_v21 = vld [vmem:[#allocation9 + $0x470] sm:$0xff]  ;;  %v7130_v43 = vcombine.low %v3407_v26, %v3411_v27 }
 0x598   :  { %5079 = vmatprep.subr.bf16.mxu0 %v7177_v44  ;;  %5120 = vmatprep.subr.bf16.mxu1 %v7305_v37  ;;  %v7258_v44 = vcombine.low %v3535_v28, %v3539_v29  ;;  %v7123_v37 = vcombine.high %v3399_v8, %v3403_v49  ;;  %v7251_v30 = vcombine.high %v3527_v9, %v3531_v21  ;;  %v3479_v27 = vld [vmem:[#allocation9 + $0x2d0] sm:$0xff] }
 0x599   :  { %v3483_v28 = vld [vmem:[#allocation9 + $0x2f0] sm:$0xff] }
 0x59a   :  { %v3607_v29 = vld [vmem:[#allocation9 + $0x6d0] sm:$0xff] }
 0x59b   :  { %5080 = vmatpush2.bf16.msra.mxu0 %v7176_v47  ;;  %5121 = vmatpush2.bf16.msra.mxu1 %v7304_v48  ;;  %v3523_v47 = vld [vmem:[#allocation9 + $0x430] sm:$0xff]  ;;  %v7122_v48 = vcombine.low %v3399_v8, %v3403_v49 }
 0x59c   :  { %5131 = vmatprep.subr.bf16.mxu0 %v7171_v32  ;;  %5172 = vmatprep.subr.bf16.mxu1 %v7299_v50  ;;  %v7250_v32 = vcombine.low %v3527_v9, %v3531_v21  ;;  %v7115_v50 = vcombine.high %v3391_v40, %v3395_v45  ;;  %v7243_v35 = vcombine.high %v3519_v46, %v3523_v47  ;;  %v3471_v49 = vld [vmem:[#allocation9 + $0x290] sm:$0xff] }
 0x59d   :  { %v3475_v9 = vld [vmem:[#allocation9 + $0x2b0] sm:$0xff] }
 0x59e   :  { %5082 = vmatmul.mubr.bf16.vlgmr.msra.gmra.mxu0 %v8966_v42  ;;  %5123 = vmatmul.mubr.bf16.vlgmr.msra.gmra.mxu1 %v8968_v20  ;;  %v3599_v21 = vld [vmem:[#allocation9 + $0x690] sm:$0xff] }
 0x59f   :  { %5132 = vmatpush1.bf16.msra.mxu0 %v7170_v54  ;;  %5163 = vmatprep.mubr.bf16.mxu0 %v8962_v52  ;;  %v3643_v54 = vld [vmem:[#allocation9 + $0x7f0] sm:$0xff] }
 0x5a0   :  { %5173 = vmatpush1.bf16.msra.mxu1 %v7298_v55  ;;  %5204 = vmatprep.mubr.bf16.mxu1 %v8964_v41  ;;  %v7114_v55 = vcombine.low %v3391_v40, %v3395_v45  ;;  %v7363_v36 = vcombine.high %v3639_v53, %v3643_v54  ;;  %v3463_v45 = vld [vmem:[#allocation9 + $0x250] sm:$0xff] }
 0x5a1   :  { %5133 = vmatprep.subr.bf16.mxu0 %v7163_v56  ;;  %5174 = vmatprep.subr.bf16.mxu1 %v7291_v57  ;;  %v7242_v56 = vcombine.low %v3519_v46, %v3523_v47  ;;  %v7235_v57 = vcombine.high %v3511_v51, %v3515_v33  ;;  %v3467_v46 = vld [vmem:[#allocation9 + $0x270] sm:$0xff] }
 0x5a2   :  { %v3591_v47 = vld [vmem:[#allocation9 + $0x650] sm:$0xff] }
 0x5a3   :  { %5134 = vmatpush1.bf16.msra.mxu0 %v7162_v61  ;;  %v3635_v61 = vld [vmem:[#allocation9 + $0x7b0] sm:$0xff] }
 0x5a4   :  { %5175 = vmatpush1.bf16.msra.mxu1 %v7290_v62  ;;  %5135 = vmatprep.subr.bf16.mxu0 %v7155_v63  ;;  %v7234_v62 = vcombine.low %v3511_v51, %v3515_v33  ;;  %v7362_v63 = vcombine.low %v3639_v53, %v3643_v54  ;;  %v7355_v1 = vcombine.high %v3631_v60, %v3635_v61  ;;  %v3455_v33 = vld [vmem:[#allocation9 + $0x210] sm:$0xff] }
 0x5a5   :  { %5176 = vmatprep.subr.bf16.mxu1 %v7283_v0  ;;  %v7227_v0 = vcombine.high %v3503_v58, %v3507_v59  ;;  %v3459_v53 = vld [vmem:[#allocation9 + $0x230] sm:$0xff] }
 0x5a6   :  { %v3583_v54 = vld [vmem:[#allocation9 + $0x610] sm:$0xff] }
 0x5a7   :  { %5136 = vmatpush1.bf16.msra.mxu0 %v7154_v5  ;;  %v3627_v5 = vld [vmem:[#allocation9 + $0x770] sm:$0xff] }
 0x5a8   :  { %5177 = vmatpush1.bf16.msra.mxu1 %v7282_v6  ;;  %5137 = vmatprep.subr.bf16.mxu0 %v7147_v7  ;;  %v7226_v6 = vcombine.low %v3503_v58, %v3507_v59  ;;  %v7354_v7 = vcombine.low %v3631_v60, %v3635_v61  ;;  %v7347_v11 = vcombine.high %v3623_v4, %v3627_v5  ;;  %v3448_v59 = vld [vmem:[#allocation9 + $0x1d8] sm:$0xff] }
 0x5a9   :  { %5178 = vmatprep.subr.bf16.mxu1 %v7275_v10  ;;  %v7219_v10 = vcombine.high %v3495_v2, %v3499_v3  ;;  %v3452_v60 = vld [vmem:[#allocation9 + $0x1f8] sm:$0xff] }
 0x5aa   :  { %v3576_v61 = vld [vmem:[#allocation9 + $0x5d8] sm:$0xff] }
 0x5ab   :  { %5138 = vmatpush1.bf16.msra.mxu0 %v7146_v15  ;;  %v3619_v15 = vld [vmem:[#allocation9 + $0x730] sm:$0xff] }
 0x5ac   :  { %5179 = vmatpush1.bf16.msra.mxu1 %v7274_v16  ;;  %5139 = vmatprep.subr.bf16.mxu0 %v7139_v22  ;;  %v7218_v16 = vcombine.low %v3495_v2, %v3499_v3  ;;  %v7346_v22 = vcombine.low %v3623_v4, %v3627_v5  ;;  %v7339_v26 = vcombine.high %v3615_v14, %v3619_v15  ;;  %v3440_v3 = vld [vmem:[#allocation9 + $0x198] sm:$0xff] }
 0x5ad   :  { %5180 = vmatprep.subr.bf16.mxu1 %v7267_v23  ;;  %v7211_v23 = vcombine.high %v3487_v12, %v3491_v13  ;;  %v3444_v4 = vld [vmem:[#allocation9 + $0x1b8] sm:$0xff]  ;;  %v7172_v5 = vcombine.low %v3448_v59, %v3452_v60 }
 0x5af   :  { %5140 = vmatpush1.bf16.msra.mxu0 %v7138_v31  ;;  %v3611_v31 = vld [vmem:[#allocation9 + $0x6f0] sm:$0xff] }
 0x5b0   :  { %5181 = vmatpush1.bf16.msra.mxu1 %v7266_v34  ;;  %5141 = vmatprep.subr.bf16.mxu0 %v7131_v38  ;;  %v7210_v34 = vcombine.low %v3487_v12, %v3491_v13  ;;  %v7338_v38 = vcombine.low %v3615_v14, %v3619_v15  ;;  %v7331_v8 = vcombine.high %v3607_v29, %v3611_v31  ;;  %v3432_v12 = vld [vmem:[#allocation9 + $0x158] sm:$0xff] }
 0x5b1   :  { %5182 = vmatprep.subr.bf16.mxu1 %v7259_v39  ;;  %v7203_v39 = vcombine.high %v3479_v27, %v3483_v28  ;;  %v3436_v13 = vld [vmem:[#allocation9 + $0x178] sm:$0xff] }
 0x5b2   :  { %v3560_v15 = vld [vmem:[#allocation9 + $0x558] sm:$0xff] }
 0x5b3   :  { %5142 = vmatpush1.bf16.msra.mxu0 %v7130_v43  ;;  %v3603_v43 = vld [vmem:[#allocation9 + $0x6b0] sm:$0xff] }
 0x5b4   :  { %5183 = vmatpush1.bf16.msra.mxu1 %v7258_v44  ;;  %5143 = vmatprep.subr.bf16.mxu0 %v7123_v37  ;;  %v7202_v44 = vcombine.low %v3479_v27, %v3483_v28  ;;  %v7330_v37 = vcombine.low %v3607_v29, %v3611_v31  ;;  %v7323_v40 = vcombine.high %v3599_v21, %v3603_v43  ;;  %v3424_v28 = vld [vmem:[#allocation9 + $0x118] sm:$0xff] }
 0x5b5   :  { %5184 = vmatprep.subr.bf16.mxu1 %v7251_v30  ;;  %v7195_v30 = vcombine.high %v3471_v49, %v3475_v9  ;;  %v3428_v29 = vld [vmem:[#allocation9 + $0x138] sm:$0xff] }
 0x5b6   :  { %v3552_v31 = vld [vmem:[#allocation9 + $0x518] sm:$0xff] }
 0x5b7   :  { %5144 = vmatpush1.bf16.msra.mxu0 %v7122_v48  ;;  %v3595_v48 = vld [vmem:[#allocation9 + $0x670] sm:$0xff] }
 0x5b8   :  { %5185 = vmatpush1.bf16.msra.mxu1 %v7250_v32  ;;  %5145 = vmatprep.subr.bf16.mxu0 %v7115_v50  ;;  %v7194_v32 = vcombine.low %v3471_v49, %v3475_v9  ;;  %v7322_v50 = vcombine.low %v3599_v21, %v3603_v43  ;;  %v7315_v51 = vcombine.high %v3591_v47, %v3595_v48  ;;  %v3416_v49 = vld [vmem:[#allocation9 + $0xd8] sm:$0xff] }
 0x5b9   :  { %5186 = vmatprep.subr.bf16.mxu1 %v7243_v35  ;;  %v7187_v35 = vcombine.high %v3463_v45, %v3467_v46  ;;  %v3420_v9 = vld [vmem:[#allocation9 + $0xf8] sm:$0xff] }
 0x5ba   :  { %v3544_v21 = vld [vmem:[#allocation9 + $0x4d8] sm:$0xff] }
 0x5bb   :  { %5146 = vmatpush1.bf16.msra.mxu0 %v7114_v55  ;;  %v3587_v55 = vld [vmem:[#allocation9 + $0x630] sm:$0xff]  ;;  %v3548_v43 = vld [vmem:[#allocation9 + $0x4f8] sm:$0xff] }
 0x5bc   :  { %5187 = vmatpush1.bf16.msra.mxu1 %v7242_v56  ;;  %5147 = vmatprep.subr.bf16.mxu0 %v7235_v57  ;;  %v7186_v56 = vcombine.low %v3463_v45, %v3467_v46  ;;  %v7314_v57 = vcombine.low %v3591_v47, %v3595_v48  ;;  %v7307_v58 = vcombine.high %v3583_v54, %v3587_v55  ;;  %v3412_v45 = vld [vmem:[#allocation9 + $0xb8] sm:$0xff] }
 0x5bd   :  { %5188 = vmatprep.subr.bf16.mxu1 %v7363_v36  ;;  %v7179_v36 = vcombine.high %v3455_v33, %v3459_v53  ;;  %v3536_v46 = vld [vmem:[#allocation9 + $0x498] sm:$0xff]  ;;  %v7140_v48 = vcombine.low %v3416_v49, %v3420_v9 }
 0x5be   :  { %v3540_v47 = vld [vmem:[#allocation9 + $0x4b8] sm:$0xff] }
 0x5bf   :  { %5148 = vmatpush2.bf16.msra.mxu0 %v7234_v62  ;;  %v3580_v62 = vld [vmem:[#allocation9 + $0x5f8] sm:$0xff] }
 0x5c0   :  { %5189 = vmatpush2.bf16.msra.mxu1 %v7362_v63  ;;  %5149 = vmatprep.subr.bf16.mxu0 %v7227_v0  ;;  %v7178_v63 = vcombine.low %v3455_v33, %v3459_v53  ;;  %v7306_v0 = vcombine.low %v3583_v54, %v3587_v55  ;;  %v7301_v2 = vcombine.high %v3576_v61, %v3580_v62  ;;  %v3404_v33 = vld [vmem:[#allocation9 + $0x78] sm:$0xff] }
 0x5c1   :  { %5190 = vmatprep.subr.bf16.mxu1 %v7355_v1  ;;  %v7173_v1 = vcombine.high %v3448_v59, %v3452_v60  ;;  %v3528_v53 = vld [vmem:[#allocation9 + $0x458] sm:$0xff] }
 0x5c2   :  { %v3532_v54 = vld [vmem:[#allocation9 + $0x478] sm:$0xff] }
 0x5c3   :  { %5150 = vmatpush2.bf16.msra.mxu0 %v7226_v6  ;;  %v3568_v6 = vld [vmem:[#allocation9 + $0x598] sm:$0xff] }
 0x5c4   :  { %5191 = vmatpush2.bf16.msra.mxu1 %v7354_v7  ;;  %5151 = vmatprep.subr.bf16.mxu0 %v7219_v10  ;;  %v3572_v7 = vld [vmem:[#allocation9 + $0x5b8] sm:$0xff]  ;;  %v7300_v10 = vcombine.low %v3576_v61, %v3580_v62 }
 0x5c5   :  { %5192 = vmatprep.subr.bf16.mxu1 %v7347_v11  ;;  %v7165_v11 = vcombine.high %v3440_v3, %v3444_v4  ;;  %v7293_v14 = vcombine.high %v3568_v6, %v3572_v7  ;;  %v3396_v59 = vld [vmem:[#allocation9 + $0x38] sm:$0xff] }
 0x5c6   :  { %v3520_v60 = vld [vmem:[#allocation9 + $0x418] sm:$0xff] }
 0x5c7   :  { %5152 = vmatpush2.bf16.msra.mxu0 %v7218_v16  ;;  %v3564_v16 = vld [vmem:[#allocation9 + $0x578] sm:$0xff] }
 0x5c8   :  { %5193 = vmatpush2.bf16.msra.mxu1 %v7346_v22  ;;  %5153 = vmatprep.subr.bf16.mxu0 %v7211_v23  ;;  %v7164_v22 = vcombine.low %v3440_v3, %v3444_v4  ;;  %v7292_v23 = vcombine.low %v3568_v6, %v3572_v7  ;;  %v7285_v27 = vcombine.high %v3560_v15, %v3564_v16  ;;  %v3524_v61 = vld [vmem:[#allocation9 + $0x438] sm:$0xff] }
 0x5c9   :  { %5194 = vmatprep.subr.bf16.mxu1 %v7339_v26  ;;  %v7157_v26 = vcombine.high %v3432_v12, %v3436_v13  ;;  %v3516_v3 = vld [vmem:[#allocation9 + $0x3f8] sm:$0xff]  ;;  %v7244_v7 = vcombine.low %v3520_v60, %v3524_v61 }
 0x5ca   :  { %v3640_v4 = vld [vmem:[#allocation9 + $0x7d8] sm:$0xff] }
 0x5cb   :  { %5154 = vmatpush2.bf16.msra.mxu0 %v7210_v34  ;;  %v3556_v34 = vld [vmem:[#allocation9 + $0x538] sm:$0xff] }
 0x5cc   :  { %5195 = vmatpush2.bf16.msra.mxu1 %v7338_v38  ;;  %5155 = vmatprep.subr.bf16.mxu0 %v7203_v39  ;;  %v7156_v38 = vcombine.low %v3432_v12, %v3436_v13  ;;  %v7284_v39 = vcombine.low %v3560_v15, %v3564_v16  ;;  %v3504_v12 = vld [vmem:[#allocation9 + $0x398] sm:$0xff] }
 0x5cd   :  { %5196 = vmatprep.subr.bf16.mxu1 %v7331_v8  ;;  %v7149_v8 = vcombine.high %v3424_v28, %v3428_v29  ;;  %v3508_v13 = vld [vmem:[#allocation9 + $0x3b8] sm:$0xff] }
 0x5ce   :  { %v3636_v15 = vld [vmem:[#allocation9 + $0x7b8] sm:$0xff] }
 0x5cf   :  { %5156 = vmatpush2.bf16.msra.mxu0 %v7202_v44  ;;  %v7276_v44 = vcombine.low %v3552_v31, %v3556_v34 }
 0x5d0   :  { %5197 = vmatpush2.bf16.msra.mxu1 %v7330_v37  ;;  %5157 = vmatprep.subr.bf16.mxu0 %v7195_v30  ;;  %v7141_v37 = vcombine.high %v3416_v49, %v3420_v9  ;;  %v7269_v30 = vcombine.high %v3544_v21, %v3548_v43  ;;  %v3492_v49 = vld [vmem:[#allocation9 + $0x338] sm:$0xff] }
 0x5d1   :  { %5198 = vmatprep.subr.bf16.mxu1 %v7323_v40  ;;  %v3408_v40 = vld [vmem:[#allocation9 + $0x98] sm:$0xff] }
 0x5d2   :  { %v7132_v55 = vcombine.low %v3408_v40, %v3412_v45  ;;  %v3616_v9 = vld [vmem:[#allocation9 + $0x718] sm:$0xff] }
 0x5d3   :  { %5158 = vmatpush2.bf16.msra.mxu0 %v7194_v32  ;;  %v7268_v32 = vcombine.low %v3544_v21, %v3548_v43  ;;  %v3620_v21 = vld [vmem:[#allocation9 + $0x738] sm:$0xff] }
 0x5d4   :  { %5199 = vmatpush2.bf16.msra.mxu1 %v7322_v50  ;;  %5159 = vmatprep.subr.bf16.mxu0 %v7187_v35  ;;  %v7133_v50 = vcombine.high %v3408_v40, %v3412_v45  ;;  %v7261_v35 = vcombine.high %v3536_v46, %v3540_v47  ;;  %v3484_v40 = vld [vmem:[#allocation9 + $0x2f8] sm:$0xff] }
 0x5d5   :  { %5200 = vmatprep.subr.bf16.mxu1 %v7315_v51  ;;  %v3400_v51 = vld [vmem:[#allocation9 + $0x58] sm:$0xff] }
 0x5d6   :  { %v7124_v62 = vcombine.low %v3400_v51, %v3404_v33  ;;  %v3608_v45 = vld [vmem:[#allocation9 + $0x6d8] sm:$0xff] }
 0x5d7   :  { %5160 = vmatpush2.bf16.msra.mxu0 %v7186_v56  ;;  %v7260_v56 = vcombine.low %v3536_v46, %v3540_v47  ;;  %v3612_v46 = vld [vmem:[#allocation9 + $0x6f8] sm:$0xff] }
 0x5d8   :  { %5201 = vmatpush2.bf16.msra.mxu1 %v7314_v57  ;;  %5161 = vmatprep.subr.bf16.mxu0 %v7179_v36  ;;  %v7125_v57 = vcombine.high %v3400_v51, %v3404_v33  ;;  %v7253_v36 = vcombine.high %v3528_v53, %v3532_v54  ;;  %v3476_v51 = vld [vmem:[#allocation9 + $0x2b8] sm:$0xff] }
 0x5d9   :  { %5202 = vmatprep.subr.bf16.mxu1 %v7307_v58  ;;  %v3392_v58 = vld [vmem:[#allocation9 + $0x18] sm:$0xff] }
 0x5da   :  { %v7116_v6 = vcombine.low %v3392_v58, %v3396_v59  ;;  %v3600_v33 = vld [vmem:[#allocation9 + $0x698] sm:$0xff] }
 0x5db   :  { %5162 = vmatpush2.bf16.msra.mxu0 %v7178_v63  ;;  %v7252_v63 = vcombine.low %v3528_v53, %v3532_v54  ;;  %v3604_v53 = vld [vmem:[#allocation9 + $0x6b8] sm:$0xff] }
 0x5dc   :  { %5203 = vmatpush2.bf16.msra.mxu1 %v7306_v0  ;;  %5213 = vmatprep.subr.bf16.mxu0 %v7173_v1  ;;  %v7117_v0 = vcombine.high %v3392_v58, %v3396_v59  ;;  %v7245_v1 = vcombine.high %v3520_v60, %v3524_v61  ;;  %v3468_v58 = vld [vmem:[#allocation9 + $0x278] sm:$0xff] }
 0x5dd   :  { %5254 = vmatprep.subr.bf16.mxu1 %v7301_v2  ;;  %v3512_v2 = vld [vmem:[#allocation9 + $0x3d8] sm:$0xff] }
 0x5de   :  { %5164 = vmatmul.mubr.bf16.vlgmr.msra.gmra.mxu0 %v8966_v42  ;;  %v7236_v16 = vcombine.low %v3512_v2, %v3516_v3  ;;  %v3592_v59 = vld [vmem:[#allocation9 + $0x658] sm:$0xff] }
 0x5df   :  { %5205 = vmatmul.mubr.bf16.vlgmr.msra.gmra.mxu1 %v8968_v20  ;;  %5214 = vmatpush1.bf16.msra.mxu0 %v7172_v5  ;;  %v3644_v5 = vld [vmem:[#allocation9 + $0x7f8] sm:$0xff] }
 0x5e0   :  { %5245 = vmatprep.mubr.bf16.mxu0 %v8962_v52  ;;  %5255 = vmatpush1.bf16.msra.mxu1 %v7300_v10  ;;  %v7277_v52 = vcombine.high %v3552_v31, %v3556_v34  ;;  %v7237_v10 = vcombine.high %v3512_v2, %v3516_v3  ;;  %v3628_v31 = vld [vmem:[#allocation9 + $0x778] sm:$0xff]  ;;  %v7228_v34 = vcombine.low %v3504_v12, %v3508_v13 }
 0x5e1   :  { %5286 = vmatprep.mubr.bf16.mxu1 %v8964_v41  ;;  %5215 = vmatprep.subr.bf16.mxu0 %v7165_v11  ;;  %v7148_v41 = vcombine.low %v3424_v28, %v3428_v29  ;;  %v7365_v11 = vcombine.high %v3640_v4, %v3644_v5  ;;  %v3500_v28 = vld [vmem:[#allocation9 + $0x378] sm:$0xff] }
 0x5e2   :  { %5256 = vmatprep.subr.bf16.mxu1 %v7293_v14  ;;  %v3632_v14 = vld [vmem:[#allocation9 + $0x798] sm:$0xff] }
 0x5e3   :  { %5216 = vmatpush1.bf16.msra.mxu0 %v7164_v22  ;;  %v7364_v22 = vcombine.low %v3640_v4, %v3644_v5  ;;  %v3624_v29 = vld [vmem:[#allocation9 + $0x758] sm:$0xff] }
 0x5e4   :  { %5257 = vmatpush1.bf16.msra.mxu1 %v7292_v23  ;;  %5217 = vmatprep.subr.bf16.mxu0 %v7157_v26  ;;  %v7229_v23 = vcombine.high %v3504_v12, %v3508_v13  ;;  %v7357_v26 = vcombine.high %v3632_v14, %v3636_v15  ;;  %v3596_v60 = vld [vmem:[#allocation9 + $0x678] sm:$0xff] }
 0x5e5   :  { %5258 = vmatprep.subr.bf16.mxu1 %v7285_v27  ;;  %v3496_v27 = vld [vmem:[#allocation9 + $0x358] sm:$0xff] }
 0x5e6   :  { %v7220_v43 = vcombine.low %v3496_v27, %v3500_v28  ;;  %v3460_v2 = vld [vmem:[#allocation9 + $0x238] sm:$0xff] }
 0x5e7   :  { %5218 = vmatpush1.bf16.msra.mxu0 %v7156_v38  ;;  %v7356_v38 = vcombine.low %v3632_v14, %v3636_v15  ;;  %v3584_v3 = vld [vmem:[#allocation9 + $0x618] sm:$0xff] }
 0x5e8   :  { %5259 = vmatpush1.bf16.msra.mxu1 %v7284_v39  ;;  %5219 = vmatprep.subr.bf16.mxu0 %v7149_v8  ;;  %v7221_v39 = vcombine.high %v3496_v27, %v3500_v28  ;;  %v7349_v8 = vcombine.high %v3624_v29, %v3628_v31  ;;  %v3588_v4 = vld [vmem:[#allocation9 + $0x638] sm:$0xff]  ;;  %v8240_v27 = vld [vmem:[#allocation10 + $0x164] ss:$8 sps:$4 sm:$0xff]  }
 0x5e9   :  { %5260 = vmatprep.subr.bf16.mxu1 %v7277_v52  ;;  %v3488_v52 = vld [vmem:[#allocation9 + $0x318] sm:$0xff]  ;;  %v7308_v12 = vcombine.low %v3584_v3, %v3588_v4 }
 0x5ea   :  { %v7212_v47 = vcombine.low %v3488_v52, %v3492_v49  ;;  %v8222_v13 = vld [vmem:[#allocation10 + $0x74] ss:$8 sps:$4 sm:$0xff]   ;;  %v8220_v15 = vld [vmem:[#allocation10 + $0x70] ss:$8 sps:$4 sm:$0xff]  }
 0x5eb   :  { %5220 = vmatpush1.bf16.msra.mxu0 %v7148_v41  ;;  %v7348_v41 = vcombine.low %v3624_v29, %v3628_v31  ;;  %v8234_v14 = vld [vmem:[#allocation10 + $0x174] ss:$8 sps:$4 sm:$0xff]   ;;  %v8223_v31 = vld [vmem:[#allocation10 + $0x60] ss:$8 sps:$4 sm:$0xff]  }
 0x5ec   :  { %5261 = vmatpush1.bf16.msra.mxu1 %v7276_v44  ;;  %5221 = vmatprep.subr.bf16.mxu0 %v7141_v37  ;;  %v7213_v44 = vcombine.high %v3488_v52, %v3492_v49  ;;  %v7341_v37 = vcombine.high %v3616_v9, %v3620_v21  ;;  %v8246_v49 = vld [vmem:[#allocation10 + $0x154] ss:$8 sps:$4 sm:$0xff]  }
 0x5ed   :  { %5262 = vmatprep.subr.bf16.mxu1 %v7269_v30  ;;  %v3480_v30 = vld [vmem:[#allocation9 + $0x2d8] sm:$0xff] }
 0x5ee   :  { %v7204_v54 = vcombine.low %v3480_v30, %v3484_v40 }
 0x5ef   :  { %5222 = vmatpush1.bf16.msra.mxu0 %v7140_v48  ;;  %v7340_v48 = vcombine.low %v3616_v9, %v3620_v21 }
 0x5f0   :  { %5263 = vmatpush1.bf16.msra.mxu1 %v7268_v32  ;;  %5223 = vmatprep.subr.bf16.mxu0 %v7133_v50  ;;  %v7205_v32 = vcombine.high %v3480_v30, %v3484_v40  ;;  %v7333_v50 = vcombine.high %v3608_v45, %v3612_v46  ;;  %v8252_v40 = vld [vmem:[#allocation10 + $0x144] ss:$8 sps:$4 sm:$0xff]  }
 0x5f1   :  { %5264 = vmatprep.subr.bf16.mxu1 %v7261_v35  ;;  %v3472_v35 = vld [vmem:[#allocation9 + $0x298] sm:$0xff] }
 0x5f2   :  { %v7196_v61 = vcombine.low %v3472_v35, %v3476_v51 }
 0x5f3   :  { %5224 = vmatpush1.bf16.msra.mxu0 %v7132_v55  ;;  %v7332_v55 = vcombine.low %v3608_v45, %v3612_v46  ;;  %v8229_v46 = vld [vmem:[#allocation10 + $0x40] ss:$8 sps:$4 sm:$0xff]  }
 0x5f4   :  { %5265 = vmatpush1.bf16.msra.mxu1 %v7260_v56  ;;  %5225 = vmatprep.subr.bf16.mxu0 %v7125_v57  ;;  %v7197_v56 = vcombine.high %v3472_v35, %v3476_v51  ;;  %v7325_v57 = vcombine.high %v3600_v33, %v3604_v53  ;;  %v8243_v35 = vld [vmem:[#allocation10 + $0x24] ss:$8 sps:$4 sm:$0xff]   ;;  %v8256_v51 = vld [vmem:[#allocation10 + $0x130] ss:$8 sps:$4 sm:$0xff]  }
 0x5f5   :  { %5266 = vmatprep.subr.bf16.mxu1 %v7253_v36  ;;  %v3464_v36 = vld [vmem:[#allocation9 + $0x258] sm:$0xff] }
 0x5f6   :  { %v7188_v5 = vcombine.low %v3464_v36, %v3468_v58 }
 0x5f7   :  { %5226 = vmatpush1.bf16.msra.mxu0 %v7124_v62  ;;  %v7324_v62 = vcombine.low %v3600_v33, %v3604_v53  ;;  %v8264_v33 = vld [vmem:[#allocation10 + $0x124] ss:$8 sps:$4 sm:$0xff]   ;;  %v8241_v53 = vld [vmem:[#allocation10 + $0x20] ss:$8 sps:$4 sm:$0xff]  }
 0x5f8   :  { %5267 = vmatpush1.bf16.msra.mxu1 %v7252_v63  ;;  %5227 = vmatprep.subr.bf16.mxu0 %v7117_v0  ;;  %v7189_v63 = vcombine.high %v3464_v36, %v3468_v58  ;;  %v7317_v0 = vcombine.high %v3592_v59, %v3596_v60  ;;  %v8255_v36 = vld [vmem:[#allocation10 + $0x4] ss:$8 sps:$4 sm:$0xff]   ;;  %v8268_v58 = vld [vmem:[#allocation10 + $0x110] ss:$8 sps:$4 sm:$0xff]  }
 0x5f9   :  { %5268 = vmatprep.subr.bf16.mxu1 %v7245_v1  ;;  %v3456_v1 = vld [vmem:[#allocation9 + $0x218] sm:$0xff] }
 0x5fb   :  { %5228 = vmatpush1.bf16.msra.mxu0 %v7116_v6  ;;  %v7316_v6 = vcombine.low %v3592_v59, %v3596_v60  ;;  %v8276_v59 = vld [vmem:[#allocation10 + $0x104] ss:$8 sps:$4 sm:$0xff]   ;;  %v8253_v60 = vld [vmem:[#allocation10] ss:$8 sps:$4 sm:$0xff]  }
 0x5fc   :  { %5269 = vmatpush1.bf16.msra.mxu1 %v7244_v7  ;;  %5229 = vmatprep.subr.bf16.mxu0 %v7237_v10  ;;  %v7181_v7 = vcombine.high %v3456_v1, %v3460_v2  ;;  %v7309_v10 = vcombine.high %v3584_v3, %v3588_v4  ;;  %v8288_v3 = vld [vmem:[#allocation10 + $0x1e4] ss:$8 sps:$4 sm:$0xff]   ;;  %v8265_v4 = vld [vmem:[#allocation10 + $0xe0] ss:$8 sps:$4 sm:$0xff]  }
 0x5fd   :  { %5270 = vmatprep.subr.bf16.mxu1 %v7365_v11  ;;  %v7180_v11 = vcombine.low %v3456_v1, %v3460_v2  ;;  %v8267_v1 = vld [vmem:[#allocation10 + $0xe4] ss:$8 sps:$4 sm:$0xff]   ;;  %v8280_v2 = vld [vmem:[#allocation10 + $0x1f0] ss:$8 sps:$4 sm:$0xff]  }
 0x5ff   :  { %5230 = vmatpush2.bf16.msra.mxu0 %v7236_v16  ;;  %v8987_v16 = vld [vmem:[%s9041_s12] sm:$0xff] }
 0x600   :  { %5271 = vmatpush2.bf16.msra.mxu1 %v7364_v22  ;;  %5231 = vmatprep.subr.bf16.mxu0 %v7229_v23  ;;  %v8225_v22 = vld [vmem:[#allocation10 + $0x64] ss:$8 sps:$4 sm:$0xff]   ;;  %v8232_v23 = vld [vmem:[#allocation10 + $0x170] ss:$8 sps:$4 sm:$0xff]  }
 0x601   :  { %5272 = vmatprep.subr.bf16.mxu1 %v7357_v26  ;;  %v3654_v26 = vrot.slane %v8987_v16, %v8869_v25 }
 0x603   :  { %5232 = vmatpush2.bf16.msra.mxu0 %v7228_v34 }
 0x604   :  { %5273 = vmatpush2.bf16.msra.mxu1 %v7356_v38  ;;  %5233 = vmatprep.subr.bf16.mxu0 %v7221_v39  ;;  %v8228_v39 = vld [vmem:[#allocation10 + $0x54] ss:$8 sps:$4 sm:$0xff]  }
 0x605   :  { %5274 = vmatprep.subr.bf16.mxu1 %v7349_v8  ;;  %v8238_v8 = vld [vmem:[#allocation10 + $0x160] ss:$8 sps:$4 sm:$0xff]  }
 0x607   :  { %5234 = vmatpush2.bf16.msra.mxu0 %v7220_v43  ;;  %v8226_v43 = vld [vmem:[#allocation10 + $0x50] ss:$8 sps:$4 sm:$0xff]  }
 0x608   :  { %5275 = vmatpush2.bf16.msra.mxu1 %v7348_v41  ;;  %5235 = vmatprep.subr.bf16.mxu0 %v7213_v44 }
 0x609   :  { %5276 = vmatprep.subr.bf16.mxu1 %v7341_v37  ;;  %v8244_v37 = vld [vmem:[#allocation10 + $0x150] ss:$8 sps:$4 sm:$0xff]  }
 0x60b   :  { %5236 = vmatpush2.bf16.msra.mxu0 %v7212_v47  ;;  %v8237_v47 = vld [vmem:[#allocation10 + $0x34] ss:$8 sps:$4 sm:$0xff]  }
 0x60c   :  { %5277 = vmatpush2.bf16.msra.mxu1 %v7340_v48  ;;  %5237 = vmatprep.subr.bf16.mxu0 %v7205_v32  ;;  %v8250_v48 = vld [vmem:[#allocation10 + $0x140] ss:$8 sps:$4 sm:$0xff]   ;;  %v8258_v32 = vld [vmem:[#allocation10 + $0x134] ss:$8 sps:$4 sm:$0xff]  }
 0x60d   :  { %5278 = vmatprep.subr.bf16.mxu1 %v7333_v50  ;;  %v8235_v50 = vld [vmem:[#allocation10 + $0x30] ss:$8 sps:$4 sm:$0xff]  }
 0x60f   :  { %5238 = vmatpush2.bf16.msra.mxu0 %v7204_v54  ;;  %v8249_v54 = vld [vmem:[#allocation10 + $0x14] ss:$8 sps:$4 sm:$0xff]  }
 0x610   :  { %5279 = vmatpush2.bf16.msra.mxu1 %v7332_v55  ;;  %5239 = vmatprep.subr.bf16.mxu0 %v7197_v56  ;;  %v8262_v55 = vld [vmem:[#allocation10 + $0x120] ss:$8 sps:$4 sm:$0xff]   ;;  %v8270_v56 = vld [vmem:[#allocation10 + $0x114] ss:$8 sps:$4 sm:$0xff]  }
 0x611   :  { %5280 = vmatprep.subr.bf16.mxu1 %v7325_v57  ;;  %v8247_v57 = vld [vmem:[#allocation10 + $0x10] ss:$8 sps:$4 sm:$0xff]  }
 0x613   :  { %5240 = vmatpush2.bf16.msra.mxu0 %v7196_v61  ;;  %v8261_v61 = vld [vmem:[#allocation10 + $0xf4] ss:$8 sps:$4 sm:$0xff]  }
 0x614   :  { %5281 = vmatpush2.bf16.msra.mxu1 %v7324_v62  ;;  %5241 = vmatprep.subr.bf16.mxu0 %v7189_v63  ;;  %v8274_v62 = vld [vmem:[#allocation10 + $0x100] ss:$8 sps:$4 sm:$0xff]   ;;  %v8282_v63 = vld [vmem:[#allocation10 + $0x1f4] ss:$8 sps:$4 sm:$0xff]  }
 0x615   :  { %5282 = vmatprep.subr.bf16.mxu1 %v7317_v0  ;;  %v8259_v0 = vld [vmem:[#allocation10 + $0xf0] ss:$8 sps:$4 sm:$0xff]  }
 0x617   :  { %5242 = vmatpush2.bf16.msra.mxu0 %v7188_v5  ;;  %v8273_v5 = vld [vmem:[#allocation10 + $0xd4] ss:$8 sps:$4 sm:$0xff]  }
 0x618   :  { %5283 = vmatpush2.bf16.msra.mxu1 %v7316_v6  ;;  %5243 = vmatprep.subr.bf16.mxu0 %v7181_v7  ;;  %v8286_v6 = vld [vmem:[#allocation10 + $0x1e0] ss:$8 sps:$4 sm:$0xff]   ;;  %v8294_v7 = vld [vmem:[#allocation10 + $0x1d4] ss:$8 sps:$4 sm:$0xff]  }
 0x619   :  { %5284 = vmatprep.subr.bf16.mxu1 %v7309_v10  ;;  %v8271_v10 = vld [vmem:[#allocation10 + $0xd0] ss:$8 sps:$4 sm:$0xff]  }
 0x61b   :  { %5244 = vmatpush2.bf16.msra.mxu0 %v7180_v11  ;;  %v8279_v11 = vld [vmem:[#allocation10 + $0xc4] ss:$8 sps:$4 sm:$0xff]  }
 0x61c   :  { %5285 = vmatpush2.bf16.msra.mxu1 %v7308_v12  ;;  %6091 = vmatprep.subr.bf16.mxu0 %v8222_v13  ;;  %v8292_v12 = vld [vmem:[#allocation10 + $0x1d0] ss:$8 sps:$4 sm:$0xff]   ;;  %v8300_v13 = vld [vmem:[#allocation10 + $0x1c4] ss:$8 sps:$4 sm:$0xff]  }
 0x61d   :  { %6132 = vmatprep.subr.bf16.mxu1 %v8234_v14  ;;  %v8277_v14 = vld [vmem:[#allocation10 + $0xc0] ss:$8 sps:$4 sm:$0xff]  }
 0x61e   :  { %5246 = vmatmul.mubr.bf16.vlgmr.msra.gmra.mxu0 %v8966_v42  ;;  %v8992_v28 = vpop.f32.mrf.mxu0  ;;  %v8994_v29 = vpop.f32.mrf.mxu1 }
 0x61f   :  { %5287 = vmatmul.mubr.bf16.vlgmr.msra.gmra.mxu1 %v8968_v20  ;;  %6092 = vmatpush1.bf16.msra.mxu0 %v8220_v15  ;;  %v8231_v20 = vld [vmem:[#allocation10 + $0x44] ss:$8 sps:$4 sm:$0xff]   ;;  %v8285_v15 = vld [vmem:[#allocation10 + $0xb4] ss:$8 sps:$4 sm:$0xff]  }
 0x620   :  { %v5003_v34 = vpop.f32.mrf.mxu0  ;;  %v5044_v38 = vpop.f32.mrf.mxu1  ;;  %6093 = vmatprep.subr.bf16.mxu0 %v8225_v22  ;;  %6133 = vmatpush1.bf16.msra.mxu1 %v8232_v23  ;;  %v8298_v22 = vld [vmem:[#allocation10 + $0x1c0] ss:$8 sps:$4 sm:$0xff]   ;;  %v8306_v23 = vld [vmem:[#allocation10 + $0x1b4] ss:$8 sps:$4 sm:$0xff]  }
 0x621   :  { %v5004_v52 = vadd.f32 %v5003_v34, %v3654_v26  ;;  %6134 = vmatprep.subr.bf16.mxu1 %v8240_v27  ;;  %v8283_v26 = vld [vmem:[#allocation10 + $0xb0] ss:$8 sps:$4 sm:$0xff]   ;;  %v3650_v27 = vrot.slane %v8987_v16, %v8866_v24 }
 0x622   :  { %v5005_v9 = vpop.f32.mrf.mxu0  ;;  %v5046_v21 = vpop.f32.mrf.mxu1  ;;  %v8304_v34 = vld [vmem:[#allocation10 + $0x1b0] ss:$8 sps:$4 sm:$0xff]  }
 0x623   :  { %v5045_v42 = vadd.f32 %v5044_v38, %v5004_v52  ;;  %6094 = vmatpush1.bf16.msra.mxu0 %v8223_v31  ;;  %v8291_v31 = vld [vmem:[#allocation10 + $0xa4] ss:$8 sps:$4 sm:$0xff]   ;;  %v8297_v52 = vld [vmem:[#allocation10 + $0x94] ss:$8 sps:$4 sm:$0xff]   ;;  %v8295_v21 = vld [vmem:[#allocation10 + $0x90] ss:$8 sps:$4 sm:$0xff]  }
 0x624   :  { %v5006_v41 = vpop.f32.mrf.mxu0  ;;  %v5047_v44 = vpop.f32.mrf.mxu1  ;;  %6095 = vmatprep.subr.bf16.mxu0 %v8228_v39  ;;  %6135 = vmatpush1.bf16.msra.mxu1 %v8238_v8  ;;  %v8309_v38 = vld [vmem:[#allocation10 + $0x1a4] ss:$8 sps:$4 sm:$0xff]   ;;  %v8289_v39 = vld [vmem:[#allocation10 + $0xa0] ss:$8 sps:$4 sm:$0xff]   ;;  %v5002_v8 = vadd.f32 %v8992_v28, %v3650_v27  ;;  %v8312_v9 = vld [vmem:[#allocation10 + $0x194] ss:$8 sps:$4 sm:$0xff]  }
 0x625   :  { %v5296_v30 = vmax.f32 %v5045_v42, 0.0  ;;  %6136 = vmatprep.subr.bf16.mxu1 %v8246_v49  ;;  %v8307_v49 = vld [vmem:[#allocation10 + $0x1a0] ss:$8 sps:$4 sm:$0xff]   ;;  %v8310_v41 = vld [vmem:[#allocation10 + $0x190] ss:$8 sps:$4 sm:$0xff]  }
 0x626   :  { %v5043_v42 = vadd.f32 %v8994_v29, %v5002_v8  ;;  %v8315_v44 = vld [vmem:[#allocation10 + $0x184] ss:$8 sps:$4 sm:$0xff]   ;;  %v8313_v28 = vld [vmem:[#allocation10 + $0x180] ss:$8 sps:$4 sm:$0xff]   ;;  %v8316_v29 = vld [vmem:[#allocation10 + $0x270] ss:$8 sps:$4 sm:$0xff]  }
 0x627   :  { %v5304_v45 = vpack.c.bf16 %v5296_v30, %v5296_v30  ;;  %6096 = vmatpush1.bf16.msra.mxu0 %v8226_v43  ;;  %v8303_v43 = vld [vmem:[#allocation10 + $0x84] ss:$8 sps:$4 sm:$0xff]   ;;  %v8318_v30 = vld [vmem:[#allocation10 + $0x274] ss:$8 sps:$4 sm:$0xff]   ;;  %v8337_v27 = vld [vmem:[#allocation10 + $0x200] ss:$8 sps:$4 sm:$0xff]  }
 0x628   :  { %6097 = vmatprep.subr.bf16.mxu0 %v8231_v20  ;;  %6137 = vmatpush1.bf16.msra.mxu1 %v8244_v37  ;;  %v8301_v20 = vld [vmem:[#allocation10 + $0x80] ss:$8 sps:$4 sm:$0xff]   ;;  %v5295_v37 = vmax.f32 %v5043_v42, 0.0  ;;  %v8348_v42 = vld [vmem:[#allocation10 + $0x2d4] ss:$8 sps:$4 sm:$0xff]  }
 0x629   :  { %6123 = vmatprep.mubr.bf16.mxu0 %v5304_v45  ;;  %6138 = vmatprep.subr.bf16.mxu1 %v8252_v40  ;;  %v8366_v40 = vld [vmem:[#allocation10 + $0x374] ss:$8 sps:$4 sm:$0xff]   ;;  %v3658_v45 = vrot.slane %v8987_v16, %v8921_v18  ;;  %v8379_v8 = vld [vmem:[#allocation10 + $0x320] ss:$8 sps:$4 sm:$0xff]  }
 0x62b   :  { %6098 = vmatpush1.bf16.msra.mxu0 %v8229_v46  ;;  %v5303_v46 = vpack.c.bf16 %v5295_v37, %v5295_v37  ;;  %v8390_v37 = vld [vmem:[#allocation10 + $0x3f4] ss:$8 sps:$4 sm:$0xff]  }
 0x62c   :  { %6099 = vmatprep.subr.bf16.mxu0 %v8237_v47  ;;  %6139 = vmatpush1.bf16.msra.mxu1 %v8250_v48  ;;  %v8321_v47 = vld [vmem:[#allocation10 + $0x264] ss:$8 sps:$4 sm:$0xff]   ;;  %v3662_v48 = vrot.slane %v8987_v16, %v8924_v19 }
 0x62d   :  { %6140 = vmatprep.subr.bf16.mxu1 %v8258_v32 }
 0x62f   :  { %6100 = vmatpush1.bf16.msra.mxu0 %v8235_v50 }
 0x630   :  { %6101 = vmatprep.subr.bf16.mxu0 %v8243_v35  ;;  %6141 = vmatpush1.bf16.msra.mxu1 %v8256_v51  ;;  %v8319_v51 = vld [vmem:[#allocation10 + $0x260] ss:$8 sps:$4 sm:$0xff]  }
 0x631   :  { %6142 = vmatprep.subr.bf16.mxu1 %v8264_v33 }
 0x633   :  { %6102 = vmatpush1.bf16.msra.mxu0 %v8241_v53 }
 0x634   :  { %6103 = vmatprep.subr.bf16.mxu0 %v8249_v54  ;;  %6143 = vmatpush1.bf16.msra.mxu1 %v8262_v55  ;;  %v8324_v54 = vld [vmem:[#allocation10 + $0x254] ss:$8 sps:$4 sm:$0xff]  }
 0x635   :  { %6144 = vmatprep.subr.bf16.mxu1 %v8270_v56 }
 0x637   :  { %6104 = vmatpush1.bf16.msra.mxu0 %v8247_v57 }
 0x638   :  { %6105 = vmatprep.subr.bf16.mxu0 %v8255_v36  ;;  %6145 = vmatpush1.bf16.msra.mxu1 %v8268_v58  ;;  %v8322_v58 = vld [vmem:[#allocation10 + $0x250] ss:$8 sps:$4 sm:$0xff]  }
 0x639   :  { %6146 = vmatprep.subr.bf16.mxu1 %v8276_v59 }
 0x63b   :  { %6106 = vmatpush1.bf16.msra.mxu0 %v8253_v60 }
 0x63c   :  { %6107 = vmatprep.subr.bf16.mxu0 %v8261_v61  ;;  %6147 = vmatpush1.bf16.msra.mxu1 %v8274_v62  ;;  %v8327_v61 = vld [vmem:[#allocation10 + $0x244] ss:$8 sps:$4 sm:$0xff]  }
 0x63d   :  { %6148 = vmatprep.subr.bf16.mxu1 %v8282_v63 }
 0x63f   :  { %6108 = vmatpush2.bf16.msra.mxu0 %v8259_v0  ;;  %v8325_v0 = vld [vmem:[#allocation10 + $0x240] ss:$8 sps:$4 sm:$0xff]  }
 0x640   :  { %6109 = vmatprep.subr.bf16.mxu0 %v8267_v1  ;;  %6149 = vmatpush2.bf16.msra.mxu1 %v8280_v2  ;;  %v8364_v1 = vld [vmem:[#allocation10 + $0x370] ss:$8 sps:$4 sm:$0xff]  }
 0x641   :  { %6150 = vmatprep.subr.bf16.mxu1 %v8288_v3  ;;  %v8330_v3 = vld [vmem:[#allocation10 + $0x234] ss:$8 sps:$4 sm:$0xff]  }
 0x643   :  { %6110 = vmatpush2.bf16.msra.mxu0 %v8265_v4  ;;  %v8369_v4 = vld [vmem:[#allocation10 + $0x364] ss:$8 sps:$4 sm:$0xff]  }
 0x644   :  { %6111 = vmatprep.subr.bf16.mxu0 %v8273_v5  ;;  %6151 = vmatpush2.bf16.msra.mxu1 %v8286_v6  ;;  %v8328_v5 = vld [vmem:[#allocation10 + $0x230] ss:$8 sps:$4 sm:$0xff]   ;;  %v8367_v6 = vld [vmem:[#allocation10 + $0x360] ss:$8 sps:$4 sm:$0xff]  }
 0x645   :  { %6152 = vmatprep.subr.bf16.mxu1 %v8294_v7  ;;  %v8333_v7 = vld [vmem:[#allocation10 + $0x224] ss:$8 sps:$4 sm:$0xff]  }
 0x647   :  { %6112 = vmatpush2.bf16.msra.mxu0 %v8271_v10  ;;  %v8372_v10 = vld [vmem:[#allocation10 + $0x354] ss:$8 sps:$4 sm:$0xff]  }
 0x648   :  { %6113 = vmatprep.subr.bf16.mxu0 %v8279_v11  ;;  %6153 = vmatpush2.bf16.msra.mxu1 %v8292_v12  ;;  %v8331_v11 = vld [vmem:[#allocation10 + $0x220] ss:$8 sps:$4 sm:$0xff]   ;;  %v8370_v12 = vld [vmem:[#allocation10 + $0x350] ss:$8 sps:$4 sm:$0xff]  }
 0x649   :  { %6154 = vmatprep.subr.bf16.mxu1 %v8300_v13  ;;  %v8336_v13 = vld [vmem:[#allocation10 + $0x214] ss:$8 sps:$4 sm:$0xff]  }
 0x64b   :  { %6114 = vmatpush2.bf16.msra.mxu0 %v8277_v14  ;;  %v8375_v14 = vld [vmem:[#allocation10 + $0x344] ss:$8 sps:$4 sm:$0xff]  }
 0x64c   :  { %6115 = vmatprep.subr.bf16.mxu0 %v8285_v15  ;;  %6155 = vmatpush2.bf16.msra.mxu1 %v8298_v22  ;;  %v8334_v15 = vld [vmem:[#allocation10 + $0x210] ss:$8 sps:$4 sm:$0xff]   ;;  %v8373_v22 = vld [vmem:[#allocation10 + $0x340] ss:$8 sps:$4 sm:$0xff]  }
 0x64d   :  { %6156 = vmatprep.subr.bf16.mxu1 %v8306_v23  ;;  %v8339_v23 = vld [vmem:[#allocation10 + $0x204] ss:$8 sps:$4 sm:$0xff]  }
 0x64f   :  { %6116 = vmatpush2.bf16.msra.mxu0 %v8283_v26  ;;  %v8378_v26 = vld [vmem:[#allocation10 + $0x334] ss:$8 sps:$4 sm:$0xff]  }
 0x650   :  { %6117 = vmatprep.subr.bf16.mxu0 %v8291_v31  ;;  %6157 = vmatpush2.bf16.msra.mxu1 %v8304_v34  ;;  %v8376_v31 = vld [vmem:[#allocation10 + $0x330] ss:$8 sps:$4 sm:$0xff]   ;;  %v8342_v34 = vld [vmem:[#allocation10 + $0x2f4] ss:$8 sps:$4 sm:$0xff]  }
 0x651   :  { %6158 = vmatprep.subr.bf16.mxu1 %v8309_v38  ;;  %v8381_v38 = vld [vmem:[#allocation10 + $0x324] ss:$8 sps:$4 sm:$0xff]  }
 0x653   :  { %6118 = vmatpush2.bf16.msra.mxu0 %v8289_v39  ;;  %v8340_v39 = vld [vmem:[#allocation10 + $0x2f0] ss:$8 sps:$4 sm:$0xff]  }
 0x654   :  { %6119 = vmatprep.subr.bf16.mxu0 %v8297_v52  ;;  %6159 = vmatpush2.bf16.msra.mxu1 %v8307_v49  ;;  %v8345_v52 = vld [vmem:[#allocation10 + $0x2e4] ss:$8 sps:$4 sm:$0xff]   ;;  %v8384_v49 = vld [vmem:[#allocation10 + $0x314] ss:$8 sps:$4 sm:$0xff]  }
 0x655   :  { %6160 = vmatprep.subr.bf16.mxu1 %v8312_v9  ;;  %v8343_v9 = vld [vmem:[#allocation10 + $0x2e0] ss:$8 sps:$4 sm:$0xff]  }
 0x657   :  { %6120 = vmatpush2.bf16.msra.mxu0 %v8295_v21  ;;  %v8382_v21 = vld [vmem:[#allocation10 + $0x310] ss:$8 sps:$4 sm:$0xff]  }
 0x658   :  { %6121 = vmatprep.subr.bf16.mxu0 %v8303_v43  ;;  %6161 = vmatpush2.bf16.msra.mxu1 %v8310_v41  ;;  %v8387_v43 = vld [vmem:[#allocation10 + $0x304] ss:$8 sps:$4 sm:$0xff]   ;;  %v8346_v41 = vld [vmem:[#allocation10 + $0x2d0] ss:$8 sps:$4 sm:$0xff]  }
 0x659   :  { %6162 = vmatprep.subr.bf16.mxu1 %v8315_v44  ;;  %v8385_v44 = vld [vmem:[#allocation10 + $0x300] ss:$8 sps:$4 sm:$0xff]  }
 0x65b   :  { %6122 = vmatpush2.bf16.msra.mxu0 %v8301_v20  ;;  %v8351_v20 = vld [vmem:[#allocation10 + $0x2c4] ss:$8 sps:$4 sm:$0xff]  }
 0x65c   :  { %6163 = vmatpush2.bf16.msra.mxu1 %v8313_v28  ;;  %6173 = vmatprep.subr.bf16.mxu0 %v8318_v30  ;;  %v8349_v28 = vld [vmem:[#allocation10 + $0x2c0] ss:$8 sps:$4 sm:$0xff]   ;;  %v8388_v30 = vld [vmem:[#allocation10 + $0x3f0] ss:$8 sps:$4 sm:$0xff]  }
 0x65d   :  { %6214 = vmatprep.subr.bf16.mxu1 %v8366_v40  ;;  %v8354_v40 = vld [vmem:[#allocation10 + $0x2b4] ss:$8 sps:$4 sm:$0xff]  }
 0x65e   :  { %v5083_v32 = vpop.f32.mrf.mxu0  ;;  %v5124_v50 = vpop.f32.mrf.mxu1  ;;  %6124 = vmatmul.mubr.bf16.vlgmr.msra.gmra.mxu0 %v5303_v46  ;;  %v8391_v46 = vld [vmem:[#allocation10 + $0x3e0] ss:$8 sps:$4 sm:$0xff]  }
 0x65f   :  { %v5084_v35 = vadd.f32 %v5083_v32, %v3658_v45  ;;  %6174 = vmatpush1.bf16.msra.mxu0 %v8316_v29  ;;  %v8393_v45 = vld [vmem:[#allocation10 + $0x3e4] ss:$8 sps:$4 sm:$0xff]   ;;  %v8352_v29 = vld [vmem:[#allocation10 + $0x2b0] ss:$8 sps:$4 sm:$0xff]   ;;  %v8355_v32 = vld [vmem:[#allocation10 + $0x2a0] ss:$8 sps:$4 sm:$0xff]  }
 0x660   :  { %v5085_v33 = vpop.f32.mrf.mxu0  ;;  %v5126_v53 = vpop.f32.mrf.mxu1  ;;  %6175 = vmatprep.subr.bf16.mxu0 %v8321_v47  ;;  %v8357_v47 = vld [vmem:[#allocation10 + $0x2a4] ss:$8 sps:$4 sm:$0xff]  }
 0x661   :  { %v5125_v18 = vadd.f32 %v5124_v50, %v5084_v35  ;;  %v5086_v55 = vadd.f32 %v5085_v33, %v3662_v48  ;;  %v8396_v48 = vld [vmem:[#allocation10 + $0x3d4] ss:$8 sps:$4 sm:$0xff]   ;;  %v8394_v50 = vld [vmem:[#allocation10 + $0x3d0] ss:$8 sps:$4 sm:$0xff]  }
 0x662   :  { %v5087_v56 = vpop.f32.mrf.mxu0  ;;  %v5128_v57 = vpop.f32.mrf.mxu1  ;;  %v8360_v35 = vld [vmem:[#allocation10 + $0x294] ss:$8 sps:$4 sm:$0xff]   ;;  %v8358_v33 = vld [vmem:[#allocation10 + $0x290] ss:$8 sps:$4 sm:$0xff]  }
 0x663   :  { %v5127_v36 = vadd.f32 %v5126_v53, %v5086_v55  ;;  %6176 = vmatpush1.bf16.msra.mxu0 %v8319_v51  ;;  %v5297_v59 = vmax.f32 %v5125_v18, 0.0  ;;  %v8399_v51 = vld [vmem:[#allocation10 + $0x3c4] ss:$8 sps:$4 sm:$0xff]   ;;  %v8397_v53 = vld [vmem:[#allocation10 + $0x3c0] ss:$8 sps:$4 sm:$0xff]   ;;  %v3665_v55 = vsub.s32 4, %v8863_v17 }
 0x664   :  { %v5088_v19 = vpop.f32.mrf.mxu0  ;;  %v5129_v60 = vpop.f32.mrf.mxu1  ;;  %6177 = vmatprep.subr.bf16.mxu0 %v8324_v54  ;;  %v8363_v54 = vld [vmem:[#allocation10 + $0x284] ss:$8 sps:$4 sm:$0xff]   ;;  %v8402_v18 = vld [vmem:[#allocation10 + $0x3b4] ss:$8 sps:$4 sm:$0xff]   ;;  %v8361_v56 = vld [vmem:[#allocation10 + $0x280] ss:$8 sps:$4 sm:$0xff]  }
 0x665   :  { %v5298_v62 = vmax.f32 %v5127_v36, 0.0  ;;  %v5305_v2 = vpack.c.bf16 %v5297_v59, %v5297_v59  ;;  %v8400_v57 = vld [vmem:[#allocation10 + $0x3b0] ss:$8 sps:$4 sm:$0xff]   ;;  %v8405_v36 = vld [vmem:[#allocation10 + $0x3a4] ss:$8 sps:$4 sm:$0xff]   ;;  %v3666_v59 = vrot.slane %v8987_v16, %v3665_v55 }
 0x666   :  { %v8403_v19 = vld [vmem:[#allocation10 + $0x3a0] ss:$8 sps:$4 sm:$0xff]   ;;  %v8408_v60 = vld [vmem:[#allocation10 + $0x394] ss:$8 sps:$4 sm:$0xff]   ;;  %v8435_v55 = vld [vmem:[#allocation12 + $0x4] ss:$8 sps:$4 sm:$0xff]  }
 0x667   :  { %v5306_v63 = vpack.c.bf16 %v5298_v62, %v5298_v62  ;;  %6178 = vmatpush1.bf16.msra.mxu0 %v8322_v58  ;;  %v3669_v58 = vsub.s32 5, %v8863_v17 }
 0x668   :  { %6179 = vmatprep.subr.bf16.mxu0 %v8327_v61 }
 0x669   :  { %6164 = vmatprep.mubr.bf16.mxu1 %v5306_v63  ;;  %v3670_v61 = vrot.slane %v8987_v16, %v3669_v58  ;;  %v8441_v58 = vld [vmem:[#allocation12 + $0xe4] ss:$8 sps:$4 sm:$0xff]  }
 0x66a   :  { %6165 = vmatmul.mubr.bf16.vlgmr.msra.gmra.mxu1 %v5305_v2 }
 0x66b   :  { %6180 = vmatpush1.bf16.msra.mxu0 %v8325_v0  ;;  %6215 = vmatpush1.bf16.msra.mxu1 %v8364_v1  ;;  %v8406_v1 = vld [vmem:[#allocation10 + $0x390] ss:$8 sps:$4 sm:$0xff]  }
 0x66c   :  { %6181 = vmatprep.subr.bf16.mxu0 %v8330_v3  ;;  %6216 = vmatprep.subr.bf16.mxu1 %v8369_v4  ;;  %v8411_v3 = vld [vmem:[#allocation10 + $0x384] ss:$8 sps:$4 sm:$0xff]  }
 0x66f   :  { %6182 = vmatpush1.bf16.msra.mxu0 %v8328_v5  ;;  %6217 = vmatpush1.bf16.msra.mxu1 %v8367_v6 }
 0x670   :  { %6183 = vmatprep.subr.bf16.mxu0 %v8333_v7  ;;  %6218 = vmatprep.subr.bf16.mxu1 %v8372_v10 }
 0x673   :  { %6184 = vmatpush1.bf16.msra.mxu0 %v8331_v11  ;;  %6219 = vmatpush1.bf16.msra.mxu1 %v8370_v12  ;;  %v8409_v12 = vld [vmem:[#allocation10 + $0x380] ss:$8 sps:$4 sm:$0xff]  }
 0x674   :  { %6185 = vmatprep.subr.bf16.mxu0 %v8336_v13  ;;  %6220 = vmatprep.subr.bf16.mxu1 %v8375_v14 }
 0x677   :  { %6186 = vmatpush1.bf16.msra.mxu0 %v8334_v15  ;;  %6221 = vmatpush1.bf16.msra.mxu1 %v8373_v22 }
 0x678   :  { %6187 = vmatprep.subr.bf16.mxu0 %v8339_v23  ;;  %6222 = vmatprep.subr.bf16.mxu1 %v8378_v26 }
 0x67b   :  { %6188 = vmatpush1.bf16.msra.mxu0 %v8337_v27  ;;  %6223 = vmatpush1.bf16.msra.mxu1 %v8376_v31  ;;  %v3673_v27 = vsub.s32 6, %v8863_v17  ;;  %v3677_v31 = vsub.s32 7, %v8863_v17 }
 0x67c   :  { %6189 = vmatprep.subr.bf16.mxu0 %v8342_v34  ;;  %6224 = vmatprep.subr.bf16.mxu1 %v8381_v38 }
 0x67d   :  { %v3674_v34 = vrot.slane %v8987_v16, %v3673_v27  ;;  %v3678_v38 = vrot.slane %v8987_v16, %v3677_v31  ;;  %v8414_v16 = vld [vmem:[#allocation12 + $0x74] ss:$8 sps:$4 sm:$0xff]   ;;  %v8454_v27 = vld [vmem:[#allocation12 + $0x90] ss:$8 sps:$4 sm:$0xff]  }
 0x67f   :  { %6190 = vmatpush2.bf16.msra.mxu0 %v8340_v39  ;;  %6225 = vmatpush1.bf16.msra.mxu1 %v8379_v8 }
 0x680   :  { %6191 = vmatprep.subr.bf16.mxu0 %v8345_v52  ;;  %6226 = vmatprep.subr.bf16.mxu1 %v8384_v49 }
 0x683   :  { %6192 = vmatpush2.bf16.msra.mxu0 %v8343_v9  ;;  %6227 = vmatpush1.bf16.msra.mxu1 %v8382_v21 }
 0x684   :  { %6193 = vmatprep.subr.bf16.mxu0 %v8348_v42  ;;  %6228 = vmatprep.subr.bf16.mxu1 %v8387_v43 }
 0x687   :  { %6194 = vmatpush2.bf16.msra.mxu0 %v8346_v41  ;;  %6229 = vmatpush1.bf16.msra.mxu1 %v8385_v44 }
 0x688   :  { %6195 = vmatprep.subr.bf16.mxu0 %v8351_v20  ;;  %6230 = vmatprep.subr.bf16.mxu1 %v8390_v37 }
 0x68b   :  { %6196 = vmatpush2.bf16.msra.mxu0 %v8349_v28  ;;  %6231 = vmatpush2.bf16.msra.mxu1 %v8388_v30 }
 0x68c   :  { %6197 = vmatprep.subr.bf16.mxu0 %v8354_v40  ;;  %6232 = vmatprep.subr.bf16.mxu1 %v8393_v45  ;;  %v8412_v45 = vld [vmem:[#allocation12 + $0x70] ss:$8 sps:$4 sm:$0xff]  }
 0x68f   :  { %6198 = vmatpush2.bf16.msra.mxu0 %v8352_v29  ;;  %6233 = vmatpush2.bf16.msra.mxu1 %v8391_v46  ;;  %v8417_v29 = vld [vmem:[#allocation12 + $0x64] ss:$8 sps:$4 sm:$0xff]   ;;  %v8415_v46 = vld [vmem:[#allocation12 + $0x60] ss:$8 sps:$4 sm:$0xff]  }
 0x690   :  { %6199 = vmatprep.subr.bf16.mxu0 %v8357_v47  ;;  %6234 = vmatprep.subr.bf16.mxu1 %v8396_v48  ;;  %v8420_v47 = vld [vmem:[#allocation12 + $0x54] ss:$8 sps:$4 sm:$0xff]   ;;  %v8418_v48 = vld [vmem:[#allocation12 + $0x50] ss:$8 sps:$4 sm:$0xff]  }
 0x693   :  { %6200 = vmatpush2.bf16.msra.mxu0 %v8355_v32  ;;  %6235 = vmatpush2.bf16.msra.mxu1 %v8394_v50  ;;  %v8423_v32 = vld [vmem:[#allocation12 + $0x44] ss:$8 sps:$4 sm:$0xff]   ;;  %v8421_v50 = vld [vmem:[#allocation12 + $0x40] ss:$8 sps:$4 sm:$0xff]  }
 0x694   :  { %6201 = vmatprep.subr.bf16.mxu0 %v8360_v35  ;;  %6236 = vmatprep.subr.bf16.mxu1 %v8399_v51  ;;  %v8426_v35 = vld [vmem:[#allocation12 + $0x34] ss:$8 sps:$4 sm:$0xff]   ;;  %v8424_v51 = vld [vmem:[#allocation12 + $0x30] ss:$8 sps:$4 sm:$0xff]  }
 0x697   :  { %6202 = vmatpush2.bf16.msra.mxu0 %v8358_v33  ;;  %6237 = vmatpush2.bf16.msra.mxu1 %v8397_v53  ;;  %v8429_v33 = vld [vmem:[#allocation12 + $0x24] ss:$8 sps:$4 sm:$0xff]   ;;  %v8427_v53 = vld [vmem:[#allocation12 + $0x20] ss:$8 sps:$4 sm:$0xff]  }
 0x698   :  { %6203 = vmatprep.subr.bf16.mxu0 %v8363_v54  ;;  %6238 = vmatprep.subr.bf16.mxu1 %v8402_v18  ;;  %v8432_v54 = vld [vmem:[#allocation12 + $0x14] ss:$8 sps:$4 sm:$0xff]   ;;  %v8430_v18 = vld [vmem:[#allocation12 + $0x10] ss:$8 sps:$4 sm:$0xff]  }
 0x69b   :  { %6204 = vmatpush2.bf16.msra.mxu0 %v8361_v56  ;;  %6239 = vmatpush2.bf16.msra.mxu1 %v8400_v57  ;;  %v8433_v56 = vld [vmem:[#allocation12] ss:$8 sps:$4 sm:$0xff]   ;;  %v8438_v57 = vld [vmem:[#allocation12 + $0xf4] ss:$8 sps:$4 sm:$0xff]  }
 0x69c   :  { %6240 = vmatprep.subr.bf16.mxu1 %v8405_v36  ;;  %6463 = vmatprep.subr.bf16.mxu0 %v8414_v16  ;;  %v8436_v36 = vld [vmem:[#allocation12 + $0xf0] ss:$8 sps:$4 sm:$0xff]  }
 0x69e   :  { %v5165_v62 = vpop.f32.mrf.mxu0 }
 0x69f   :  { %v5166_v63 = vadd.f32 %v5165_v62, %v3666_v59  ;;  %v5206_v0 = vpop.f32.mrf.mxu1  ;;  %6241 = vmatpush2.bf16.msra.mxu1 %v8403_v19  ;;  %v8439_v59 = vld [vmem:[#allocation12 + $0xe0] ss:$8 sps:$4 sm:$0xff]   ;;  %v8444_v19 = vld [vmem:[#allocation12 + $0xd4] ss:$8 sps:$4 sm:$0xff]  }
 0x6a0   :  { %v5167_v2 = vpop.f32.mrf.mxu0  ;;  %6242 = vmatprep.subr.bf16.mxu1 %v8408_v60  ;;  %v8442_v60 = vld [vmem:[#allocation12 + $0xd0] ss:$8 sps:$4 sm:$0xff]   ;;  %v8445_v62 = vld [vmem:[#allocation12 + $0xc0] ss:$8 sps:$4 sm:$0xff]  }
 0x6a1   :  { %v5207_v4 = vadd.f32 %v5206_v0, %v5166_v63  ;;  %v5168_v5 = vadd.f32 %v5167_v2, %v3670_v61  ;;  %v5208_v6 = vpop.f32.mrf.mxu1  ;;  %v8447_v61 = vld [vmem:[#allocation12 + $0xc4] ss:$8 sps:$4 sm:$0xff]   ;;  %v8450_v63 = vld [vmem:[#allocation12 + $0xb4] ss:$8 sps:$4 sm:$0xff]  }
 0x6a2   :  { %v5169_v7 = vpop.f32.mrf.mxu0 }
 0x6a3   :  { %v5209_v10 = vadd.f32 %v5208_v6, %v5168_v5  ;;  %v5210_v11 = vpop.f32.mrf.mxu1  ;;  %6243 = vmatpush2.bf16.msra.mxu1 %v8406_v1  ;;  %v5299_v13 = vmax.f32 %v5207_v4, 0.0  ;;  %v8448_v1 = vld [vmem:[#allocation12 + $0xb0] ss:$8 sps:$4 sm:$0xff]   ;;  %v5439_v4 = vld [vmem:[%s9043_s14] sm:$0x3] }
 0x6a4   :  { %v5170_v14 = vpop.f32.mrf.mxu0  ;;  %6244 = vmatprep.subr.bf16.mxu1 %v8411_v3  ;;  %v8453_v3 = vld [vmem:[#allocation12 + $0xa4] ss:$8 sps:$4 sm:$0xff]   ;;  %v8451_v6 = vld [vmem:[#allocation12 + $0xa0] ss:$8 sps:$4 sm:$0xff]   ;;  %v5448_v11 = vrot.slane %v5439_v4, %v8869_v25 }
 0x6a5   :  { %v5300_v15 = vmax.f32 %v5209_v10, 0.0  ;;  %v5211_v22 = vpop.f32.mrf.mxu1  ;;  %v5307_v26 = vpack.c.bf16 %v5299_v13, %v5299_v13  ;;  %v5444_v10 = vrot.slane %v5439_v4, %v8866_v24 }
 0x6a7   :  { %v5308_v23 = vpack.c.bf16 %v5300_v15, %v5300_v15  ;;  %6245 = vmatpush2.bf16.msra.mxu1 %v8409_v12 }
 0x6a9   :  { %6205 = vmatprep.mubr.bf16.mxu0 %v5308_v23  ;;  %v8456_v23 = vld [vmem:[#allocation12 + $0x94] ss:$8 sps:$4 sm:$0xff]  }
 0x6aa   :  { %6206 = vmatmul.mubr.bf16.vlgmr.msra.gmra.mxu0 %v5307_v26 }
 0x6ab   :  { %6464 = vmatpush1.bf16.msra.mxu0 %v8412_v45 }
 0x6ac   :  { %6465 = vmatprep.subr.bf16.mxu0 %v8417_v29 }
 0x6af   :  { %6466 = vmatpush1.bf16.msra.mxu0 %v8415_v46 }
 0x6b0   :  { %6467 = vmatprep.subr.bf16.mxu0 %v8420_v47 }
 0x6b3   :  { %6468 = vmatpush1.bf16.msra.mxu0 %v8418_v48 }
 0x6b4   :  { %6469 = vmatprep.subr.bf16.mxu0 %v8423_v32 }
 0x6b7   :  { %6470 = vmatpush1.bf16.msra.mxu0 %v8421_v50 }
 0x6b8   :  { %6471 = vmatprep.subr.bf16.mxu0 %v8426_v35 }
 0x6bb   :  { %6472 = vmatpush1.bf16.msra.mxu0 %v8424_v51 }
 0x6bc   :  { %6473 = vmatprep.subr.bf16.mxu0 %v8429_v33 }
 0x6bf   :  { %6474 = vmatpush1.bf16.msra.mxu0 %v8427_v53 }
 0x6c0   :  { %6475 = vmatprep.subr.bf16.mxu0 %v8432_v54 }
 0x6c3   :  { %6476 = vmatpush1.bf16.msra.mxu0 %v8430_v18  ;;  %v8472_v18 = vld [vmem:[#allocation13 + $0x48] sm:$0xff]  }
 0x6c4   :  { %6477 = vmatprep.subr.bf16.mxu0 %v8435_v55  ;;  %v8473_v55 = vld [vmem:[#allocation13 + $0x8] sm:$0xff]  }
 0x6c7   :  { %6478 = vmatpush1.bf16.msra.mxu0 %v8433_v56  ;;  %v8474_v56 = vld [vmem:[#allocation13 + $0x40] sm:$0xff]  }
 0x6c8   :  { %6479 = vmatprep.subr.bf16.mxu0 %v8438_v57  ;;  %v8475_v57 = vld [vmem:[#allocation13] sm:$0xff]  }
 0x6cb   :  { %6480 = vmatpush2.bf16.msra.mxu0 %v8436_v36  ;;  %v6291_v36 = vld [vmem:[%s9045_s16] sm:$0x3] }
 0x6cc   :  { %6481 = vmatprep.subr.bf16.mxu0 %v8441_v58  ;;  %v6296_v58 = vrot.slane %v6291_v36, %v8866_v24 }
 0x6cf   :  { %6482 = vmatpush2.bf16.msra.mxu0 %v8439_v59  ;;  %v6300_v59 = vrot.slane %v6291_v36, %v8869_v25 }
 0x6d0   :  { %6483 = vmatprep.subr.bf16.mxu0 %v8444_v19 }
 0x6d3   :  { %6484 = vmatpush2.bf16.msra.mxu0 %v8442_v60 }
 0x6d4   :  { %6485 = vmatprep.subr.bf16.mxu0 %v8447_v61 }
 0x6d7   :  { %6486 = vmatpush2.bf16.msra.mxu0 %v8445_v62 }
 0x6d8   :  { %6487 = vmatprep.subr.bf16.mxu0 %v8450_v63 }
 0x6db   :  { %6488 = vmatpush2.bf16.msra.mxu0 %v8448_v1 }
 0x6dc   :  { %6489 = vmatprep.subr.bf16.mxu0 %v8453_v3 }
 0x6de   :  { %v5247_v39 = vpop.f32.mrf.mxu0 }
 0x6df   :  { %v5248_v8 = vadd.f32 %v5247_v39, %v3674_v34  ;;  %v5288_v52 = vpop.f32.mrf.mxu1  ;;  %6490 = vmatpush2.bf16.msra.mxu0 %v8451_v6  ;;  %v8457_v39 = vld [vmem:[#allocation12 + $0x80] ss:$8 sps:$4 sm:$0xff]  }
 0x6e0   :  { %v5249_v49 = vpop.f32.mrf.mxu0  ;;  %6491 = vmatprep.subr.bf16.mxu0 %v8456_v23  ;;  %v7526_v6 = vld [vmem:[%s9047_s18] ss:$0 sm:$0xff] }
 0x6e1   :  { %v5289_v9 = vadd.f32 %v5288_v52, %v5248_v8  ;;  %v5250_v21 = vadd.f32 %v5249_v49, %v3678_v38  ;;  %v5290_v42 = vpop.f32.mrf.mxu1  ;;  %v8459_v38 = vld [vmem:[#allocation12 + $0x84] ss:$8 sps:$4 sm:$0xff]   ;;  %v8460_v8 = vld [vmem:[#allocation13 + $0x78] sm:$0xff]   ;;  %v8462_v49 = vld [vmem:[#allocation13 + $0x70] sm:$0xff]  }
 0x6e2   :  { %v5251_v43 = vpop.f32.mrf.mxu0  ;;  %v8461_v52 = vld [vmem:[#allocation13 + $0x38] sm:$0xff]   ;;  %7565 = vmatprep.subr.bf16.mxu1 %v8460_v8 }
 0x6e3   :  { %v5291_v41 = vadd.f32 %v5290_v42, %v5250_v21  ;;  %v5292_v44 = vpop.f32.mrf.mxu1  ;;  %v5301_v20 = vmax.f32 %v5289_v9, 0.0  ;;  %6492 = vmatpush2.bf16.msra.mxu0 %v8454_v27  ;;  %v8463_v9 = vld [vmem:[#allocation13 + $0x30] sm:$0xff]   ;;  %v8464_v21 = vld [vmem:[#allocation13 + $0x68] sm:$0xff]   ;;  %v8466_v43 = vld [vmem:[#allocation13 + $0x60] sm:$0xff]  }
 0x6e4   :  { %v5252_v37 = vpop.f32.mrf.mxu0  ;;  %6493 = vmatprep.subr.bf16.mxu0 %v8459_v38  ;;  %v8465_v42 = vld [vmem:[#allocation13 + $0x28] sm:$0xff]   ;;  %v8468_v44 = vld [vmem:[#allocation13 + $0x58] sm:$0xff]  }
 0x6e5   :  { %v5302_v28 = vmax.f32 %v5291_v41, 0.0  ;;  %v5293_v30 = vpop.f32.mrf.mxu1  ;;  %v5309_v17 = vpack.c.bf16 %v5301_v20, %v5301_v20  ;;  %v8467_v41 = vld [vmem:[#allocation13 + $0x20] sm:$0xff]   ;;  %v8469_v20 = vld [vmem:[#allocation13 + $0x18] sm:$0xff]   ;;  %v8470_v37 = vld [vmem:[#allocation13 + $0x50] sm:$0xff]  }
 0x6e7   :  { %v5310_v40 = vpack.c.bf16 %v5302_v28, %v5302_v28  ;;  %6494 = vmatpush2.bf16.msra.mxu0 %v8457_v39  ;;  %v8471_v28 = vld [vmem:[#allocation13 + $0x10] sm:$0xff]  }
 0x6e9   :  { %6246 = vmatprep.mubr.bf16.mxu1 %v5310_v40 }
 0x6ea   :  { %6247 = vmatmul.mubr.bf16.vlgmr.msra.gmra.mxu1 %v5309_v17 }
 0x6eb   :  { %7566 = vmatpush3.bf16.msra.mxu1 %v8461_v52 }
 0x6ec   :  { %7567 = vmatprep.subr.bf16.mxu1 %v8462_v49 }
 0x6ef   :  { %7568 = vmatpush3.bf16.msra.mxu1 %v8463_v9 }
 0x6f0   :  { %7569 = vmatprep.subr.bf16.mxu1 %v8464_v21 }
 0x6f3   :  { %7570 = vmatpush3.bf16.msra.mxu1 %v8465_v42 }
 0x6f4   :  { %7571 = vmatprep.subr.bf16.mxu1 %v8466_v43 }
 0x6f7   :  { %7572 = vmatpush3.bf16.msra.mxu1 %v8467_v41 }
 0x6f8   :  { %7573 = vmatprep.subr.bf16.mxu1 %v8468_v44 }
 0x6fb   :  { %7574 = vmatpush3.bf16.msra.mxu1 %v8469_v20 }
 0x6fc   :  { %7575 = vmatprep.subr.bf16.mxu1 %v8470_v37 }
 0x6ff   :  { %7576 = vmatpush3.bf16.msra.mxu1 %v8471_v28 }
 0x700   :  { %7577 = vmatprep.subr.bf16.mxu1 %v8472_v18 }
 0x703   :  { %7578 = vmatpush3.bf16.msra.mxu1 %v8473_v55 }
 0x704   :  { %7579 = vmatprep.subr.bf16.mxu1 %v8474_v56 }
 0x707   :  { %7580 = vmatpush3.bf16.msra.mxu1 %v8475_v57 }
 0x71e   :  { %v6125_v0 = vpop.f32.mrf.mxu0 }
 0x71f   :  { %v6126_v12 = vadd.f32 %v6125_v0, %v5444_v10 }
 0x720   :  { %v6127_v2 = vpop.f32.mrf.mxu0 }
 0x721   :  { %v6128_v14 = vadd.f32 %v6127_v2, %v5448_v11 }
 0x722   :  { %v6129_v5 = vpop.f32.mrf.mxu0 }
 0x724   :  { %v6130_v7 = vpop.f32.mrf.mxu0 }
 0x72a   :  { %v6166_v13 = vpop.f32.mrf.mxu1 }
 0x72b   :  { %v6167_v15 = vadd.f32 %v6166_v13, %v6126_v12 }
 0x72c   :  { %v6168_v22 = vpop.f32.mrf.mxu1 }
 0x72d   :  { %v6169_v26 = vadd.f32 %v6168_v22, %v6128_v14 }
 0x72e   :  { %v6170_v31 = vpop.f32.mrf.mxu1 }
 0x730   :  { %v6171_v34 = vpop.f32.mrf.mxu1 }
 0x76a   :  { %v6207_v30 = vpop.f32.mrf.mxu0 }
 0x76b   :  { %v6208_v40 = vadd.f32 %v6207_v30, %v6167_v15 }
 0x76c   :  { %v6209_v17 = vpop.f32.mrf.mxu0 }
 0x76d   :  { %v6210_v46 = vadd.f32 %v6209_v17, %v6169_v26 }
 0x76e   :  { %v6211_v45 = vpop.f32.mrf.mxu0 }
 0x770   :  { %v6212_v16 = vpop.f32.mrf.mxu0 }
 0x7aa   :  { %v6248_v29 = vpop.f32.mrf.mxu1 }
 0x7ab   :  { %v6249_v47 = vadd.f32 %v6248_v29, %v6208_v40 }
 0x7ac   :  { %v6250_v48 = vpop.f32.mrf.mxu1 }
 0x7ad   :  { %v6251_v32 = vadd.f32 %v6250_v48, %v6210_v46  ;;  %v6255_v50 = vmax.f32 %v6249_v47, 0.0 }
 0x7ae   :  { %v6252_v35 = vpop.f32.mrf.mxu1 }
 0x7af   :  { %v6256_v51 = vmax.f32 %v6251_v32, 0.0  ;;  %v6257_v54 = vpack.c.bf16 %v6255_v50, %v6255_v50 }
 0x7b0   :  { %v6253_v33 = vpop.f32.mrf.mxu1 }
 0x7b1   :  { %v6258_v53 = vpack.c.bf16 %v6256_v51, %v6256_v51 }
 0x7b3   :  { %6495 = vmatprep.mubr.bf16.mxu0 %v6258_v53 }
 0x7b4   :  { %6496 = vmatmul.mubr.bf16.vlgmr.msra.gmra.mxu0 %v6257_v54 }
 0x874   :  { %v6497_v19 = vpop.f32.mrf.mxu0 }
 0x875   :  { %v6498_v60 = vadd.f32 %v6497_v19, %v6296_v58 }
 0x876   :  { %v6499_v61 = vpop.f32.mrf.mxu0 }
 0x877   :  { %v6500_v62 = vadd.f32 %v6499_v61, %v6300_v59  ;;  %v6504_v63 = vmax.f32 %v6498_v60, 0.0 }
 0x878   :  { %v6501_v0 = vpop.f32.mrf.mxu0 }
 0x879   :  { %v6505_v1 = vmax.f32 %v6500_v62, 0.0  ;;  %v6506_v4 = vpack.c.bf16 %v6504_v63, %v6504_v63 }
 0x87a   :  { %v6502_v2 = vpop.f32.mrf.mxu0 }
 0x87b   :  { %v6507_v3 = vpack.c.bf16 %v6505_v1, %v6505_v1 }
 0x87d   :  { %6675 = vmatprep.mubr.bf16.mxu1 %v6507_v3 }
 0x87e   :  { %6676 = vmatmul.mubr.bf16.vlgmr.msra.gmra.mxu1 %v6506_v4 }
 0x93e   :  { %v7581_v5 = vpop.f32.mrf.mxu1 }
 0x940   :  { %v7582_v24 = vpop.f32.mrf.mxu1 }
 0x941   :  { %v7583_v7 = vadd.f32 %v7582_v24, %v7581_v5 }
 0x942   :  { %v7584_v25 = vpop.f32.mrf.mxu1 }
 0x943   :  { %v6678_v10 = vadd.f32 %v7583_v7, %v7526_v6 }
 0x944   :  { %v7585_v11 = vpop.f32.mrf.mxu1 }
 0x945   :  { %6683 = vst [vmem:[%s9048_s19] sm:$0xff] %v6678_v10 }
 0x946   :  { %6688 = vsyncpa [#allocation3], 1 }
 0x947   :  { %6689 = vsyncpa [#allocation5], 1 }
 0x948   :  { %6690 = vsyncpa [#allocation8], 1 }
 0x949   :  { %6691 = vsyncpa [#allocation11], 1 }
 0x94a   :  { %6692 = vsyncpa [#allocation14], 1 }

</bundles_post_ra>
